<compile_context>
chip_gen: v7x
topology: tpu7x:2x2x1
jax: 0.10.0
libtpu: 0.0.40
codegen_flags: <defaults>
</compile_context>

<pallas_src>
import functools

import jax
import jax.numpy as jnp
from jax import lax
from jax.experimental import pallas as pl
from jax.experimental.pallas import tpu as pltpu

EPS = 1e-5
EXPANSION = 4
LANE = 128
VMEM_LIMIT = 48 * 1024 * 1024   # sized below v7x's 64 MiB physical VMEM

# MXU operand dtype.  float32 keeps numerics tight vs. the f32 reference;
# switch to jnp.bfloat16 on v6e/v7x for ~2x MXU throughput + half the
# VMEM/HBM traffic (all BN/epilogue math stays in float32 either way).
MXU_DTYPE = jnp.float32


# ------------------------------ small helpers -------------------------------


def _pick_div(n, candidates):
    for c in candidates:
        if c <= n and n % c == 0:
            return c
    return n


def _pad_dim(a, axis, mult=LANE):
    pad = (-a.shape[axis]) % mult
    if pad == 0:
        return a
    widths = [(0, 0)] * a.ndim
    widths[axis] = (0, pad)
    return jnp.pad(a, widths)


def _pad_vec(v):
    return _pad_dim(v.reshape(1, -1), 1)


def _compiler_params(sem):
    return pltpu.CompilerParams(dimension_semantics=sem,
                                vmem_limit_bytes=VMEM_LIMIT)


def fold_bn(pstats, count, gamma, beta):
    """Partial (sum, sumsq) tiles -> per-channel affine scale/shift (f32)."""
    c = pstats.shape[-1]
    s = pstats.reshape(-1, 2, c).sum(axis=0)
    mean = s[0] / count
    var = jnp.maximum(s[1] / count - mean * mean, 0.0)
    scale = gamma.reshape(-1) * lax.rsqrt(var + EPS)
    shift = beta.reshape(-1) - mean * scale
    return scale.reshape(1, c), shift.reshape(1, c)


# ----------------------------- Pallas kernels --------------------------------


def _mm_stats_kernel(x_ref, w_ref, y_ref, ps_ref):
    # matmul (MXU) + per-tile partial BN stats of the raw output
    y = jnp.dot(x_ref[...].astype(MXU_DTYPE), w_ref[...].astype(MXU_DTYPE),
                preferred_element_type=jnp.float32)
    y_ref[...] = y
    s1 = jnp.sum(y, axis=0, keepdims=True)
    s2 = jnp.sum(y * y, axis=0, keepdims=True)
    ps_ref[...] = jnp.concatenate([s1, s2], axis=0)[None]


def _conv3x3_bnrelu_stats_kernel(xpk_ref, sc_ref, sh_ref, w_ref, y_ref, ps_ref,
                                 *, stride, th, wo, cm, h, w):
    # 9-tap 3x3 conv from a space-to-depth packed, spatially padded RAW stage-1
    # output kept resident in VMEM.  BN1 + ReLU are applied on the fly per tap
    # (VPU work hides under the MXU), spatial-padding positions are masked to
    # zero, and the 9 tap matmuls accumulate in f32.  Emits partial BN2 stats.
    h0 = pl.program_id(1) * th
    sc = sc_ref[...].reshape(1, 1, cm)
    sh = sh_ref[...].reshape(1, 1, cm)
    row_id = lax.broadcasted_iota(jnp.int32, (th, wo, 1), 0)
    col_id = lax.broadcasted_iota(jnp.int32, (th, wo, 1), 1)
    acc = jnp.zeros((th * wo, cm), jnp.float32)
    for kh in range(3):
        for kw in range(3):
            coff = ((kh % stride) * stride + (kw % stride)) * cm
            patch = xpk_ref[0,
                            pl.ds(h0 + kh // stride, th),
                            pl.ds(kw // stride, wo),
                            pl.ds(coff, cm)]
            # stage-1 BN + ReLU applied on the fly
            act = jnp.maximum(patch * sc + sh, 0.0)
            # zero out spatial-padding positions (padded image coords 0 and >h/w)
            rpad = (h0 + row_id) * stride + kh
            cpad = col_id * stride + kw
            valid = (rpad >= 1) & (rpad <= h) & (cpad >= 1) & (cpad <= w)
            act = jnp.where(valid, act, 0.0)
            acc = acc + jnp.dot(act.reshape(th * wo, cm).astype(MXU_DTYPE),
                                w_ref[kh, kw].astype(MXU_DTYPE),
                                preferred_element_type=jnp.float32)
    y_ref[...] = acc.reshape(1, th, wo, cm)
    s1 = jnp.sum(acc, axis=0, keepdims=True)
    s2 = jnp.sum(acc * acc, axis=0, keepdims=True)
    ps_ref[...] = jnp.concatenate([s1, s2], axis=0)[None, None]


def _bn_relu_mm_stats_kernel(x_ref, sc_ref, sh_ref, w_ref, y_ref, ps_ref):
    # previous stage's BN+ReLU applied on the fly, then matmul + partial stats
    t = jnp.maximum(x_ref[...] * sc_ref[...] + sh_ref[...], 0.0)
    y = jnp.dot(t.astype(MXU_DTYPE), w_ref[...].astype(MXU_DTYPE),
                preferred_element_type=jnp.float32)
    y_ref[...] = y
    s1 = jnp.sum(y, axis=0, keepdims=True)
    s2 = jnp.sum(y * y, axis=0, keepdims=True)
    ps_ref[...] = jnp.concatenate([s1, s2], axis=0)[None]


def _residual_out_kernel(y_ref, sc_ref, sh_ref, s_ref, scs_ref, shs_ref, o_ref):
    # BN3 + shortcut BN (identity: scale=1, shift=0) + add + ReLU, fused
    res = y_ref[...] * sc_ref[...] + sh_ref[...]
    sc = s_ref[...] * scs_ref[...] + shs_ref[...]
    o_ref[...] = jnp.maximum(res + sc, 0.0)


# ------------------------------ kernel wrappers ------------------------------


def mm_stats(x_flat, w):
    m, k = x_flat.shape
    cout = w.shape[1]
    tm = _pick_div(m, (512, 256, 128, 64, 32, 16, 8))
    nt = m // tm
    return pl.pallas_call(
        _mm_stats_kernel,
        grid=(nt,),
        in_specs=[pl.BlockSpec((tm, k), lambda i: (i, 0)),
                  pl.BlockSpec((k, cout), lambda i: (0, 0))],
        out_specs=(pl.BlockSpec((tm, cout), lambda i: (i, 0)),
                   pl.BlockSpec((1, 2, cout), lambda i: (i, 0, 0))),
        out_shape=(jax.ShapeDtypeStruct((m, cout), jnp.float32),
                   jax.ShapeDtypeStruct((nt, 2, cout), jnp.float32)),
        compiler_params=_compiler_params(("parallel",)),
    )(x_flat, w)


def conv3x3_bnrelu_stats(xpk, sc1, sh1, w2, stride, ho, wo, h, w):
    n, ph, pw, pc = xpk.shape
    cm = w2.shape[-1]
    th = _pick_div(ho, (16, 8, 4, 2, 1))
    nt = ho // th
    kern = functools.partial(_conv3x3_bnrelu_stats_kernel,
                             stride=stride, th=th, wo=wo, cm=cm, h=h, w=w)
    return pl.pallas_call(
        kern,
        grid=(n, nt),
        in_specs=[pl.BlockSpec((1, ph, pw, pc), lambda b, i: (b, 0, 0, 0)),
                  pl.BlockSpec((1, cm), lambda b, i: (0, 0)),
                  pl.BlockSpec((1, cm), lambda b, i: (0, 0)),
                  pl.BlockSpec(w2.shape, lambda b, i: (0, 0, 0, 0))],
        out_specs=(pl.BlockSpec((1, th, wo, cm), lambda b, i: (b, i, 0, 0)),
                   pl.BlockSpec((1, 1, 2, cm), lambda b, i: (b, i, 0, 0))),
        out_shape=(jax.ShapeDtypeStruct((n, ho, wo, cm), jnp.float32),
                   jax.ShapeDtypeStruct((n, nt, 2, cm), jnp.float32)),
        compiler_params=_compiler_params(("parallel", "arbitrary")),
    )(xpk, sc1, sh1, w2)


def bn_relu_mm_stats(x_flat, scale, shift, w):
    m, k = x_flat.shape
    cout = w.shape[1]
    tm = _pick_div(m, (512, 256, 128, 64, 32, 16, 8))
    nt = m // tm
    return pl.pallas_call(
        _bn_relu_mm_stats_kernel,
        grid=(nt,),
        in_specs=[pl.BlockSpec((tm, k), lambda i: (i, 0)),
                  pl.BlockSpec((1, k), lambda i: (0, 0)),
                  pl.BlockSpec((1, k), lambda i: (0, 0)),
                  pl.BlockSpec((k, cout), lambda i: (0, 0))],
        out_specs=(pl.BlockSpec((tm, cout), lambda i: (i, 0)),
                   pl.BlockSpec((1, 2, cout), lambda i: (i, 0, 0))),
        out_shape=(jax.ShapeDtypeStruct((m, cout), jnp.float32),
                   jax.ShapeDtypeStruct((nt, 2, cout), jnp.float32)),
        compiler_params=_compiler_params(("parallel",)),
    )(x_flat, scale, shift, w)


def residual_bn_add_relu(y3, sc3, sh3, sc_in, scs, shs):
    m, c = y3.shape
    tm = _pick_div(m, (1024, 512, 256, 128, 64, 32, 16, 8))
    return pl.pallas_call(
        _residual_out_kernel,
        grid=(m // tm,),
        in_specs=[pl.BlockSpec((tm, c), lambda i: (i, 0)),
                  pl.BlockSpec((1, c), lambda i: (0, 0)),
                  pl.BlockSpec((1, c), lambda i: (0, 0)),
                  pl.BlockSpec((tm, c), lambda i: (i, 0)),
                  pl.BlockSpec((1, c), lambda i: (0, 0)),
                  pl.BlockSpec((1, c), lambda i: (0, 0))],
        out_specs=pl.BlockSpec((tm, c), lambda i: (i, 0)),
        out_shape=jax.ShapeDtypeStruct((m, c), jnp.float32),
        compiler_params=_compiler_params(("parallel",)),
    )(y3, sc3, sh3, sc_in, scs, shs)


# ------------------------------- JAX glue ------------------------------------


def _pack_space_to_depth(x, stride):
    """Spatial pad by 1 (the conv's padding), round the padded dims up to a
    multiple of `stride`, then fold each stride x stride spatial cell into the
    channel dim so every 3x3 tap becomes a dense slice inside the kernel."""
    n, h, w, c = x.shape
    s = stride
    h2 = -(-(h + 2) // s) * s
    w2 = -(-(w + 2) // s) * s
    xp = jnp.pad(x, ((0, 0), (1, h2 - h - 1), (1, w2 - w - 1), (0, 0)))
    if s == 1:
        return xp
    xp = xp.reshape(n, h2 // s, s, w2 // s, s, c)
    xp = xp.transpose(0, 1, 3, 2, 4, 5).reshape(n, h2 // s, w2 // s, s * s * c)
    return xp


def init_bottleneck_params(key, in_channels, out_channels, stride, use_conv=False):
    keys = jax.random.split(key, 12)
    cm = out_channels
    ce = out_channels * EXPANSION

    def conv_w(k, cin, cout, kh=1, kw=1):
        fan_in = cin * kh * kw
        return jax.random.normal(k, (kh, kw, cin, cout), jnp.float32) * (2.0 / fan_in) ** 0.5

    def bn_params(kg, kb, c):
        return (1.0 + 0.1 * jax.random.normal(kg, (c,), jnp.float32),
                0.1 * jax.random.normal(kb, (c,), jnp.float32))

    p = {}
    p["w1"] = conv_w(keys[0], in_channels, cm)[0, 0]          # (Cin, Cm)
    p["g1"], p["b1"] = bn_params(keys[1], keys[2], cm)
    p["w2"] = conv_w(keys[3], cm, cm, 3, 3)                   # (3,3,Cm,Cm) HWIO
    p["g2"], p["b2"] = bn_params(keys[4], keys[5], cm)
    p["w3"] = conv_w(keys[6], cm, ce)[0, 0]                   # (Cm, Ce)
    p["g3"], p["b3"] = bn_params(keys[7], keys[8], ce)

    needs_proj = (stride != 1) or (in_channels != ce) or use_conv
    if needs_proj:
        p["ws"] = conv_w(keys[9], in_channels, ce)[0, 0]      # (Cin, Ce)
        p["gs"], p["bs"] = bn_params(keys[10], keys[11], ce)
    return p, needs_proj


@functools.partial(jax.jit, static_argnums=(2, 3))
def bottleneck_forward(params, x_nhwc, stride, needs_proj):
    n, h, w, cin = x_nhwc.shape
    ce = params["g3"].shape[0]

    # lane-dense channel padding (zero weights / gamma / beta -> pad channels
    # stay exactly zero; sliced off at the end)
    xp = _pad_dim(x_nhwc, 3)
    cin_p = xp.shape[3]
    w1 = _pad_dim(_pad_dim(params["w1"], 0), 1)
    w2 = _pad_dim(_pad_dim(params["w2"], 2), 3)
    w3 = _pad_dim(_pad_dim(params["w3"], 0), 1)
    cm_p, ce_p = w3.shape
    g1, b1 = _pad_vec(params["g1"]), _pad_vec(params["b1"])
    g2, b2 = _pad_vec(params["g2"]), _pad_vec(params["b2"])
    g3, b3 = _pad_vec(params["g3"]), _pad_vec(params["b3"])

    m0 = n * h * w
    x_flat = xp.reshape(m0, cin_p)

    # stage 1: 1x1 conv (tiled matmul) + cross-tile BN stats
    y1_raw, ps1 = mm_stats(x_flat, w1)
    sc1, sh1 = fold_bn(ps1, m0, g1, b1)

    # stage 2: 3x3 conv; BN1+ReLU fused per tap inside the kernel (padding
    # positions masked), stride/pad handled by space-to-depth packing of the
    # RAW stage-1 output + in-kernel 9-tap accumulation (no im2col in HBM,
    # no separate BN1+ReLU elementwise pass)
    ho = (h - 1) // stride + 1
    wo = (w - 1) // stride + 1
    xpk = _pack_space_to_depth(y1_raw.reshape(n, h, w, cm_p), stride)
    y2_raw, ps2 = conv3x3_bnrelu_stats(xpk, sc1, sh1, w2, stride, ho, wo, h, w)
    m1 = n * ho * wo
    sc2, sh2 = fold_bn(ps2, m1, g2, b2)

    # stage 3: BN2+ReLU fused into the 1x1 conv matmul (+ stage-3 stats)
    y3_raw, ps3 = bn_relu_mm_stats(y2_raw.reshape(m1, cm_p), sc2, sh2, w3)
    sc3, sh3 = fold_bn(ps3, m1, g3, b3)

    # shortcut path
    if needs_proj:
        ws = _pad_dim(_pad_dim(params["ws"], 0), 1)
        gs, bs = _pad_vec(params["gs"]), _pad_vec(params["bs"])
        # TODO(synk): fold the strided shortcut subsample into the matmul
        # kernel's BlockSpec instead of this XLA-level strided slice.
        xs = xp[:, ::stride, ::stride, :].reshape(m1, cin_p)
        ysc_raw, pss = mm_stats(xs, ws)
        scs, shs = fold_bn(pss, m1, gs, bs)
    else:
        ysc_raw = x_flat
        scs = jnp.ones((1, ce_p), jnp.float32)
        shs = jnp.zeros((1, ce_p), jnp.float32)

    # BN3 + shortcut BN + residual add + ReLU, fused epilogue
    out = residual_bn_add_relu(y3_raw, sc3, sh3, ysc_raw, scs, shs)
    return out.reshape(n, ho, wo, ce_p)[..., :ce]


# ------------------------- pure-JAX reference check --------------------------


def _ref_forward(params, x_nhwc, stride, needs_proj):
    def conv(x, w_hwio, s, pad):
        return lax.conv_general_dilated(
            x, w_hwio, window_strides=(s, s), padding=[(pad, pad), (pad, pad)],
            dimension_numbers=("NHWC", "HWIO", "NHWC"),
            precision=lax.Precision.HIGHEST)

    def bn(x, g, b):
        mean = jnp.mean(x, axis=(0, 1, 2), keepdims=True)
        var = jnp.mean(jnp.square(x - mean), axis=(0, 1, 2), keepdims=True)
        return (x - mean) * lax.rsqrt(var + EPS) * g + b

    y = jnp.maximum(bn(conv(x_nhwc, params["w1"][None, None], 1, 0),
                       params["g1"], params["b1"]), 0.0)
    y = jnp.maximum(bn(conv(y, params["w2"], stride, 1),
                       params["g2"], params["b2"]), 0.0)
    y = bn(conv(y, params["w3"][None, None], 1, 0), params["g3"], params["b3"])
    if needs_proj:
        sc = bn(conv(x_nhwc, params["ws"][None, None], stride, 0),
                params["gs"], params["bs"])
    else:
        sc = x_nhwc
    return jnp.maximum(y + sc, 0.0)


# ----------------------------------- main ------------------------------------

if __name__ == "__main__":
    key = jax.random.PRNGKey(0)
    configs = [
        # (N, C_in, H, W, C_out, stride)
        (2, 8, 16, 16, 8, 2),    # projection shortcut, strided 3x3
        (2, 32, 16, 16, 8, 1),   # identity shortcut (C_in == C_out*expansion)
    ]
    for n, cin, h, w, cout, stride in configs:
        kx, kp, key = jax.random.split(key, 3)
        x_nchw = jax.random.normal(kx, (n, cin, h, w), jnp.float32)  # PyTorch layout
        x_nhwc = jnp.transpose(x_nchw, (0, 2, 3, 1))                 # kernel layout

        params, needs_proj = init_bottleneck_params(kp, cin, cout, stride)

        out = jax.block_until_ready(bottleneck_forward(params, x_nhwc, stride, needs_proj))
        ref = jax.block_until_ready(_ref_forward(params, x_nhwc, stride, needs_proj))

        assert out.shape == ref.shape, (out.shape, ref.shape)
        max_err = float(jnp.max(jnp.abs(out - ref)))
        assert jnp.allclose(out, ref, atol=5e-4, rtol=5e-4), (cin, cout, stride, max_err)

    print("KERNEL_OK")
</pallas_src>

<mosaic_0001>
module attributes {stable_mosaic.version = 11 : i64} {
  func.func @_mm_stats_kernel(%arg0: i32, %arg1: memref<512x128xf32, #tpu.memory_space<vmem>>, %arg2: memref<128x128xf32, #tpu.memory_space<vmem>>, %arg3: memref<512x128xf32, #tpu.memory_space<vmem>>, %arg4: memref<1x2x128xf32, #tpu.memory_space<vmem>>) attributes {dimension_semantics = [#tpu.dimension_semantics<parallel>], iteration_bounds = array<i64: 1>, scalar_prefetch = 0 : i64, scratch_operands = 0 : i64, tpu.core_type = #tpu.core_type<tc>, window_params = [{transform_indices = @transform_0, window_bounds = array<i64: 512, 128>}, {pipeline_mode = #tpu.pipeline_mode<synchronous>, transform_indices = @transform_1, window_bounds = array<i64: 128, 128>}, {transform_indices = @transform_2, window_bounds = array<i64: 512, 128>}, {transform_indices = @transform_3, window_bounds = array<i64: 1, 2, 128>}]} {
    %c0 = arith.constant 0 : index
    %c0_0 = arith.constant 0 : index
    %0 = vector.load %arg1[%c0, %c0_0] : memref<512x128xf32, #tpu.memory_space<vmem>>, vector<512x128xf32>
    %c0_1 = arith.constant 0 : index
    %c0_2 = arith.constant 0 : index
    %1 = vector.load %arg2[%c0_1, %c0_2] : memref<128x128xf32, #tpu.memory_space<vmem>>, vector<128x128xf32>
    %cst = arith.constant dense<0.000000e+00> : vector<512x128xf32>
    %2 = tpu.matmul %0, %1, %cst {dimension_numbers = #tpu.dot_dimension_numbers<[1], [0], [0], [1], [0, 0, 1, 1], [], []>} : vector<512x128xf32>, vector<128x128xf32>, vector<512x128xf32> -> vector<512x128xf32>
    %c0_3 = arith.constant 0 : index
    %c0_4 = arith.constant 0 : index
    %3 = vector.load %arg3[%c0_3, %c0_4] : memref<512x128xf32, #tpu.memory_space<vmem>>, vector<512x128xf32>
    tpu.vector_store %arg3[%c0_3, %c0_4], %2 {strides = array<i32>} : memref<512x128xf32, #tpu.memory_space<vmem>>, vector<512x128xf32>,
    %cst_5 = arith.constant dense<0.000000e+00> : vector<128xf32>
    %4 = vector.multi_reduction <add>, %2, %cst_5 [0] : vector<512x128xf32> to vector<128xf32>
    %5 = vector.shape_cast %4 : vector<128xf32> to vector<1x128xf32>
    %6 = arith.mulf %2, %2 : vector<512x128xf32>
    %cst_6 = arith.constant dense<0.000000e+00> : vector<128xf32>
    %7 = vector.multi_reduction <add>, %6, %cst_6 [0] : vector<512x128xf32> to vector<128xf32>
    %8 = vector.shape_cast %7 : vector<128xf32> to vector<1x128xf32>
    %9 = tpu.concatenate %5, %8 in 0 : vector<1x128xf32>, vector<1x128xf32> -> vector<2x128xf32>
    %10 = vector.shape_cast %9 : vector<2x128xf32> to vector<1x2x128xf32>
    %c0_7 = arith.constant 0 : index
    %c0_8 = arith.constant 0 : index
    %c0_9 = arith.constant 0 : index
    %11 = vector.load %arg4[%c0_7, %c0_8, %c0_9] : memref<1x2x128xf32, #tpu.memory_space<vmem>>, vector<1x2x128xf32>
    tpu.vector_store %arg4[%c0_7, %c0_8, %c0_9], %10 {strides = array<i32>} : memref<1x2x128xf32, #tpu.memory_space<vmem>>, vector<1x2x128xf32>,
    return
  }
  func.func @transform_0(%arg0: i32) -> (i32, i32) {
    %c0_i32 = arith.constant 0 : i32
    %c0_i32_0 = arith.constant 0 : i32
    return %arg0, %c0_i32 : i32, i32
  }
  func.func @transform_1(%arg0: i32) -> (i32, i32) {
    %c0_i32 = arith.constant 0 : i32
    %c0_i32_0 = arith.constant 0 : i32
    %c0_i32_1 = arith.constant 0 : i32
    return %c0_i32, %c0_i32_0 : i32, i32
  }
  func.func @transform_2(%arg0: i32) -> (i32, i32) {
    %c0_i32 = arith.constant 0 : i32
    %c0_i32_0 = arith.constant 0 : i32
    return %arg0, %c0_i32 : i32, i32
  }
  func.func @transform_3(%arg0: i32) -> (i32, i32, i32) {
    %c0_i32 = arith.constant 0 : i32
    %c0_i32_0 = arith.constant 0 : i32
    %c0_i32_1 = arith.constant 0 : i32
    return %arg0, %c0_i32, %c0_i32_0 : i32, i32, i32
  }
}

module attributes {stable_mosaic.version = 11 : i64} {
  func.func @_conv3x3_bnrelu_stats_kernel(%arg0: i32, %arg1: i32, %arg2: memref<1x9x9x512xf32, #tpu.memory_space<vmem>>, %arg3: memref<1x128xf32, #tpu.memory_space<vmem>>, %arg4: memref<1x128xf32, #tpu.memory_space<vmem>>, %arg5: memref<3x3x128x128xf32, #tpu.memory_space<vmem>>, %arg6: memref<1x8x8x128xf32, #tpu.memory_space<vmem>>, %arg7: memref<1x1x2x128xf32, #tpu.memory_space<vmem>>) attributes {dimension_semantics = [#tpu.dimension_semantics<parallel>, #tpu.dimension_semantics<arbitrary>], iteration_bounds = array<i64: 2, 1>, scalar_prefetch = 0 : i64, scratch_operands = 0 : i64, tpu.core_type = #tpu.core_type<tc>, window_params = [{transform_indices = @transform_0, window_bounds = array<i64: 1, 9, 9, 512>}, {pipeline_mode = #tpu.pipeline_mode<synchronous>, transform_indices = @transform_1, window_bounds = array<i64: 1, 128>}, {pipeline_mode = #tpu.pipeline_mode<synchronous>, transform_indices = @transform_2, window_bounds = array<i64: 1, 128>}, {pipeline_mode = #tpu.pipeline_mode<synchronous>, transform_indices = @transform_3, window_bounds = array<i64: 3, 3, 128, 128>}, {transform_indices = @transform_4, window_bounds = array<i64: 1, 8, 8, 128>}, {transform_indices = @transform_5, window_bounds = array<i64: 1, 1, 2, 128>}]} {
    %c8_i32 = arith.constant 8 : i32
    %0 = arith.muli %arg1, %c8_i32 : i32
    %c0 = arith.constant 0 : index
    %c0_0 = arith.constant 0 : index
    %1 = vector.load %arg3[%c0, %c0_0] : memref<1x128xf32, #tpu.memory_space<vmem>>, vector<1x128xf32>
    %2 = vector.shape_cast %1 : vector<1x128xf32> to vector<1x1x128xf32>
    %c0_1 = arith.constant 0 : index
    %c0_2 = arith.constant 0 : index
    %3 = vector.load %arg4[%c0_1, %c0_2] : memref<1x128xf32, #tpu.memory_space<vmem>>, vector<1x128xf32>
    %4 = vector.shape_cast %3 : vector<1x128xf32> to vector<1x1x128xf32>
    %5 = tpu.iota {dimensions = array<i32: 0>} : vector<8x8x1xi32>
    %6 = tpu.iota {dimensions = array<i32: 1>} : vector<8x8x1xi32>
    %cst = arith.constant 0.000000e+00 : f32
    %7 = vector.broadcast %cst : f32 to vector<64x128xf32>
    %c0_i32 = arith.constant 0 : i32
    %8 = arith.addi %0, %c0_i32 : i32
    %c0_3 = arith.constant 0 : index
    %9 = arith.index_cast %8 : i32 to index
    %c0_4 = arith.constant 0 : index
    %c0_5 = arith.constant 0 : index
    %10 = vector.load %arg2[%c0_3, %9, %c0_4, %c0_5] : memref<1x9x9x512xf32, #tpu.memory_space<vmem>>, vector<1x8x8x128xf32>
    %11 = vector.shape_cast %10 : vector<1x8x8x128xf32> to vector<8x8x128xf32>
    %12 = vector.broadcast %2 : vector<1x1x128xf32> to vector<8x8x128xf32>
    %13 = arith.mulf %11, %12 : vector<8x8x128xf32>
    %14 = vector.broadcast %4 : vector<1x1x128xf32> to vector<8x8x128xf32>
    %15 = arith.addf %13, %14 : vector<8x8x128xf32>
    %cst_6 = arith.constant 0.000000e+00 : f32
    %16 = vector.broadcast %cst_6 : f32 to vector<8x8x128xf32>
    %17 = arith.maximumf %15, %16 : vector<8x8x128xf32>
    %18 = vector.broadcast %0 : i32 to vector<8x8x1xi32>
    %19 = arith.addi %18, %5 : vector<8x8x1xi32>
    %c2_i32 = arith.constant 2 : i32
    %20 = vector.broadcast %c2_i32 : i32 to vector<8x8x1xi32>
    %21 = arith.muli %19, %20 : vector<8x8x1xi32>
    %c0_i32_7 = arith.constant 0 : i32
    %22 = vector.broadcast %c0_i32_7 : i32 to vector<8x8x1xi32>
    %23 = arith.addi %21, %22 : vector<8x8x1xi32>
    %c2_i32_8 = arith.constant 2 : i32
    %24 = vector.broadcast %c2_i32_8 : i32 to vector<8x8x1xi32>
    %25 = arith.muli %6, %24 : vector<8x8x1xi32>
    %c0_i32_9 = arith.constant 0 : i32
    %26 = vector.broadcast %c0_i32_9 : i32 to vector<8x8x1xi32>
    %27 = arith.addi %25, %26 : vector<8x8x1xi32>
    %c1_i32 = arith.constant 1 : i32
    %28 = vector.broadcast %c1_i32 : i32 to vector<8x8x1xi32>
    %29 = arith.cmpi sge, %23, %28 : vector<8x8x1xi32>
    %c16_i32 = arith.constant 16 : i32
    %30 = vector.broadcast %c16_i32 : i32 to vector<8x8x1xi32>
    %31 = arith.cmpi sle, %23, %30 : vector<8x8x1xi32>
    %32 = arith.andi %29, %31 : vector<8x8x1xi1>
    %c1_i32_10 = arith.constant 1 : i32
    %33 = vector.broadcast %c1_i32_10 : i32 to vector<8x8x1xi32>
    %34 = arith.cmpi sge, %27, %33 : vector<8x8x1xi32>
    %35 = arith.andi %32, %34 : vector<8x8x1xi1>
    %c16_i32_11 = arith.constant 16 : i32
    %36 = vector.broadcast %c16_i32_11 : i32 to vector<8x8x1xi32>
    %37 = arith.cmpi sle, %27, %36 : vector<8x8x1xi32>
    %38 = arith.andi %35, %37 : vector<8x8x1xi1>
    %cst_12 = arith.constant 0.000000e+00 : f32
    %39 = vector.shape_cast %38 : vector<8x8x1xi1> to vector<8x8x1xi1>
    %40 = vector.broadcast %39 : vector<8x8x1xi1> to vector<8x8x128xi1>
    %41 = vector.broadcast %cst_12 : f32 to vector<8x8x128xf32>
    %42 = arith.select %40, %17, %41 : vector<8x8x128xi1>, vector<8x8x128xf32>
    %43 = vector.shape_cast %42 : vector<8x8x128xf32> to vector<64x128xf32>
    %c0_13 = arith.constant 0 : index
    %c0_14 = arith.constant 0 : index
    %c0_15 = arith.constant 0 : index
    %c0_16 = arith.constant 0 : index
    %44 = vector.load %arg5[%c0_13, %c0_14, %c0_15, %c0_16] : memref<3x3x128x128xf32, #tpu.memory_space<vmem>>, vector<1x1x128x128xf32>
    %45 = vector.shape_cast %44 : vector<1x1x128x128xf32> to vector<128x128xf32>
    %cst_17 = arith.constant dense<0.000000e+00> : vector<64x128xf32>
    %46 = tpu.matmul %43, %45, %cst_17 {dimension_numbers = #tpu.dot_dimension_numbers<[1], [0], [0], [1], [0, 0, 1, 1], [], []>} : vector<64x128xf32>, vector<128x128xf32>, vector<64x128xf32> -> vector<64x128xf32>
    %47 = arith.addf %7, %46 : vector<64x128xf32>
    %c0_i32_18 = arith.constant 0 : i32
    %48 = arith.addi %0, %c0_i32_18 : i32
    %c0_19 = arith.constant 0 : index
    %49 = arith.index_cast %48 : i32 to index
    %c0_20 = arith.constant 0 : index
    %c128 = arith.constant 128 : index
    %50 = vector.load %arg2[%c0_19, %49, %c0_20, %c128] : memref<1x9x9x512xf32, #tpu.memory_space<vmem>>, vector<1x8x8x128xf32>
    %51 = vector.shape_cast %50 : vector<1x8x8x128xf32> to vector<8x8x128xf32>
    %52 = vector.broadcast %2 : vector<1x1x128xf32> to vector<8x8x128xf32>
    %53 = arith.mulf %51, %52 : vector<8x8x128xf32>
    %54 = vector.broadcast %4 : vector<1x1x128xf32> to vector<8x8x128xf32>
    %55 = arith.addf %53, %54 : vector<8x8x128xf32>
    %cst_21 = arith.constant 0.000000e+00 : f32
    %56 = vector.broadcast %cst_21 : f32 to vector<8x8x128xf32>
    %57 = arith.maximumf %55, %56 : vector<8x8x128xf32>
    %58 = vector.broadcast %0 : i32 to vector<8x8x1xi32>
    %59 = arith.addi %58, %5 : vector<8x8x1xi32>
    %c2_i32_22 = arith.constant 2 : i32
    %60 = vector.broadcast %c2_i32_22 : i32 to vector<8x8x1xi32>
    %61 = arith.muli %59, %60 : vector<8x8x1xi32>
    %c0_i32_23 = arith.constant 0 : i32
    %62 = vector.broadcast %c0_i32_23 : i32 to vector<8x8x1xi32>
    %63 = arith.addi %61, %62 : vector<8x8x1xi32>
    %c2_i32_24 = arith.constant 2 : i32
    %64 = vector.broadcast %c2_i32_24 : i32 to vector<8x8x1xi32>
    %65 = arith.muli %6, %64 : vector<8x8x1xi32>
    %c1_i32_25 = arith.constant 1 : i32
    %66 = vector.broadcast %c1_i32_25 : i32 to vector<8x8x1xi32>
    %67 = arith.addi %65, %66 : vector<8x8x1xi32>
    %c1_i32_26 = arith.constant 1 : i32
    %68 = vector.broadcast %c1_i32_26 : i32 to vector<8x8x1xi32>
    %69 = arith.cmpi sge, %63, %68 : vector<8x8x1xi32>
    %c16_i32_27 = arith.constant 16 : i32
    %70 = vector.broadcast %c16_i32_27 : i32 to vector<8x8x1xi32>
    %71 = arith.cmpi sle, %63, %70 : vector<8x8x1xi32>
    %72 = arith.andi %69, %71 : vector<8x8x1xi1>
    %c1_i32_28 = arith.constant 1 : i32
    %73 = vector.broadcast %c1_i32_28 : i32 to vector<8x8x1xi32>
    %74 = arith.cmpi sge, %67, %73 : vector<8x8x1xi32>
    %75 = arith.andi %72, %74 : vector<8x8x1xi1>
    %c16_i32_29 = arith.constant 16 : i32
    %76 = vector.broadcast %c16_i32_29 : i32 to vector<8x8x1xi32>
    %77 = arith.cmpi sle, %67, %76 : vector<8x8x1xi32>
    %78 = arith.andi %75, %77 : vector<8x8x1xi1>
    %cst_30 = arith.constant 0.000000e+00 : f32
    %79 = vector.shape_cast %78 : vector<8x8x1xi1> to vector<8x8x1xi1>
    %80 = vector.broadcast %79 : vector<8x8x1xi1> to vector<8x8x128xi1>
    %81 = vector.broadcast %cst_30 : f32 to vector<8x8x128xf32>
    %82 = arith.select %80, %57, %81 : vector<8x8x128xi1>, vector<8x8x128xf32>
    %83 = vector.shape_cast %82 : vector<8x8x128xf32> to vector<64x128xf32>
    %c0_31 = arith.constant 0 : index
    %c1 = arith.constant 1 : index
    %c0_32 = arith.constant 0 : index
    %c0_33 = arith.constant 0 : index
    %84 = vector.load %arg5[%c0_31, %c1, %c0_32, %c0_33] : memref<3x3x128x128xf32, #tpu.memory_space<vmem>>, vector<1x1x128x128xf32>
    %85 = vector.shape_cast %84 : vector<1x1x128x128xf32> to vector<128x128xf32>
    %cst_34 = arith.constant dense<0.000000e+00> : vector<64x128xf32>
    %86 = tpu.matmul %83, %85, %cst_34 {dimension_numbers = #tpu.dot_dimension_numbers<[1], [0], [0], [1], [0, 0, 1, 1], [], []>} : vector<64x128xf32>, vector<128x128xf32>, vector<64x128xf32> -> vector<64x128xf32>
    %87 = arith.addf %47, %86 : vector<64x128xf32>
    %c0_i32_35 = arith.constant 0 : i32
    %88 = arith.addi %0, %c0_i32_35 : i32
    %c0_36 = arith.constant 0 : index
    %89 = arith.index_cast %88 : i32 to index
    %c1_37 = arith.constant 1 : index
    %c0_38 = arith.constant 0 : index
    %90 = vector.load %arg2[%c0_36, %89, %c1_37, %c0_38] : memref<1x9x9x512xf32, #tpu.memory_space<vmem>>, vector<1x8x8x128xf32>
    %91 = vector.shape_cast %90 : vector<1x8x8x128xf32> to vector<8x8x128xf32>
    %92 = vector.broadcast %2 : vector<1x1x128xf32> to vector<8x8x128xf32>
    %93 = arith.mulf %91, %92 : vector<8x8x128xf32>
    %94 = vector.broadcast %4 : vector<1x1x128xf32> to vector<8x8x128xf32>
    %95 = arith.addf %93, %94 : vector<8x8x128xf32>
    %cst_39 = arith.constant 0.000000e+00 : f32
    %96 = vector.broadcast %cst_39 : f32 to vector<8x8x128xf32>
    %97 = arith.maximumf %95, %96 : vector<8x8x128xf32>
    %98 = vector.broadcast %0 : i32 to vector<8x8x1xi32>
    %99 = arith.addi %98, %5 : vector<8x8x1xi32>
    %c2_i32_40 = arith.constant 2 : i32
    %100 = vector.broadcast %c2_i32_40 : i32 to vector<8x8x1xi32>
    %101 = arith.muli %99, %100 : vector<8x8x1xi32>
    %c0_i32_41 = arith.constant 0 : i32
    %102 = vector.broadcast %c0_i32_41 : i32 to vector<8x8x1xi32>
    %103 = arith.addi %101, %102 : vector<8x8x1xi32>
    %c2_i32_42 = arith.constant 2 : i32
    %104 = vector.broadcast %c2_i32_42 : i32 to vector<8x8x1xi32>
    %105 = arith.muli %6, %104 : vector<8x8x1xi32>
    %c2_i32_43 = arith.constant 2 : i32
    %106 = vector.broadcast %c2_i32_43 : i32 to vector<8x8x1xi32>
    %107 = arith.addi %105, %106 : vector<8x8x1xi32>
    %c1_i32_44 = arith.constant 1 : i32
    %108 = vector.broadcast %c1_i32_44 : i32 to vector<8x8x1xi32>
    %109 = arith.cmpi sge, %103, %108 : vector<8x8x1xi32>
    %c16_i32_45 = arith.constant 16 : i32
    %110 = vector.broadcast %c16_i32_45 : i32 to vector<8x8x1xi32>
    %111 = arith.cmpi sle, %103, %110 : vector<8x8x1xi32>
    %112 = arith.andi %109, %111 : vector<8x8x1xi1>
    %c1_i32_46 = arith.constant 1 : i32
    %113 = vector.broadcast %c1_i32_46 : i32 to vector<8x8x1xi32>
    %114 = arith.cmpi sge, %107, %113 : vector<8x8x1xi32>
    %115 = arith.andi %112, %114 : vector<8x8x1xi1>
    %c16_i32_47 = arith.constant 16 : i32
    %116 = vector.broadcast %c16_i32_47 : i32 to vector<8x8x1xi32>
    %117 = arith.cmpi sle, %107, %116 : vector<8x8x1xi32>
    %118 = arith.andi %115, %117 : vector<8x8x1xi1>
    %cst_48 = arith.constant 0.000000e+00 : f32
    %119 = vector.shape_cast %118 : vector<8x8x1xi1> to vector<8x8x1xi1>
    %120 = vector.broadcast %119 : vector<8x8x1xi1> to vector<8x8x128xi1>
    %121 = vector.broadcast %cst_48 : f32 to vector<8x8x128xf32>
    %122 = arith.select %120, %97, %121 : vector<8x8x128xi1>, vector<8x8x128xf32>
    %123 = vector.shape_cast %122 : vector<8x8x128xf32> to vector<64x128xf32>
    %c0_49 = arith.constant 0 : index
    %c2 = arith.constant 2 : index
    %c0_50 = arith.constant 0 : index
    %c0_51 = arith.constant 0 : index
    %124 = vector.load %arg5[%c0_49, %c2, %c0_50, %c0_51] : memref<3x3x128x128xf32, #tpu.memory_space<vmem>>, vector<1x1x128x128xf32>
    %125 = vector.shape_cast %124 : vector<1x1x128x128xf32> to vector<128x128xf32>
    %cst_52 = arith.constant dense<0.000000e+00> : vector<64x128xf32>
    %126 = tpu.matmul %123, %125, %cst_52 {dimension_numbers = #tpu.dot_dimension_numbers<[1], [0], [0], [1], [0, 0, 1, 1], [], []>} : vector<64x128xf32>, vector<128x128xf32>, vector<64x128xf32> -> vector<64x128xf32>
    %127 = arith.addf %87, %126 : vector<64x128xf32>
    %c0_i32_53 = arith.constant 0 : i32
    %128 = arith.addi %0, %c0_i32_53 : i32
    %c0_54 = arith.constant 0 : index
    %129 = arith.index_cast %128 : i32 to index
    %c0_55 = arith.constant 0 : index
    %c256 = arith.constant 256 : index
    %130 = vector.load %arg2[%c0_54, %129, %c0_55, %c256] : memref<1x9x9x512xf32, #tpu.memory_space<vmem>>, vector<1x8x8x128xf32>
    %131 = vector.shape_cast %130 : vector<1x8x8x128xf32> to vector<8x8x128xf32>
    %132 = vector.broadcast %2 : vector<1x1x128xf32> to vector<8x8x128xf32>
    %133 = arith.mulf %131, %132 : vector<8x8x128xf32>
    %134 = vector.broadcast %4 : vector<1x1x128xf32> to vector<8x8x128xf32>
    %135 = arith.addf %133, %134 : vector<8x8x128xf32>
    %cst_56 = arith.constant 0.000000e+00 : f32
    %136 = vector.broadcast %cst_56 : f32 to vector<8x8x128xf32>
    %137 = arith.maximumf %135, %136 : vector<8x8x128xf32>
    %138 = vector.broadcast %0 : i32 to vector<8x8x1xi32>
    %139 = arith.addi %138, %5 : vector<8x8x1xi32>
    %c2_i32_57 = arith.constant 2 : i32
    %140 = vector.broadcast %c2_i32_57 : i32 to vector<8x8x1xi32>
    %141 = arith.muli %139, %140 : vector<8x8x1xi32>
    %c1_i32_58 = arith.constant 1 : i32
    %142 = vector.broadcast %c1_i32_58 : i32 to vector<8x8x1xi32>
    %143 = arith.addi %141, %142 : vector<8x8x1xi32>
    %c2_i32_59 = arith.constant 2 : i32
    %144 = vector.broadcast %c2_i32_59 : i32 to vector<8x8x1xi32>
    %145 = arith.muli %6, %144 : vector<8x8x1xi32>
    %c0_i32_60 = arith.constant 0 : i32
    %146 = vector.broadcast %c0_i32_60 : i32 to vector<8x8x1xi32>
    %147 = arith.addi %145, %146 : vector<8x8x1xi32>
    %c1_i32_61 = arith.constant 1 : i32
    %148 = vector.broadcast %c1_i32_61 : i32 to vector<8x8x1xi32>
    %149 = arith.cmpi sge, %143, %148 : vector<8x8x1xi32>
    %c16_i32_62 = arith.constant 16 : i32
    %150 = vector.broadcast %c16_i32_62 : i32 to vector<8x8x1xi32>
    %151 = arith.cmpi sle, %143, %150 : vector<8x8x1xi32>
    %152 = arith.andi %149, %151 : vector<8x8x1xi1>
    %c1_i32_63 = arith.constant 1 : i32
    %153 = vector.broadcast %c1_i32_63 : i32 to vector<8x8x1xi32>
    %154 = arith.cmpi sge, %147, %153 : vector<8x8x1xi32>
    %155 = arith.andi %152, %154 : vector<8x8x1xi1>
    %c16_i32_64 = arith.constant 16 : i32
    %156 = vector.broadcast %c16_i32_64 : i32 to vector<8x8x1xi32>
    %157 = arith.cmpi sle, %147, %156 : vector<8x8x1xi32>
    %158 = arith.andi %155, %157 : vector<8x8x1xi1>
    %cst_65 = arith.constant 0.000000e+00 : f32
    %159 = vector.shape_cast %158 : vector<8x8x1xi1> to vector<8x8x1xi1>
    %160 = vector.broadcast %159 : vector<8x8x1xi1> to vector<8x8x128xi1>
    %161 = vector.broadcast %cst_65 : f32 to vector<8x8x128xf32>
    %162 = arith.select %160, %137, %161 : vector<8x8x128xi1>, vector<8x8x128xf32>
    %163 = vector.shape_cast %162 : vector<8x8x128xf32> to vector<64x128xf32>
    %c1_66 = arith.constant 1 : index
    %c0_67 = arith.constant 0 : index
    %c0_68 = arith.constant 0 : index
    %c0_69 = arith.constant 0 : index
    %164 = vector.load %arg5[%c1_66, %c0_67, %c0_68, %c0_69] : memref<3x3x128x128xf32, #tpu.memory_space<vmem>>, vector<1x1x128x128xf32>
    %165 = vector.shape_cast %164 : vector<1x1x128x128xf32> to vector<128x128xf32>
    %cst_70 = arith.constant dense<0.000000e+00> : vector<64x128xf32>
    %166 = tpu.matmul %163, %165, %cst_70 {dimension_numbers = #tpu.dot_dimension_numbers<[1], [0], [0], [1], [0, 0, 1, 1], [], []>} : vector<64x128xf32>, vector<128x128xf32>, vector<64x128xf32> -> vector<64x128xf32>
    %167 = arith.addf %127, %166 : vector<64x128xf32>
    %c0_i32_71 = arith.constant 0 : i32
    %168 = arith.addi %0, %c0_i32_71 : i32
    %c0_72 = arith.constant 0 : index
    %169 = arith.index_cast %168 : i32 to index
    %c0_73 = arith.constant 0 : index
    %c384 = arith.constant 384 : index
    %170 = vector.load %arg2[%c0_72, %169, %c0_73, %c384] : memref<1x9x9x512xf32, #tpu.memory_space<vmem>>, vector<1x8x8x128xf32>
    %171 = vector.shape_cast %170 : vector<1x8x8x128xf32> to vector<8x8x128xf32>
    %172 = vector.broadcast %2 : vector<1x1x128xf32> to vector<8x8x128xf32>
    %173 = arith.mulf %171, %172 : vector<8x8x128xf32>
    %174 = vector.broadcast %4 : vector<1x1x128xf32> to vector<8x8x128xf32>
    %175 = arith.addf %173, %174 : vector<8x8x128xf32>
    %cst_74 = arith.constant 0.000000e+00 : f32
    %176 = vector.broadcast %cst_74 : f32 to vector<8x8x128xf32>
    %177 = arith.maximumf %175, %176 : vector<8x8x128xf32>
    %178 = vector.broadcast %0 : i32 to vector<8x8x1xi32>
    %179 = arith.addi %178, %5 : vector<8x8x1xi32>
    %c2_i32_75 = arith.constant 2 : i32
    %180 = vector.broadcast %c2_i32_75 : i32 to vector<8x8x1xi32>
    %181 = arith.muli %179, %180 : vector<8x8x1xi32>
    %c1_i32_76 = arith.constant 1 : i32
    %182 = vector.broadcast %c1_i32_76 : i32 to vector<8x8x1xi32>
    %183 = arith.addi %181, %182 : vector<8x8x1xi32>
    %c2_i32_77 = arith.constant 2 : i32
    %184 = vector.broadcast %c2_i32_77 : i32 to vector<8x8x1xi32>
    %185 = arith.muli %6, %184 : vector<8x8x1xi32>
    %c1_i32_78 = arith.constant 1 : i32
    %186 = vector.broadcast %c1_i32_78 : i32 to vector<8x8x1xi32>
    %187 = arith.addi %185, %186 : vector<8x8x1xi32>
    %c1_i32_79 = arith.constant 1 : i32
    %188 = vector.broadcast %c1_i32_79 : i32 to vector<8x8x1xi32>
    %189 = arith.cmpi sge, %183, %188 : vector<8x8x1xi32>
    %c16_i32_80 = arith.constant 16 : i32
    %190 = vector.broadcast %c16_i32_80 : i32 to vector<8x8x1xi32>
    %191 = arith.cmpi sle, %183, %190 : vector<8x8x1xi32>
    %192 = arith.andi %189, %191 : vector<8x8x1xi1>
    %c1_i32_81 = arith.constant 1 : i32
    %193 = vector.broadcast %c1_i32_81 : i32 to vector<8x8x1xi32>
    %194 = arith.cmpi sge, %187, %193 : vector<8x8x1xi32>
    %195 = arith.andi %192, %194 : vector<8x8x1xi1>
    %c16_i32_82 = arith.constant 16 : i32
    %196 = vector.broadcast %c16_i32_82 : i32 to vector<8x8x1xi32>
    %197 = arith.cmpi sle, %187, %196 : vector<8x8x1xi32>
    %198 = arith.andi %195, %197 : vector<8x8x1xi1>
    %cst_83 = arith.constant 0.000000e+00 : f32
    %199 = vector.shape_cast %198 : vector<8x8x1xi1> to vector<8x8x1xi1>
    %200 = vector.broadcast %199 : vector<8x8x1xi1> to vector<8x8x128xi1>
    %201 = vector.broadcast %cst_83 : f32 to vector<8x8x128xf32>
    %202 = arith.select %200, %177, %201 : vector<8x8x128xi1>, vector<8x8x128xf32>
    %203 = vector.shape_cast %202 : vector<8x8x128xf32> to vector<64x128xf32>
    %c1_84 = arith.constant 1 : index
    %c1_85 = arith.constant 1 : index
    %c0_86 = arith.constant 0 : index
    %c0_87 = arith.constant 0 : index
    %204 = vector.load %arg5[%c1_84, %c1_85, %c0_86, %c0_87] : memref<3x3x128x128xf32, #tpu.memory_space<vmem>>, vector<1x1x128x128xf32>
    %205 = vector.shape_cast %204 : vector<1x1x128x128xf32> to vector<128x128xf32>
    %cst_88 = arith.constant dense<0.000000e+00> : vector<64x128xf32>
    %206 = tpu.matmul %203, %205, %cst_88 {dimension_numbers = #tpu.dot_dimension_numbers<[1], [0], [0], [1], [0, 0, 1, 1], [], []>} : vector<64x128xf32>, vector<128x128xf32>, vector<64x128xf32> -> vector<64x128xf32>
    %207 = arith.addf %167, %206 : vector<64x128xf32>
    %c0_i32_89 = arith.constant 0 : i32
    %208 = arith.addi %0, %c0_i32_89 : i32
    %c0_90 = arith.constant 0 : index
    %209 = arith.index_cast %208 : i32 to index
    %c1_91 = arith.constant 1 : index
    %c256_92 = arith.constant 256 : index
    %210 = vector.load %arg2[%c0_90, %209, %c1_91, %c256_92] : memref<1x9x9x512xf32, #tpu.memory_space<vmem>>, vector<1x8x8x128xf32>
    %211 = vector.shape_cast %210 : vector<1x8x8x128xf32> to vector<8x8x128xf32>
    %212 = vector.broadcast %2 : vector<1x1x128xf32> to vector<8x8x128xf32>
    %213 = arith.mulf %211, %212 : vector<8x8x128xf32>
    %214 = vector.broadcast %4 : vector<1x1x128xf32> to vector<8x8x128xf32>
    %215 = arith.addf %213, %214 : vector<8x8x128xf32>
    %cst_93 = arith.constant 0.000000e+00 : f32
    %216 = vector.broadcast %cst_93 : f32 to vector<8x8x128xf32>
    %217 = arith.maximumf %215, %216 : vector<8x8x128xf32>
    %218 = vector.broadcast %0 : i32 to vector<8x8x1xi32>
    %219 = arith.addi %218, %5 : vector<8x8x1xi32>
    %c2_i32_94 = arith.constant 2 : i32
    %220 = vector.broadcast %c2_i32_94 : i32 to vector<8x8x1xi32>
    %221 = arith.muli %219, %220 : vector<8x8x1xi32>
    %c1_i32_95 = arith.constant 1 : i32
    %222 = vector.broadcast %c1_i32_95 : i32 to vector<8x8x1xi32>
    %223 = arith.addi %221, %222 : vector<8x8x1xi32>
    %c2_i32_96 = arith.constant 2 : i32
    %224 = vector.broadcast %c2_i32_96 : i32 to vector<8x8x1xi32>
    %225 = arith.muli %6, %224 : vector<8x8x1xi32>
    %c2_i32_97 = arith.constant 2 : i32
    %226 = vector.broadcast %c2_i32_97 : i32 to vector<8x8x1xi32>
    %227 = arith.addi %225, %226 : vector<8x8x1xi32>
    %c1_i32_98 = arith.constant 1 : i32
    %228 = vector.broadcast %c1_i32_98 : i32 to vector<8x8x1xi32>
    %229 = arith.cmpi sge, %223, %228 : vector<8x8x1xi32>
    %c16_i32_99 = arith.constant 16 : i32
    %230 = vector.broadcast %c16_i32_99 : i32 to vector<8x8x1xi32>
    %231 = arith.cmpi sle, %223, %230 : vector<8x8x1xi32>
    %232 = arith.andi %229, %231 : vector<8x8x1xi1>
    %c1_i32_100 = arith.constant 1 : i32
    %233 = vector.broadcast %c1_i32_100 : i32 to vector<8x8x1xi32>
    %234 = arith.cmpi sge, %227, %233 : vector<8x8x1xi32>
    %235 = arith.andi %232, %234 : vector<8x8x1xi1>
    %c16_i32_101 = arith.constant 16 : i32
    %236 = vector.broadcast %c16_i32_101 : i32 to vector<8x8x1xi32>
    %237 = arith.cmpi sle, %227, %236 : vector<8x8x1xi32>
    %238 = arith.andi %235, %237 : vector<8x8x1xi1>
    %cst_102 = arith.constant 0.000000e+00 : f32
    %239 = vector.shape_cast %238 : vector<8x8x1xi1> to vector<8x8x1xi1>
    %240 = vector.broadcast %239 : vector<8x8x1xi1> to vector<8x8x128xi1>
    %241 = vector.broadcast %cst_102 : f32 to vector<8x8x128xf32>
    %242 = arith.select %240, %217, %241 : vector<8x8x128xi1>, vector<8x8x128xf32>
    %243 = vector.shape_cast %242 : vector<8x8x128xf32> to vector<64x128xf32>
    %c1_103 = arith.constant 1 : index
    %c2_104 = arith.constant 2 : index
    %c0_105 = arith.constant 0 : index
    %c0_106 = arith.constant 0 : index
    %244 = vector.load %arg5[%c1_103, %c2_104, %c0_105, %c0_106] : memref<3x3x128x128xf32, #tpu.memory_space<vmem>>, vector<1x1x128x128xf32>
    %245 = vector.shape_cast %244 : vector<1x1x128x128xf32> to vector<128x128xf32>
    %cst_107 = arith.constant dense<0.000000e+00> : vector<64x128xf32>
    %246 = tpu.matmul %243, %245, %cst_107 {dimension_numbers = #tpu.dot_dimension_numbers<[1], [0], [0], [1], [0, 0, 1, 1], [], []>} : vector<64x128xf32>, vector<128x128xf32>, vector<64x128xf32> -> vector<64x128xf32>
    %247 = arith.addf %207, %246 : vector<64x128xf32>
    %c1_i32_108 = arith.constant 1 : i32
    %248 = arith.addi %0, %c1_i32_108 : i32
    %c0_109 = arith.constant 0 : index
    %249 = arith.index_cast %248 : i32 to index
    %c0_110 = arith.constant 0 : index
    %c0_111 = arith.constant 0 : index
    %250 = vector.load %arg2[%c0_109, %249, %c0_110, %c0_111] : memref<1x9x9x512xf32, #tpu.memory_space<vmem>>, vector<1x8x8x128xf32>
    %251 = vector.shape_cast %250 : vector<1x8x8x128xf32> to vector<8x8x128xf32>
    %252 = vector.broadcast %2 : vector<1x1x128xf32> to vector<8x8x128xf32>
    %253 = arith.mulf %251, %252 : vector<8x8x128xf32>
    %254 = vector.broadcast %4 : vector<1x1x128xf32> to vector<8x8x128xf32>
    %255 = arith.addf %253, %254 : vector<8x8x128xf32>
    %cst_112 = arith.constant 0.000000e+00 : f32
    %256 = vector.broadcast %cst_112 : f32 to vector<8x8x128xf32>
    %257 = arith.maximumf %255, %256 : vector<8x8x128xf32>
    %258 = vector.broadcast %0 : i32 to vector<8x8x1xi32>
    %259 = arith.addi %258, %5 : vector<8x8x1xi32>
    %c2_i32_113 = arith.constant 2 : i32
    %260 = vector.broadcast %c2_i32_113 : i32 to vector<8x8x1xi32>
    %261 = arith.muli %259, %260 : vector<8x8x1xi32>
    %c2_i32_114 = arith.constant 2 : i32
    %262 = vector.broadcast %c2_i32_114 : i32 to vector<8x8x1xi32>
    %263 = arith.addi %261, %262 : vector<8x8x1xi32>
    %c2_i32_115 = arith.constant 2 : i32
    %264 = vector.broadcast %c2_i32_115 : i32 to vector<8x8x1xi32>
    %265 = arith.muli %6, %264 : vector<8x8x1xi32>
    %c0_i32_116 = arith.constant 0 : i32
    %266 = vector.broadcast %c0_i32_116 : i32 to vector<8x8x1xi32>
    %267 = arith.addi %265, %266 : vector<8x8x1xi32>
    %c1_i32_117 = arith.constant 1 : i32
    %268 = vector.broadcast %c1_i32_117 : i32 to vector<8x8x1xi32>
    %269 = arith.cmpi sge, %263, %268 : vector<8x8x1xi32>
    %c16_i32_118 = arith.constant 16 : i32
    %270 = vector.broadcast %c16_i32_118 : i32 to vector<8x8x1xi32>
    %271 = arith.cmpi sle, %263, %270 : vector<8x8x1xi32>
    %272 = arith.andi %269, %271 : vector<8x8x1xi1>
    %c1_i32_119 = arith.constant 1 : i32
    %273 = vector.broadcast %c1_i32_119 : i32 to vector<8x8x1xi32>
    %274 = arith.cmpi sge, %267, %273 : vector<8x8x1xi32>
    %275 = arith.andi %272, %274 : vector<8x8x1xi1>
    %c16_i32_120 = arith.constant 16 : i32
    %276 = vector.broadcast %c16_i32_120 : i32 to vector<8x8x1xi32>
    %277 = arith.cmpi sle, %267, %276 : vector<8x8x1xi32>
    %278 = arith.andi %275, %277 : vector<8x8x1xi1>
    %cst_121 = arith.constant 0.000000e+00 : f32
    %279 = vector.shape_cast %278 : vector<8x8x1xi1> to vector<8x8x1xi1>
    %280 = vector.broadcast %279 : vector<8x8x1xi1> to vector<8x8x128xi1>
    %281 = vector.broadcast %cst_121 : f32 to vector<8x8x128xf32>
    %282 = arith.select %280, %257, %281 : vector<8x8x128xi1>, vector<8x8x128xf32>
    %283 = vector.shape_cast %282 : vector<8x8x128xf32> to vector<64x128xf32>
    %c2_122 = arith.constant 2 : index
    %c0_123 = arith.constant 0 : index
    %c0_124 = arith.constant 0 : index
    %c0_125 = arith.constant 0 : index
    %284 = vector.load %arg5[%c2_122, %c0_123, %c0_124, %c0_125] : memref<3x3x128x128xf32, #tpu.memory_space<vmem>>, vector<1x1x128x128xf32>
    %285 = vector.shape_cast %284 : vector<1x1x128x128xf32> to vector<128x128xf32>
    %cst_126 = arith.constant dense<0.000000e+00> : vector<64x128xf32>
    %286 = tpu.matmul %283, %285, %cst_126 {dimension_numbers = #tpu.dot_dimension_numbers<[1], [0], [0], [1], [0, 0, 1, 1], [], []>} : vector<64x128xf32>, vector<128x128xf32>, vector<64x128xf32> -> vector<64x128xf32>
    %287 = arith.addf %247, %286 : vector<64x128xf32>
    %c1_i32_127 = arith.constant 1 : i32
    %288 = arith.addi %0, %c1_i32_127 : i32
    %c0_128 = arith.constant 0 : index
    %289 = arith.index_cast %288 : i32 to index
    %c0_129 = arith.constant 0 : index
    %c128_130 = arith.constant 128 : index
    %290 = vector.load %arg2[%c0_128, %289, %c0_129, %c128_130] : memref<1x9x9x512xf32, #tpu.memory_space<vmem>>, vector<1x8x8x128xf32>
    %291 = vector.shape_cast %290 : vector<1x8x8x128xf32> to vector<8x8x128xf32>
    %292 = vector.broadcast %2 : vector<1x1x128xf32> to vector<8x8x128xf32>
    %293 = arith.mulf %291, %292 : vector<8x8x128xf32>
    %294 = vector.broadcast %4 : vector<1x1x128xf32> to vector<8x8x128xf32>
    %295 = arith.addf %293, %294 : vector<8x8x128xf32>
    %cst_131 = arith.constant 0.000000e+00 : f32
    %296 = vector.broadcast %cst_131 : f32 to vector<8x8x128xf32>
    %297 = arith.maximumf %295, %296 : vector<8x8x128xf32>
    %298 = vector.broadcast %0 : i32 to vector<8x8x1xi32>
    %299 = arith.addi %298, %5 : vector<8x8x1xi32>
    %c2_i32_132 = arith.constant 2 : i32
    %300 = vector.broadcast %c2_i32_132 : i32 to vector<8x8x1xi32>
    %301 = arith.muli %299, %300 : vector<8x8x1xi32>
    %c2_i32_133 = arith.constant 2 : i32
    %302 = vector.broadcast %c2_i32_133 : i32 to vector<8x8x1xi32>
    %303 = arith.addi %301, %302 : vector<8x8x1xi32>
    %c2_i32_134 = arith.constant 2 : i32
    %304 = vector.broadcast %c2_i32_134 : i32 to vector<8x8x1xi32>
    %305 = arith.muli %6, %304 : vector<8x8x1xi32>
    %c1_i32_135 = arith.constant 1 : i32
    %306 = vector.broadcast %c1_i32_135 : i32 to vector<8x8x1xi32>
    %307 = arith.addi %305, %306 : vector<8x8x1xi32>
    %c1_i32_136 = arith.constant 1 : i32
    %308 = vector.broadcast %c1_i32_136 : i32 to vector<8x8x1xi32>
    %309 = arith.cmpi sge, %303, %308 : vector<8x8x1xi32>
    %c16_i32_137 = arith.constant 16 : i32
    %310 = vector.broadcast %c16_i32_137 : i32 to vector<8x8x1xi32>
    %311 = arith.cmpi sle, %303, %310 : vector<8x8x1xi32>
    %312 = arith.andi %309, %311 : vector<8x8x1xi1>
    %c1_i32_138 = arith.constant 1 : i32
    %313 = vector.broadcast %c1_i32_138 : i32 to vector<8x8x1xi32>
    %314 = arith.cmpi sge, %307, %313 : vector<8x8x1xi32>
    %315 = arith.andi %312, %314 : vector<8x8x1xi1>
    %c16_i32_139 = arith.constant 16 : i32
    %316 = vector.broadcast %c16_i32_139 : i32 to vector<8x8x1xi32>
    %317 = arith.cmpi sle, %307, %316 : vector<8x8x1xi32>
    %318 = arith.andi %315, %317 : vector<8x8x1xi1>
    %cst_140 = arith.constant 0.000000e+00 : f32
    %319 = vector.shape_cast %318 : vector<8x8x1xi1> to vector<8x8x1xi1>
    %320 = vector.broadcast %319 : vector<8x8x1xi1> to vector<8x8x128xi1>
    %321 = vector.broadcast %cst_140 : f32 to vector<8x8x128xf32>
    %322 = arith.select %320, %297, %321 : vector<8x8x128xi1>, vector<8x8x128xf32>
    %323 = vector.shape_cast %322 : vector<8x8x128xf32> to vector<64x128xf32>
    %c2_141 = arith.constant 2 : index
    %c1_142 = arith.constant 1 : index
    %c0_143 = arith.constant 0 : index
    %c0_144 = arith.constant 0 : index
    %324 = vector.load %arg5[%c2_141, %c1_142, %c0_143, %c0_144] : memref<3x3x128x128xf32, #tpu.memory_space<vmem>>, vector<1x1x128x128xf32>
    %325 = vector.shape_cast %324 : vector<1x1x128x128xf32> to vector<128x128xf32>
    %cst_145 = arith.constant dense<0.000000e+00> : vector<64x128xf32>
    %326 = tpu.matmul %323, %325, %cst_145 {dimension_numbers = #tpu.dot_dimension_numbers<[1], [0], [0], [1], [0, 0, 1, 1], [], []>} : vector<64x128xf32>, vector<128x128xf32>, vector<64x128xf32> -> vector<64x128xf32>
    %327 = arith.addf %287, %326 : vector<64x128xf32>
    %c1_i32_146 = arith.constant 1 : i32
    %328 = arith.addi %0, %c1_i32_146 : i32
    %c0_147 = arith.constant 0 : index
    %329 = arith.index_cast %328 : i32 to index
    %c1_148 = arith.constant 1 : index
    %c0_149 = arith.constant 0 : index
    %330 = vector.load %arg2[%c0_147, %329, %c1_148, %c0_149] : memref<1x9x9x512xf32, #tpu.memory_space<vmem>>, vector<1x8x8x128xf32>
    %331 = vector.shape_cast %330 : vector<1x8x8x128xf32> to vector<8x8x128xf32>
    %332 = vector.broadcast %2 : vector<1x1x128xf32> to vector<8x8x128xf32>
    %333 = arith.mulf %331, %332 : vector<8x8x128xf32>
    %334 = vector.broadcast %4 : vector<1x1x128xf32> to vector<8x8x128xf32>
    %335 = arith.addf %333, %334 : vector<8x8x128xf32>
    %cst_150 = arith.constant 0.000000e+00 : f32
    %336 = vector.broadcast %cst_150 : f32 to vector<8x8x128xf32>
    %337 = arith.maximumf %335, %336 : vector<8x8x128xf32>
    %338 = vector.broadcast %0 : i32 to vector<8x8x1xi32>
    %339 = arith.addi %338, %5 : vector<8x8x1xi32>
    %c2_i32_151 = arith.constant 2 : i32
    %340 = vector.broadcast %c2_i32_151 : i32 to vector<8x8x1xi32>
    %341 = arith.muli %339, %340 : vector<8x8x1xi32>
    %c2_i32_152 = arith.constant 2 : i32
    %342 = vector.broadcast %c2_i32_152 : i32 to vector<8x8x1xi32>
    %343 = arith.addi %341, %342 : vector<8x8x1xi32>
    %c2_i32_153 = arith.constant 2 : i32
    %344 = vector.broadcast %c2_i32_153 : i32 to vector<8x8x1xi32>
    %345 = arith.muli %6, %344 : vector<8x8x1xi32>
    %c2_i32_154 = arith.constant 2 : i32
    %346 = vector.broadcast %c2_i32_154 : i32 to vector<8x8x1xi32>
    %347 = arith.addi %345, %346 : vector<8x8x1xi32>
    %c1_i32_155 = arith.constant 1 : i32
    %348 = vector.broadcast %c1_i32_155 : i32 to vector<8x8x1xi32>
    %349 = arith.cmpi sge, %343, %348 : vector<8x8x1xi32>
    %c16_i32_156 = arith.constant 16 : i32
    %350 = vector.broadcast %c16_i32_156 : i32 to vector<8x8x1xi32>
    %351 = arith.cmpi sle, %343, %350 : vector<8x8x1xi32>
    %352 = arith.andi %349, %351 : vector<8x8x1xi1>
    %c1_i32_157 = arith.constant 1 : i32
    %353 = vector.broadcast %c1_i32_157 : i32 to vector<8x8x1xi32>
    %354 = arith.cmpi sge, %347, %353 : vector<8x8x1xi32>
    %355 = arith.andi %352, %354 : vector<8x8x1xi1>
    %c16_i32_158 = arith.constant 16 : i32
    %356 = vector.broadcast %c16_i32_158 : i32 to vector<8x8x1xi32>
    %357 = arith.cmpi sle, %347, %356 : vector<8x8x1xi32>
    %358 = arith.andi %355, %357 : vector<8x8x1xi1>
    %cst_159 = arith.constant 0.000000e+00 : f32
    %359 = vector.shape_cast %358 : vector<8x8x1xi1> to vector<8x8x1xi1>
    %360 = vector.broadcast %359 : vector<8x8x1xi1> to vector<8x8x128xi1>
    %361 = vector.broadcast %cst_159 : f32 to vector<8x8x128xf32>
    %362 = arith.select %360, %337, %361 : vector<8x8x128xi1>, vector<8x8x128xf32>
    %363 = vector.shape_cast %362 : vector<8x8x128xf32> to vector<64x128xf32>
    %c2_160 = arith.constant 2 : index
    %c2_161 = arith.constant 2 : index
    %c0_162 = arith.constant 0 : index
    %c0_163 = arith.constant 0 : index
    %364 = vector.load %arg5[%c2_160, %c2_161, %c0_162, %c0_163] : memref<3x3x128x128xf32, #tpu.memory_space<vmem>>, vector<1x1x128x128xf32>
    %365 = vector.shape_cast %364 : vector<1x1x128x128xf32> to vector<128x128xf32>
    %cst_164 = arith.constant dense<0.000000e+00> : vector<64x128xf32>
    %366 = tpu.matmul %363, %365, %cst_164 {dimension_numbers = #tpu.dot_dimension_numbers<[1], [0], [0], [1], [0, 0, 1, 1], [], []>} : vector<64x128xf32>, vector<128x128xf32>, vector<64x128xf32> -> vector<64x128xf32>
    %367 = arith.addf %327, %366 : vector<64x128xf32>
    %368 = vector.shape_cast %367 : vector<64x128xf32> to vector<1x8x8x128xf32>
    %c0_165 = arith.constant 0 : index
    %c0_166 = arith.constant 0 : index
    %c0_167 = arith.constant 0 : index
    %c0_168 = arith.constant 0 : index
    %369 = vector.load %arg6[%c0_165, %c0_166, %c0_167, %c0_168] : memref<1x8x8x128xf32, #tpu.memory_space<vmem>>, vector<1x8x8x128xf32>
    tpu.vector_store %arg6[%c0_165, %c0_166, %c0_167, %c0_168], %368 {strides = array<i32>} : memref<1x8x8x128xf32, #tpu.memory_space<vmem>>, vector<1x8x8x128xf32>,
    %cst_169 = arith.constant dense<0.000000e+00> : vector<128xf32>
    %370 = vector.multi_reduction <add>, %367, %cst_169 [0] : vector<64x128xf32> to vector<128xf32>
    %371 = vector.shape_cast %370 : vector<128xf32> to vector<1x128xf32>
    %372 = arith.mulf %367, %367 : vector<64x128xf32>
    %cst_170 = arith.constant dense<0.000000e+00> : vector<128xf32>
    %373 = vector.multi_reduction <add>, %372, %cst_170 [0] : vector<64x128xf32> to vector<128xf32>
    %374 = vector.shape_cast %373 : vector<128xf32> to vector<1x128xf32>
    %375 = tpu.concatenate %371, %374 in 0 : vector<1x128xf32>, vector<1x128xf32> -> vector<2x128xf32>
    %376 = vector.shape_cast %375 : vector<2x128xf32> to vector<1x1x2x128xf32>
    %c0_171 = arith.constant 0 : index
    %c0_172 = arith.constant 0 : index
    %c0_173 = arith.constant 0 : index
    %c0_174 = arith.constant 0 : index
    %377 = vector.load %arg7[%c0_171, %c0_172, %c0_173, %c0_174] : memref<1x1x2x128xf32, #tpu.memory_space<vmem>>, vector<1x1x2x128xf32>
    tpu.vector_store %arg7[%c0_171, %c0_172, %c0_173, %c0_174], %376 {strides = array<i32>} : memref<1x1x2x128xf32, #tpu.memory_space<vmem>>, vector<1x1x2x128xf32>,
    return
  }
  func.func @transform_0(%arg0: i32, %arg1: i32) -> (i32, i32, i32, i32) {
    %c0_i32 = arith.constant 0 : i32
    %c0_i32_0 = arith.constant 0 : i32
    %c0_i32_1 = arith.constant 0 : i32
    %c0_i32_2 = arith.constant 0 : i32
    return %arg0, %c0_i32, %c0_i32_0, %c0_i32_1 : i32, i32, i32, i32
  }
  func.func @transform_1(%arg0: i32, %arg1: i32) -> (i32, i32) {
    %c0_i32 = arith.constant 0 : i32
    %c0_i32_0 = arith.constant 0 : i32
    %c0_i32_1 = arith.constant 0 : i32
    return %c0_i32, %c0_i32_0 : i32, i32
  }
  func.func @transform_2(%arg0: i32, %arg1: i32) -> (i32, i32) {
    %c0_i32 = arith.constant 0 : i32
    %c0_i32_0 = arith.constant 0 : i32
    %c0_i32_1 = arith.constant 0 : i32
    return %c0_i32, %c0_i32_0 : i32, i32
  }
  func.func @transform_3(%arg0: i32, %arg1: i32) -> (i32, i32, i32, i32) {
    %c0_i32 = arith.constant 0 : i32
    %c0_i32_0 = arith.constant 0 : i32
    %c0_i32_1 = arith.constant 0 : i32
    %c0_i32_2 = arith.constant 0 : i32
    %c0_i32_3 = arith.constant 0 : i32
    return %c0_i32, %c0_i32_0, %c0_i32_1, %c0_i32_2 : i32, i32, i32, i32
  }
  func.func @transform_4(%arg0: i32, %arg1: i32) -> (i32, i32, i32, i32) {
    %c0_i32 = arith.constant 0 : i32
    %c0_i32_0 = arith.constant 0 : i32
    %c0_i32_1 = arith.constant 0 : i32
    return %arg0, %arg1, %c0_i32, %c0_i32_0 : i32, i32, i32, i32
  }
  func.func @transform_5(%arg0: i32, %arg1: i32) -> (i32, i32, i32, i32) {
    %c0_i32 = arith.constant 0 : i32
    %c0_i32_0 = arith.constant 0 : i32
    %c0_i32_1 = arith.constant 0 : i32
    return %arg0, %arg1, %c0_i32, %c0_i32_0 : i32, i32, i32, i32
  }
}

module attributes {stable_mosaic.version = 11 : i64} {
  func.func @_bn_relu_mm_stats_kernel(%arg0: i32, %arg1: memref<128x128xf32, #tpu.memory_space<vmem>>, %arg2: memref<1x128xf32, #tpu.memory_space<vmem>>, %arg3: memref<1x128xf32, #tpu.memory_space<vmem>>, %arg4: memref<128x128xf32, #tpu.memory_space<vmem>>, %arg5: memref<128x128xf32, #tpu.memory_space<vmem>>, %arg6: memref<1x2x128xf32, #tpu.memory_space<vmem>>) attributes {dimension_semantics = [#tpu.dimension_semantics<parallel>], iteration_bounds = array<i64: 1>, scalar_prefetch = 0 : i64, scratch_operands = 0 : i64, tpu.core_type = #tpu.core_type<tc>, window_params = [{transform_indices = @transform_0, window_bounds = array<i64: 128, 128>}, {pipeline_mode = #tpu.pipeline_mode<synchronous>, transform_indices = @transform_1, window_bounds = array<i64: 1, 128>}, {pipeline_mode = #tpu.pipeline_mode<synchronous>, transform_indices = @transform_2, window_bounds = array<i64: 1, 128>}, {pipeline_mode = #tpu.pipeline_mode<synchronous>, transform_indices = @transform_3, window_bounds = array<i64: 128, 128>}, {transform_indices = @transform_4, window_bounds = array<i64: 128, 128>}, {transform_indices = @transform_5, window_bounds = array<i64: 1, 2, 128>}]} {
    %c0 = arith.constant 0 : index
    %c0_0 = arith.constant 0 : index
    %0 = vector.load %arg1[%c0, %c0_0] : memref<128x128xf32, #tpu.memory_space<vmem>>, vector<128x128xf32>
    %c0_1 = arith.constant 0 : index
    %c0_2 = arith.constant 0 : index
    %1 = vector.load %arg2[%c0_1, %c0_2] : memref<1x128xf32, #tpu.memory_space<vmem>>, vector<1x128xf32>
    %2 = vector.broadcast %1 : vector<1x128xf32> to vector<128x128xf32>
    %3 = arith.mulf %0, %2 : vector<128x128xf32>
    %c0_3 = arith.constant 0 : index
    %c0_4 = arith.constant 0 : index
    %4 = vector.load %arg3[%c0_3, %c0_4] : memref<1x128xf32, #tpu.memory_space<vmem>>, vector<1x128xf32>
    %5 = vector.broadcast %4 : vector<1x128xf32> to vector<128x128xf32>
    %6 = arith.addf %3, %5 : vector<128x128xf32>
    %cst = arith.constant 0.000000e+00 : f32
    %7 = vector.broadcast %cst : f32 to vector<128x128xf32>
    %8 = arith.maximumf %6, %7 : vector<128x128xf32>
    %c0_5 = arith.constant 0 : index
    %c0_6 = arith.constant 0 : index
    %9 = vector.load %arg4[%c0_5, %c0_6] : memref<128x128xf32, #tpu.memory_space<vmem>>, vector<128x128xf32>
    %cst_7 = arith.constant dense<0.000000e+00> : vector<128x128xf32>
    %10 = tpu.matmul %8, %9, %cst_7 {dimension_numbers = #tpu.dot_dimension_numbers<[1], [0], [0], [1], [0, 0, 1, 1], [], []>} : vector<128x128xf32>, vector<128x128xf32>, vector<128x128xf32> -> vector<128x128xf32>
    %c0_8 = arith.constant 0 : index
    %c0_9 = arith.constant 0 : index
    %11 = vector.load %arg5[%c0_8, %c0_9] : memref<128x128xf32, #tpu.memory_space<vmem>>, vector<128x128xf32>
    tpu.vector_store %arg5[%c0_8, %c0_9], %10 {strides = array<i32>} : memref<128x128xf32, #tpu.memory_space<vmem>>, vector<128x128xf32>,
    %cst_10 = arith.constant dense<0.000000e+00> : vector<128xf32>
    %12 = vector.multi_reduction <add>, %10, %cst_10 [0] : vector<128x128xf32> to vector<128xf32>
    %13 = vector.shape_cast %12 : vector<128xf32> to vector<1x128xf32>
    %14 = arith.mulf %10, %10 : vector<128x128xf32>
    %cst_11 = arith.constant dense<0.000000e+00> : vector<128xf32>
    %15 = vector.multi_reduction <add>, %14, %cst_11 [0] : vector<128x128xf32> to vector<128xf32>
    %16 = vector.shape_cast %15 : vector<128xf32> to vector<1x128xf32>
    %17 = tpu.concatenate %13, %16 in 0 : vector<1x128xf32>, vector<1x128xf32> -> vector<2x128xf32>
    %18 = vector.shape_cast %17 : vector<2x128xf32> to vector<1x2x128xf32>
    %c0_12 = arith.constant 0 : index
    %c0_13 = arith.constant 0 : index
    %c0_14 = arith.constant 0 : index
    %19 = vector.load %arg6[%c0_12, %c0_13, %c0_14] : memref<1x2x128xf32, #tpu.memory_space<vmem>>, vector<1x2x128xf32>
    tpu.vector_store %arg6[%c0_12, %c0_13, %c0_14], %18 {strides = array<i32>} : memref<1x2x128xf32, #tpu.memory_space<vmem>>, vector<1x2x128xf32>,
    return
  }
  func.func @transform_0(%arg0: i32) -> (i32, i32) {
    %c0_i32 = arith.constant 0 : i32
    %c0_i32_0 = arith.constant 0 : i32
    return %arg0, %c0_i32 : i32, i32
  }
  func.func @transform_1(%arg0: i32) -> (i32, i32) {
    %c0_i32 = arith.constant 0 : i32
    %c0_i32_0 = arith.constant 0 : i32
    %c0_i32_1 = arith.constant 0 : i32
    return %c0_i32, %c0_i32_0 : i32, i32
  }
  func.func @transform_2(%arg0: i32) -> (i32, i32) {
    %c0_i32 = arith.constant 0 : i32
    %c0_i32_0 = arith.constant 0 : i32
    %c0_i32_1 = arith.constant 0 : i32
    return %c0_i32, %c0_i32_0 : i32, i32
  }
  func.func @transform_3(%arg0: i32) -> (i32, i32) {
    %c0_i32 = arith.constant 0 : i32
    %c0_i32_0 = arith.constant 0 : i32
    %c0_i32_1 = arith.constant 0 : i32
    return %c0_i32, %c0_i32_0 : i32, i32
  }
  func.func @transform_4(%arg0: i32) -> (i32, i32) {
    %c0_i32 = arith.constant 0 : i32
    %c0_i32_0 = arith.constant 0 : i32
    return %arg0, %c0_i32 : i32, i32
  }
  func.func @transform_5(%arg0: i32) -> (i32, i32, i32) {
    %c0_i32 = arith.constant 0 : i32
    %c0_i32_0 = arith.constant 0 : i32
    %c0_i32_1 = arith.constant 0 : i32
    return %arg0, %c0_i32, %c0_i32_0 : i32, i32, i32
  }
}

module attributes {stable_mosaic.version = 11 : i64} {
  func.func @_mm_stats_kernel(%arg0: i32, %arg1: memref<128x128xf32, #tpu.memory_space<vmem>>, %arg2: memref<128x128xf32, #tpu.memory_space<vmem>>, %arg3: memref<128x128xf32, #tpu.memory_space<vmem>>, %arg4: memref<1x2x128xf32, #tpu.memory_space<vmem>>) attributes {dimension_semantics = [#tpu.dimension_semantics<parallel>], iteration_bounds = array<i64: 1>, scalar_prefetch = 0 : i64, scratch_operands = 0 : i64, tpu.core_type = #tpu.core_type<tc>, window_params = [{transform_indices = @transform_0, window_bounds = array<i64: 128, 128>}, {pipeline_mode = #tpu.pipeline_mode<synchronous>, transform_indices = @transform_1, window_bounds = array<i64: 128, 128>}, {transform_indices = @transform_2, window_bounds = array<i64: 128, 128>}, {transform_indices = @transform_3, window_bounds = array<i64: 1, 2, 128>}]} {
    %c0 = arith.constant 0 : index
    %c0_0 = arith.constant 0 : index
    %0 = vector.load %arg1[%c0, %c0_0] : memref<128x128xf32, #tpu.memory_space<vmem>>, vector<128x128xf32>
    %c0_1 = arith.constant 0 : index
    %c0_2 = arith.constant 0 : index
    %1 = vector.load %arg2[%c0_1, %c0_2] : memref<128x128xf32, #tpu.memory_space<vmem>>, vector<128x128xf32>
    %cst = arith.constant dense<0.000000e+00> : vector<128x128xf32>
    %2 = tpu.matmul %0, %1, %cst {dimension_numbers = #tpu.dot_dimension_numbers<[1], [0], [0], [1], [0, 0, 1, 1], [], []>} : vector<128x128xf32>, vector<128x128xf32>, vector<128x128xf32> -> vector<128x128xf32>
    %c0_3 = arith.constant 0 : index
    %c0_4 = arith.constant 0 : index
    %3 = vector.load %arg3[%c0_3, %c0_4] : memref<128x128xf32, #tpu.memory_space<vmem>>, vector<128x128xf32>
    tpu.vector_store %arg3[%c0_3, %c0_4], %2 {strides = array<i32>} : memref<128x128xf32, #tpu.memory_space<vmem>>, vector<128x128xf32>,
    %cst_5 = arith.constant dense<0.000000e+00> : vector<128xf32>
    %4 = vector.multi_reduction <add>, %2, %cst_5 [0] : vector<128x128xf32> to vector<128xf32>
    %5 = vector.shape_cast %4 : vector<128xf32> to vector<1x128xf32>
    %6 = arith.mulf %2, %2 : vector<128x128xf32>
    %cst_6 = arith.constant dense<0.000000e+00> : vector<128xf32>
    %7 = vector.multi_reduction <add>, %6, %cst_6 [0] : vector<128x128xf32> to vector<128xf32>
    %8 = vector.shape_cast %7 : vector<128xf32> to vector<1x128xf32>
    %9 = tpu.concatenate %5, %8 in 0 : vector<1x128xf32>, vector<1x128xf32> -> vector<2x128xf32>
    %10 = vector.shape_cast %9 : vector<2x128xf32> to vector<1x2x128xf32>
    %c0_7 = arith.constant 0 : index
    %c0_8 = arith.constant 0 : index
    %c0_9 = arith.constant 0 : index
    %11 = vector.load %arg4[%c0_7, %c0_8, %c0_9] : memref<1x2x128xf32, #tpu.memory_space<vmem>>, vector<1x2x128xf32>
    tpu.vector_store %arg4[%c0_7, %c0_8, %c0_9], %10 {strides = array<i32>} : memref<1x2x128xf32, #tpu.memory_space<vmem>>, vector<1x2x128xf32>,
    return
  }
  func.func @transform_0(%arg0: i32) -> (i32, i32) {
    %c0_i32 = arith.constant 0 : i32
    %c0_i32_0 = arith.constant 0 : i32
    return %arg0, %c0_i32 : i32, i32
  }
  func.func @transform_1(%arg0: i32) -> (i32, i32) {
    %c0_i32 = arith.constant 0 : i32
    %c0_i32_0 = arith.constant 0 : i32
    %c0_i32_1 = arith.constant 0 : i32
    return %c0_i32, %c0_i32_0 : i32, i32
  }
  func.func @transform_2(%arg0: i32) -> (i32, i32) {
    %c0_i32 = arith.constant 0 : i32
    %c0_i32_0 = arith.constant 0 : i32
    return %arg0, %c0_i32 : i32, i32
  }
  func.func @transform_3(%arg0: i32) -> (i32, i32, i32) {
    %c0_i32 = arith.constant 0 : i32
    %c0_i32_0 = arith.constant 0 : i32
    %c0_i32_1 = arith.constant 0 : i32
    return %arg0, %c0_i32, %c0_i32_0 : i32, i32, i32
  }
}

module attributes {stable_mosaic.version = 11 : i64} {
  func.func @_residual_out_kernel(%arg0: i32, %arg1: memref<128x128xf32, #tpu.memory_space<vmem>>, %arg2: memref<1x128xf32, #tpu.memory_space<vmem>>, %arg3: memref<1x128xf32, #tpu.memory_space<vmem>>, %arg4: memref<128x128xf32, #tpu.memory_space<vmem>>, %arg5: memref<1x128xf32, #tpu.memory_space<vmem>>, %arg6: memref<1x128xf32, #tpu.memory_space<vmem>>, %arg7: memref<128x128xf32, #tpu.memory_space<vmem>>) attributes {dimension_semantics = [#tpu.dimension_semantics<parallel>], iteration_bounds = array<i64: 1>, scalar_prefetch = 0 : i64, scratch_operands = 0 : i64, tpu.core_type = #tpu.core_type<tc>, window_params = [{transform_indices = @transform_0, window_bounds = array<i64: 128, 128>}, {pipeline_mode = #tpu.pipeline_mode<synchronous>, transform_indices = @transform_1, window_bounds = array<i64: 1, 128>}, {pipeline_mode = #tpu.pipeline_mode<synchronous>, transform_indices = @transform_2, window_bounds = array<i64: 1, 128>}, {transform_indices = @transform_3, window_bounds = array<i64: 128, 128>}, {pipeline_mode = #tpu.pipeline_mode<synchronous>, transform_indices = @transform_4, window_bounds = array<i64: 1, 128>}, {pipeline_mode = #tpu.pipeline_mode<synchronous>, transform_indices = @transform_5, window_bounds = array<i64: 1, 128>}, {transform_indices = @transform_6, window_bounds = array<i64: 128, 128>}]} {
    %c0 = arith.constant 0 : index
    %c0_0 = arith.constant 0 : index
    %0 = vector.load %arg1[%c0, %c0_0] : memref<128x128xf32, #tpu.memory_space<vmem>>, vector<128x128xf32>
    %c0_1 = arith.constant 0 : index
    %c0_2 = arith.constant 0 : index
    %1 = vector.load %arg2[%c0_1, %c0_2] : memref<1x128xf32, #tpu.memory_space<vmem>>, vector<1x128xf32>
    %2 = vector.broadcast %1 : vector<1x128xf32> to vector<128x128xf32>
    %3 = arith.mulf %0, %2 : vector<128x128xf32>
    %c0_3 = arith.constant 0 : index
    %c0_4 = arith.constant 0 : index
    %4 = vector.load %arg3[%c0_3, %c0_4] : memref<1x128xf32, #tpu.memory_space<vmem>>, vector<1x128xf32>
    %5 = vector.broadcast %4 : vector<1x128xf32> to vector<128x128xf32>
    %6 = arith.addf %3, %5 : vector<128x128xf32>
    %c0_5 = arith.constant 0 : index
    %c0_6 = arith.constant 0 : index
    %7 = vector.load %arg4[%c0_5, %c0_6] : memref<128x128xf32, #tpu.memory_space<vmem>>, vector<128x128xf32>
    %c0_7 = arith.constant 0 : index
    %c0_8 = arith.constant 0 : index
    %8 = vector.load %arg5[%c0_7, %c0_8] : memref<1x128xf32, #tpu.memory_space<vmem>>, vector<1x128xf32>
    %9 = vector.broadcast %8 : vector<1x128xf32> to vector<128x128xf32>
    %10 = arith.mulf %7, %9 : vector<128x128xf32>
    %c0_9 = arith.constant 0 : index
    %c0_10 = arith.constant 0 : index
    %11 = vector.load %arg6[%c0_9, %c0_10] : memref<1x128xf32, #tpu.memory_space<vmem>>, vector<1x128xf32>
    %12 = vector.broadcast %11 : vector<1x128xf32> to vector<128x128xf32>
    %13 = arith.addf %10, %12 : vector<128x128xf32>
    %14 = arith.addf %6, %13 : vector<128x128xf32>
    %cst = arith.constant 0.000000e+00 : f32
    %15 = vector.broadcast %cst : f32 to vector<128x128xf32>
    %16 = arith.maximumf %14, %15 : vector<128x128xf32>
    %c0_11 = arith.constant 0 : index
    %c0_12 = arith.constant 0 : index
    %17 = vector.load %arg7[%c0_11, %c0_12] : memref<128x128xf32, #tpu.memory_space<vmem>>, vector<128x128xf32>
    tpu.vector_store %arg7[%c0_11, %c0_12], %16 {strides = array<i32>} : memref<128x128xf32, #tpu.memory_space<vmem>>, vector<128x128xf32>,
    return
  }
  func.func @transform_0(%arg0: i32) -> (i32, i32) {
    %c0_i32 = arith.constant 0 : i32
    %c0_i32_0 = arith.constant 0 : i32
    return %arg0, %c0_i32 : i32, i32
  }
  func.func @transform_1(%arg0: i32) -> (i32, i32) {
    %c0_i32 = arith.constant 0 : i32
    %c0_i32_0 = arith.constant 0 : i32
    %c0_i32_1 = arith.constant 0 : i32
    return %c0_i32, %c0_i32_0 : i32, i32
  }
  func.func @transform_2(%arg0: i32) -> (i32, i32) {
    %c0_i32 = arith.constant 0 : i32
    %c0_i32_0 = arith.constant 0 : i32
    %c0_i32_1 = arith.constant 0 : i32
    return %c0_i32, %c0_i32_0 : i32, i32
  }
  func.func @transform_3(%arg0: i32) -> (i32, i32) {
    %c0_i32 = arith.constant 0 : i32
    %c0_i32_0 = arith.constant 0 : i32
    return %arg0, %c0_i32 : i32, i32
  }
  func.func @transform_4(%arg0: i32) -> (i32, i32) {
    %c0_i32 = arith.constant 0 : i32
    %c0_i32_0 = arith.constant 0 : i32
    %c0_i32_1 = arith.constant 0 : i32
    return %c0_i32, %c0_i32_0 : i32, i32
  }
  func.func @transform_5(%arg0: i32) -> (i32, i32) {
    %c0_i32 = arith.constant 0 : i32
    %c0_i32_0 = arith.constant 0 : i32
    %c0_i32_1 = arith.constant 0 : i32
    return %c0_i32, %c0_i32_0 : i32, i32
  }
  func.func @transform_6(%arg0: i32) -> (i32, i32) {
    %c0_i32 = arith.constant 0 : i32
    %c0_i32_0 = arith.constant 0 : i32
    return %arg0, %c0_i32 : i32, i32
  }
}

</mosaic_0001>

<bundles_post_ra>
// kernel: bottleneck_forward.5
= control target key start
LH: loop header
LB: loop body
LE: loop exit
PB: predicated region body
PF: predicated region fallthrough
CT: control target
= control target key end

     0   :  { %vm744_vm0 = vcmask 1040384   ;;  %s1658_s1 = inlined_call_operand.vmem [shape: f32[128,128], index: 1, kind: input, shape index: {}]   ;;  %s1659_s0 = inlined_call_operand.vmem [shape: f32[512,128], index: 0, kind: input, shape index: {}]   ;;  %s1660_s2 = inlined_call_operand.vmem [shape: f32[512,128], index: 2, kind: output, shape index: {0}]   ;;  %s1661_s3 = inlined_call_operand.vmem [shape: f32[1,2,128], index: 3, kind: output, shape index: {1}]  }
   0x1   :  { %v77_v0 = vld [vmem:[%s1658_s1] sm:$0xff]  ;;  %v78_v1 = vld [vmem:[%s1658_s1 + $0x8] sm:$0xff]  ;;  %v79_v2 = vld [vmem:[%s1658_s1 + $0x10] sm:$0xff] }
   0x2   :  { %v963_v3 = vpack.c.bf16 %v78_v1, %v77_v0  ;;  %v80_v4 = vld [vmem:[%s1658_s1 + $0x18] sm:$0xff]  ;;  %v81_v6 = vld [vmem:[%s1658_s1 + $0x20] sm:$0xff]  ;;  %v82_v7 = vld [vmem:[%s1658_s1 + $0x28] sm:$0xff] }
   0x3   :  { %v967_v5 = vpack.c.bf16 %v80_v4, %v79_v2  ;;  %v971_v8 = vpack.c.bf16 %v82_v7, %v81_v6  ;;  %v13_v9 = vld [vmem:[%s1659_s0] sm:$0xff]  ;;  %v83_v10 = vld [vmem:[%s1658_s1 + $0x30] sm:$0xff]  ;;  %v84_v11 = vld [vmem:[%s1658_s1 + $0x38] sm:$0xff] }
   0x4   :  { %964 = vmatprep.subr.bf16.mxu0 %v963_v3  ;;  %995 = vmatprep.subr.bf16.mxu1 %v963_v3  ;;  %v975_v12 = vpack.c.bf16 %v84_v11, %v83_v10  ;;  %v85_v13 = vld [vmem:[%s1658_s1 + $0x40] sm:$0xff]  ;;  %v86_v14 = vld [vmem:[%s1658_s1 + $0x48] sm:$0xff]  ;;  %v87_v16 = vld [vmem:[%s1658_s1 + $0x50] sm:$0xff] }
   0x5   :  { %966 = vmatpush3.bf16.msra.mxu0 %v963_v3  ;;  %1003 = vmatpush3.bf16.msra.mxu1 %v963_v3  ;;  %v979_v15 = vpack.c.bf16 %v86_v14, %v85_v13  ;;  %v88_v17 = vld [vmem:[%s1658_s1 + $0x58] sm:$0xff]  ;;  %v45_v18 = vld [vmem:[%s1659_s0 + $0x100] sm:$0xff]  ;;  %v90_v21 = vld [vmem:[%s1658_s1 + $0x68] sm:$0xff] }
   0x6   :  { %968 = vmatprep.subr.bf16.mxu0 %v967_v5  ;;  %996 = vmatprep.subr.bf16.mxu1 %v967_v5  ;;  %v983_v19 = vpack.c.bf16 %v88_v17, %v87_v16  ;;  %v89_v20 = vld [vmem:[%s1658_s1 + $0x60] sm:$0xff]  ;;  %v91_v23 = vld [vmem:[%s1658_s1 + $0x70] sm:$0xff]  ;;  %v92_v24 = vld [vmem:[%s1658_s1 + $0x78] sm:$0xff] }
   0x7   :  { %867 = vmatprep.mubr.f32.mxu0 %v13_v9  ;;  %915 = vmatprep.mubr.f32.mxu1 %v45_v18  ;;  %v987_v22 = vpack.c.bf16 %v90_v21, %v89_v20  ;;  %v991_v25 = vpack.c.bf16 %v92_v24, %v91_v23  ;;  %v14_v26 = vld [vmem:[%s1659_s0 + $0x8] sm:$0xff]  ;;  %v15_v28 = vld [vmem:[%s1659_s0 + $0x10] sm:$0xff]  ;;  %v16_v30 = vld [vmem:[%s1659_s0 + $0x18] sm:$0xff] }
   0x8   :  { %v46_v27 = vld [vmem:[%s1659_s0 + $0x108] sm:$0xff]  ;;  %v47_v29 = vld [vmem:[%s1659_s0 + $0x110] sm:$0xff]  ;;  %v48_v31 = vld [vmem:[%s1659_s0 + $0x118] sm:$0xff] }
   0x9   :  { %970 = vmatpush3.bf16.msra.mxu0 %v967_v5  ;;  %1004 = vmatpush3.bf16.msra.mxu1 %v967_v5  ;;  %v17_v32 = vld [vmem:[%s1659_s0 + $0x20] sm:$0xff]  ;;  %v18_v34 = vld [vmem:[%s1659_s0 + $0x28] sm:$0xff]  ;;  %v19_v36 = vld [vmem:[%s1659_s0 + $0x30] sm:$0xff] }
   0xa   :  { %972 = vmatprep.subr.bf16.mxu0 %v971_v8  ;;  %997 = vmatprep.subr.bf16.mxu1 %v971_v8  ;;  %v49_v33 = vld [vmem:[%s1659_s0 + $0x120] sm:$0xff]  ;;  %v50_v35 = vld [vmem:[%s1659_s0 + $0x128] sm:$0xff]  ;;  %v51_v37 = vld [vmem:[%s1659_s0 + $0x130] sm:$0xff] }
   0xb   :  { %v20_v38 = vld [vmem:[%s1659_s0 + $0x38] sm:$0xff]  ;;  %v21_v40 = vld [vmem:[%s1659_s0 + $0x40] sm:$0xff]  ;;  %v22_v42 = vld [vmem:[%s1659_s0 + $0x48] sm:$0xff] }
   0xc   :  { %v52_v39 = vld [vmem:[%s1659_s0 + $0x138] sm:$0xff]  ;;  %v53_v41 = vld [vmem:[%s1659_s0 + $0x140] sm:$0xff]  ;;  %v54_v43 = vld [vmem:[%s1659_s0 + $0x148] sm:$0xff] }
   0xd   :  { %974 = vmatpush3.bf16.msra.mxu0 %v971_v8  ;;  %1005 = vmatpush3.bf16.msra.mxu1 %v971_v8  ;;  %v23_v44 = vld [vmem:[%s1659_s0 + $0x50] sm:$0xff]  ;;  %v24_v46 = vld [vmem:[%s1659_s0 + $0x58] sm:$0xff]  ;;  %v25_v48 = vld [vmem:[%s1659_s0 + $0x60] sm:$0xff] }
   0xe   :  { %976 = vmatprep.subr.bf16.mxu0 %v975_v12  ;;  %998 = vmatprep.subr.bf16.mxu1 %v975_v12  ;;  %v55_v45 = vld [vmem:[%s1659_s0 + $0x150] sm:$0xff]  ;;  %v56_v47 = vld [vmem:[%s1659_s0 + $0x158] sm:$0xff]  ;;  %v57_v49 = vld [vmem:[%s1659_s0 + $0x160] sm:$0xff] }
   0xf   :  { %v26_v50 = vld [vmem:[%s1659_s0 + $0x68] sm:$0xff]  ;;  %v27_v52 = vld [vmem:[%s1659_s0 + $0x70] sm:$0xff]  ;;  %v28_v54 = vld [vmem:[%s1659_s0 + $0x78] sm:$0xff] }
  0x10   :  { %v58_v51 = vld [vmem:[%s1659_s0 + $0x168] sm:$0xff]  ;;  %v59_v53 = vld [vmem:[%s1659_s0 + $0x170] sm:$0xff]  ;;  %v60_v55 = vld [vmem:[%s1659_s0 + $0x178] sm:$0xff] }
  0x11   :  { %978 = vmatpush3.bf16.msra.mxu0 %v975_v12  ;;  %1006 = vmatpush3.bf16.msra.mxu1 %v975_v12  ;;  %v29_v56 = vld [vmem:[%s1659_s0 + $0x80] sm:$0xff]  ;;  %v30_v58 = vld [vmem:[%s1659_s0 + $0x88] sm:$0xff]  ;;  %v31_v60 = vld [vmem:[%s1659_s0 + $0x90] sm:$0xff] }
  0x12   :  { %980 = vmatprep.subr.bf16.mxu0 %v979_v15  ;;  %999 = vmatprep.subr.bf16.mxu1 %v979_v15  ;;  %v61_v57 = vld [vmem:[%s1659_s0 + $0x180] sm:$0xff]  ;;  %v62_v59 = vld [vmem:[%s1659_s0 + $0x188] sm:$0xff]  ;;  %v63_v61 = vld [vmem:[%s1659_s0 + $0x190] sm:$0xff] }
  0x13   :  { %v32_v62 = vld [vmem:[%s1659_s0 + $0x98] sm:$0xff]  ;;  %v33_v0 = vld [vmem:[%s1659_s0 + $0xa0] sm:$0xff]  ;;  %v34_v2 = vld [vmem:[%s1659_s0 + $0xa8] sm:$0xff] }
  0x14   :  { %v64_v63 = vld [vmem:[%s1659_s0 + $0x198] sm:$0xff]  ;;  %v65_v1 = vld [vmem:[%s1659_s0 + $0x1a0] sm:$0xff]  ;;  %v66_v3 = vld [vmem:[%s1659_s0 + $0x1a8] sm:$0xff] }
  0x15   :  { %982 = vmatpush3.bf16.msra.mxu0 %v979_v15  ;;  %1007 = vmatpush3.bf16.msra.mxu1 %v979_v15  ;;  %v35_v4 = vld [vmem:[%s1659_s0 + $0xb0] sm:$0xff]  ;;  %v36_v6 = vld [vmem:[%s1659_s0 + $0xb8] sm:$0xff]  ;;  %v37_v8 = vld [vmem:[%s1659_s0 + $0xc0] sm:$0xff] }
  0x16   :  { %984 = vmatprep.subr.bf16.mxu0 %v983_v19  ;;  %1000 = vmatprep.subr.bf16.mxu1 %v983_v19  ;;  %v67_v5 = vld [vmem:[%s1659_s0 + $0x1b0] sm:$0xff]  ;;  %v68_v7 = vld [vmem:[%s1659_s0 + $0x1b8] sm:$0xff]  ;;  %v69_v9 = vld [vmem:[%s1659_s0 + $0x1c0] sm:$0xff] }
  0x17   :  { %v38_v10 = vld [vmem:[%s1659_s0 + $0xc8] sm:$0xff]  ;;  %v39_v12 = vld [vmem:[%s1659_s0 + $0xd0] sm:$0xff]  ;;  %v40_v14 = vld [vmem:[%s1659_s0 + $0xd8] sm:$0xff] }
  0x18   :  { %v70_v11 = vld [vmem:[%s1659_s0 + $0x1c8] sm:$0xff]  ;;  %v71_v13 = vld [vmem:[%s1659_s0 + $0x1d0] sm:$0xff]  ;;  %v72_v15 = vld [vmem:[%s1659_s0 + $0x1d8] sm:$0xff] }
  0x19   :  { %986 = vmatpush3.bf16.msra.mxu0 %v983_v19  ;;  %1008 = vmatpush3.bf16.msra.mxu1 %v983_v19  ;;  %v41_v16 = vld [vmem:[%s1659_s0 + $0xe0] sm:$0xff]  ;;  %v42_v18 = vld [vmem:[%s1659_s0 + $0xe8] sm:$0xff]  ;;  %v43_v20 = vld [vmem:[%s1659_s0 + $0xf0] sm:$0xff] }
  0x1a   :  { %988 = vmatprep.subr.bf16.mxu0 %v987_v22  ;;  %1001 = vmatprep.subr.bf16.mxu1 %v987_v22  ;;  %v73_v17 = vld [vmem:[%s1659_s0 + $0x1e0] sm:$0xff]  ;;  %v74_v19 = vld [vmem:[%s1659_s0 + $0x1e8] sm:$0xff]  ;;  %v75_v21 = vld [vmem:[%s1659_s0 + $0x1f0] sm:$0xff] }
  0x1b   :  { %v76_v23 = vld [vmem:[%s1659_s0 + $0x1f8] sm:$0xff] }
  0x1d   :  { %990 = vmatpush3.bf16.msra.mxu0 %v987_v22  ;;  %1009 = vmatpush3.bf16.msra.mxu1 %v987_v22  ;;  %v44_v22 = vld [vmem:[%s1659_s0 + $0xf8] sm:$0xff] }
  0x1e   :  { %992 = vmatprep.subr.bf16.mxu0 %v991_v25  ;;  %1002 = vmatprep.subr.bf16.mxu1 %v991_v25 }
  0x21   :  { %994 = vmatpush3.bf16.msra.mxu0 %v991_v25  ;;  %1010 = vmatpush3.bf16.msra.mxu1 %v991_v25 }
  0x24   :  { %868 = vmatmul.mubr.f32.vlgmr.msra.gmra.mrb[0].mxu0 %v14_v26  ;;  %916 = vmatmul.mubr.f32.vlgmr.msra.gmra.mrb[0].mxu1 %v46_v27 }
  0x25   :  { %870 = vmatprep.mubr.f32.mxu0 %v15_v28  ;;  %918 = vmatprep.mubr.f32.mxu1 %v47_v29 }
  0x28   :  { %871 = vmatmul.mubr.f32.gmra.mrb[2].mxu0 %v16_v30  ;;  %919 = vmatmul.mubr.f32.gmra.mrb[2].mxu1 %v48_v31 }
  0x29   :  { %873 = vmatprep.mubr.f32.mxu0 %v17_v32  ;;  %921 = vmatprep.mubr.f32.mxu1 %v49_v33 }
  0x2c   :  { %874 = vmatmul.mubr.f32.gmra.mrb[4].mxu0 %v18_v34  ;;  %922 = vmatmul.mubr.f32.gmra.mrb[4].mxu1 %v50_v35 }
  0x2d   :  { %876 = vmatprep.mubr.f32.mxu0 %v19_v36  ;;  %924 = vmatprep.mubr.f32.mxu1 %v51_v37 }
  0x30   :  { %877 = vmatmul.mubr.f32.gmra.mrb[6].mxu0 %v20_v38  ;;  %925 = vmatmul.mubr.f32.gmra.mrb[6].mxu1 %v52_v39 }
  0x31   :  { %879 = vmatprep.mubr.f32.mxu0 %v21_v40  ;;  %927 = vmatprep.mubr.f32.mxu1 %v53_v41 }
  0x34   :  { %880 = vmatmul.mubr.f32.gmra.mrb[8].mxu0 %v22_v42  ;;  %928 = vmatmul.mubr.f32.gmra.mrb[8].mxu1 %v54_v43 }
  0x35   :  { %882 = vmatprep.mubr.f32.mxu0 %v23_v44  ;;  %930 = vmatprep.mubr.f32.mxu1 %v55_v45 }
  0x38   :  { %883 = vmatmul.mubr.f32.gmra.mrb[10].mxu0 %v24_v46  ;;  %931 = vmatmul.mubr.f32.gmra.mrb[10].mxu1 %v56_v47 }
  0x39   :  { %885 = vmatprep.mubr.f32.mxu0 %v25_v48  ;;  %933 = vmatprep.mubr.f32.mxu1 %v57_v49 }
  0x3c   :  { %886 = vmatmul.mubr.f32.gmra.mrb[12].mxu0 %v26_v50  ;;  %934 = vmatmul.mubr.f32.gmra.mrb[12].mxu1 %v58_v51 }
  0x3d   :  { %888 = vmatprep.mubr.f32.mxu0 %v27_v52  ;;  %936 = vmatprep.mubr.f32.mxu1 %v59_v53 }
  0x40   :  { %889 = vmatmul.mubr.f32.gmra.mrb[14].mxu0 %v28_v54  ;;  %937 = vmatmul.mubr.f32.gmra.mrb[14].mxu1 %v60_v55 }
  0x41   :  { %891 = vmatprep.mubr.f32.mxu0 %v29_v56  ;;  %939 = vmatprep.mubr.f32.mxu1 %v61_v57 }
  0x44   :  { %892 = vmatmul.mubr.f32.gmra.mrb[16].mxu0 %v30_v58  ;;  %940 = vmatmul.mubr.f32.gmra.mrb[16].mxu1 %v62_v59 }
  0x45   :  { %894 = vmatprep.mubr.f32.mxu0 %v31_v60  ;;  %942 = vmatprep.mubr.f32.mxu1 %v63_v61 }
  0x48   :  { %895 = vmatmul.mubr.f32.gmra.mrb[18].mxu0 %v32_v62  ;;  %943 = vmatmul.mubr.f32.gmra.mrb[18].mxu1 %v64_v63 }
  0x49   :  { %897 = vmatprep.mubr.f32.mxu0 %v33_v0  ;;  %945 = vmatprep.mubr.f32.mxu1 %v65_v1 }
  0x4c   :  { %898 = vmatmul.mubr.f32.gmra.mrb[20].mxu0 %v34_v2  ;;  %946 = vmatmul.mubr.f32.gmra.mrb[20].mxu1 %v66_v3 }
  0x4d   :  { %900 = vmatprep.mubr.f32.mxu0 %v35_v4  ;;  %948 = vmatprep.mubr.f32.mxu1 %v67_v5 }
  0x50   :  { %901 = vmatmul.mubr.f32.gmra.mrb[22].mxu0 %v36_v6  ;;  %949 = vmatmul.mubr.f32.gmra.mrb[22].mxu1 %v68_v7 }
  0x51   :  { %903 = vmatprep.mubr.f32.mxu0 %v37_v8  ;;  %951 = vmatprep.mubr.f32.mxu1 %v69_v9 }
  0x54   :  { %904 = vmatmul.mubr.f32.gmra.mrb[24].mxu0 %v38_v10  ;;  %952 = vmatmul.mubr.f32.gmra.mrb[24].mxu1 %v70_v11 }
  0x55   :  { %906 = vmatprep.mubr.f32.mxu0 %v39_v12  ;;  %954 = vmatprep.mubr.f32.mxu1 %v71_v13 }
  0x58   :  { %907 = vmatmul.mubr.f32.gmra.mrb[26].mxu0 %v40_v14  ;;  %955 = vmatmul.mubr.f32.gmra.mrb[26].mxu1 %v72_v15 }
  0x59   :  { %909 = vmatprep.mubr.f32.mxu0 %v41_v16  ;;  %957 = vmatprep.mubr.f32.mxu1 %v73_v17 }
  0x5c   :  { %910 = vmatmul.mubr.f32.gmra.mrb[28].mxu0 %v42_v18  ;;  %958 = vmatmul.mubr.f32.gmra.mrb[28].mxu1 %v74_v19 }
  0x5d   :  { %912 = vmatprep.mubr.f32.mxu0 %v43_v20  ;;  %960 = vmatprep.mubr.f32.mxu1 %v75_v21 }
  0x60   :  { %913 = vmatmul.mubr.f32.gmra.mrb[30].mxu0 %v44_v22  ;;  %961 = vmatmul.mubr.f32.gmra.mrb[30].mxu1 %v76_v23 }
  0xf7   :  { %v869_v24 = vpop.f32.mrb[0].mxu0  ;;  %v1271_v25 = vpop.f32.mrb[0].mxu1 }
  0xf8   :  { %479 = vst [vmem:[%s1660_s2 + $0x8] sm:$0xff] %v869_v24  ;;  %v612_v26 = vmul.f32 %v869_v24, %v869_v24  ;;  %v159_v27 = vpop.f32.mrb[1].mxu0  ;;  %511 = vst [vmem:[%s1660_s2 + $0x108] sm:$0xff] %v1271_v25  ;;  %v1280_v28 = vpop.f32.mrb[1].mxu1 }
  0xf9   :  { %478 = vst [vmem:[%s1660_s2] sm:$0xff] %v159_v27  ;;  %v542_v29 = vadd.f32 %v869_v24, %v159_v27  ;;  %v611_v30 = vmul.f32 %v159_v27, %v159_v27  ;;  %510 = vst [vmem:[%s1660_s2 + $0x100] sm:$0xff] %v1280_v28 }
  0xfb   :  { %v675_v31 = vadd.f32 %v612_v26, %v611_v30  ;;  %v872_v32 = vpop.f32.mrb[2].mxu0  ;;  %v1289_v33 = vpop.f32.mrb[2].mxu1 }
  0xfc   :  { %481 = vst [vmem:[%s1660_s2 + $0x18] sm:$0xff] %v872_v32  ;;  %v169_v34 = vpop.f32.mrb[3].mxu0  ;;  %513 = vst [vmem:[%s1660_s2 + $0x118] sm:$0xff] %v1289_v33  ;;  %v1298_v35 = vpop.f32.mrb[3].mxu1  ;;  %v614_v38 = vmul.f32 %v872_v32, %v872_v32 }
  0xfd   :  { %480 = vst [vmem:[%s1660_s2 + $0x10] sm:$0xff] %v169_v34  ;;  %v543_v36 = vadd.f32 %v542_v29, %v169_v34  ;;  %v613_v37 = vmul.f32 %v169_v34, %v169_v34  ;;  %512 = vst [vmem:[%s1660_s2 + $0x110] sm:$0xff] %v1298_v35 }
  0xff   :  { %v676_v39 = vadd.f32 %v675_v31, %v613_v37  ;;  %v875_v40 = vpop.f32.mrb[4].mxu0  ;;  %v544_v41 = vadd.f32 %v872_v32, %v543_v36  ;;  %v1307_v42 = vpop.f32.mrb[4].mxu1 }
 0x100   :  { %483 = vst [vmem:[%s1660_s2 + $0x28] sm:$0xff] %v875_v40  ;;  %v179_v43 = vpop.f32.mrb[5].mxu0  ;;  %515 = vst [vmem:[%s1660_s2 + $0x128] sm:$0xff] %v1307_v42  ;;  %v1316_v44 = vpop.f32.mrb[5].mxu1  ;;  %v616_v48 = vmul.f32 %v875_v40, %v875_v40 }
 0x101   :  { %482 = vst [vmem:[%s1660_s2 + $0x20] sm:$0xff] %v179_v43  ;;  %v545_v45 = vadd.f32 %v544_v41, %v179_v43  ;;  %v615_v46 = vmul.f32 %v179_v43, %v179_v43  ;;  %v677_v47 = vadd.f32 %v676_v39, %v614_v38  ;;  %514 = vst [vmem:[%s1660_s2 + $0x120] sm:$0xff] %v1316_v44 }
 0x103   :  { %v678_v49 = vadd.f32 %v677_v47, %v615_v46  ;;  %v878_v50 = vpop.f32.mrb[6].mxu0  ;;  %v546_v51 = vadd.f32 %v875_v40, %v545_v45  ;;  %v1325_v52 = vpop.f32.mrb[6].mxu1 }
 0x104   :  { %485 = vst [vmem:[%s1660_s2 + $0x38] sm:$0xff] %v878_v50  ;;  %v189_v53 = vpop.f32.mrb[7].mxu0  ;;  %517 = vst [vmem:[%s1660_s2 + $0x138] sm:$0xff] %v1325_v52  ;;  %v1334_v54 = vpop.f32.mrb[7].mxu1  ;;  %v618_v58 = vmul.f32 %v878_v50, %v878_v50 }
 0x105   :  { %484 = vst [vmem:[%s1660_s2 + $0x30] sm:$0xff] %v189_v53  ;;  %v547_v55 = vadd.f32 %v546_v51, %v189_v53  ;;  %v617_v56 = vmul.f32 %v189_v53, %v189_v53  ;;  %v679_v57 = vadd.f32 %v678_v49, %v616_v48  ;;  %516 = vst [vmem:[%s1660_s2 + $0x130] sm:$0xff] %v1334_v54 }
 0x107   :  { %v680_v59 = vadd.f32 %v679_v57, %v617_v56  ;;  %v881_v60 = vpop.f32.mrb[8].mxu0  ;;  %v548_v61 = vadd.f32 %v878_v50, %v547_v55  ;;  %v1343_v62 = vpop.f32.mrb[8].mxu1 }
 0x108   :  { %487 = vst [vmem:[%s1660_s2 + $0x48] sm:$0xff] %v881_v60  ;;  %v199_v63 = vpop.f32.mrb[9].mxu0  ;;  %519 = vst [vmem:[%s1660_s2 + $0x148] sm:$0xff] %v1343_v62  ;;  %v1352_v0 = vpop.f32.mrb[9].mxu1  ;;  %v620_v4 = vmul.f32 %v881_v60, %v881_v60 }
 0x109   :  { %486 = vst [vmem:[%s1660_s2 + $0x40] sm:$0xff] %v199_v63  ;;  %v549_v1 = vadd.f32 %v548_v61, %v199_v63  ;;  %v619_v2 = vmul.f32 %v199_v63, %v199_v63  ;;  %v681_v3 = vadd.f32 %v680_v59, %v618_v58  ;;  %518 = vst [vmem:[%s1660_s2 + $0x140] sm:$0xff] %v1352_v0 }
 0x10b   :  { %v682_v5 = vadd.f32 %v681_v3, %v619_v2  ;;  %v884_v6 = vpop.f32.mrb[10].mxu0  ;;  %v550_v7 = vadd.f32 %v881_v60, %v549_v1  ;;  %v1361_v8 = vpop.f32.mrb[10].mxu1 }
 0x10c   :  { %489 = vst [vmem:[%s1660_s2 + $0x58] sm:$0xff] %v884_v6  ;;  %v209_v9 = vpop.f32.mrb[11].mxu0  ;;  %521 = vst [vmem:[%s1660_s2 + $0x158] sm:$0xff] %v1361_v8  ;;  %v1370_v10 = vpop.f32.mrb[11].mxu1  ;;  %v622_v14 = vmul.f32 %v884_v6, %v884_v6 }
 0x10d   :  { %488 = vst [vmem:[%s1660_s2 + $0x50] sm:$0xff] %v209_v9  ;;  %v551_v11 = vadd.f32 %v550_v7, %v209_v9  ;;  %v621_v12 = vmul.f32 %v209_v9, %v209_v9  ;;  %v683_v13 = vadd.f32 %v682_v5, %v620_v4  ;;  %520 = vst [vmem:[%s1660_s2 + $0x150] sm:$0xff] %v1370_v10 }
 0x10f   :  { %v684_v15 = vadd.f32 %v683_v13, %v621_v12  ;;  %v887_v16 = vpop.f32.mrb[12].mxu0  ;;  %v552_v17 = vadd.f32 %v884_v6, %v551_v11  ;;  %v1379_v18 = vpop.f32.mrb[12].mxu1 }
 0x110   :  { %491 = vst [vmem:[%s1660_s2 + $0x68] sm:$0xff] %v887_v16  ;;  %v219_v19 = vpop.f32.mrb[13].mxu0  ;;  %523 = vst [vmem:[%s1660_s2 + $0x168] sm:$0xff] %v1379_v18  ;;  %v1388_v20 = vpop.f32.mrb[13].mxu1  ;;  %v624_v24 = vmul.f32 %v887_v16, %v887_v16 }
 0x111   :  { %490 = vst [vmem:[%s1660_s2 + $0x60] sm:$0xff] %v219_v19  ;;  %v553_v21 = vadd.f32 %v552_v17, %v219_v19  ;;  %v623_v22 = vmul.f32 %v219_v19, %v219_v19  ;;  %v685_v23 = vadd.f32 %v684_v15, %v622_v14  ;;  %522 = vst [vmem:[%s1660_s2 + $0x160] sm:$0xff] %v1388_v20 }
 0x113   :  { %v686_v26 = vadd.f32 %v685_v23, %v623_v22  ;;  %v890_v27 = vpop.f32.mrb[14].mxu0  ;;  %v554_v29 = vadd.f32 %v887_v16, %v553_v21  ;;  %v1397_v30 = vpop.f32.mrb[14].mxu1 }
 0x114   :  { %493 = vst [vmem:[%s1660_s2 + $0x78] sm:$0xff] %v890_v27  ;;  %v229_v31 = vpop.f32.mrb[15].mxu0  ;;  %525 = vst [vmem:[%s1660_s2 + $0x178] sm:$0xff] %v1397_v30  ;;  %v1406_v32 = vpop.f32.mrb[15].mxu1  ;;  %v626_v38 = vmul.f32 %v890_v27, %v890_v27 }
 0x115   :  { %492 = vst [vmem:[%s1660_s2 + $0x70] sm:$0xff] %v229_v31  ;;  %v555_v34 = vadd.f32 %v554_v29, %v229_v31  ;;  %v625_v36 = vmul.f32 %v229_v31, %v229_v31  ;;  %v687_v37 = vadd.f32 %v686_v26, %v624_v24  ;;  %524 = vst [vmem:[%s1660_s2 + $0x170] sm:$0xff] %v1406_v32 }
 0x117   :  { %v688_v39 = vadd.f32 %v687_v37, %v625_v36  ;;  %v893_v40 = vpop.f32.mrb[16].mxu0  ;;  %v556_v41 = vadd.f32 %v890_v27, %v555_v34  ;;  %v1415_v43 = vpop.f32.mrb[16].mxu1 }
 0x118   :  { %495 = vst [vmem:[%s1660_s2 + $0x88] sm:$0xff] %v893_v40  ;;  %v239_v45 = vpop.f32.mrb[17].mxu0  ;;  %527 = vst [vmem:[%s1660_s2 + $0x188] sm:$0xff] %v1415_v43  ;;  %v1424_v46 = vpop.f32.mrb[17].mxu1  ;;  %v628_v50 = vmul.f32 %v893_v40, %v893_v40 }
 0x119   :  { %494 = vst [vmem:[%s1660_s2 + $0x80] sm:$0xff] %v239_v45  ;;  %v557_v47 = vadd.f32 %v556_v41, %v239_v45  ;;  %v627_v48 = vmul.f32 %v239_v45, %v239_v45  ;;  %v689_v49 = vadd.f32 %v688_v39, %v626_v38  ;;  %526 = vst [vmem:[%s1660_s2 + $0x180] sm:$0xff] %v1424_v46 }
 0x11b   :  { %v690_v51 = vadd.f32 %v689_v49, %v627_v48  ;;  %v896_v53 = vpop.f32.mrb[18].mxu0  ;;  %v558_v55 = vadd.f32 %v893_v40, %v557_v47  ;;  %v1433_v56 = vpop.f32.mrb[18].mxu1 }
 0x11c   :  { %497 = vst [vmem:[%s1660_s2 + $0x98] sm:$0xff] %v896_v53  ;;  %v249_v57 = vpop.f32.mrb[19].mxu0  ;;  %529 = vst [vmem:[%s1660_s2 + $0x198] sm:$0xff] %v1433_v56  ;;  %v1442_v58 = vpop.f32.mrb[19].mxu1  ;;  %v630_v63 = vmul.f32 %v896_v53, %v896_v53 }
 0x11d   :  { %496 = vst [vmem:[%s1660_s2 + $0x90] sm:$0xff] %v249_v57  ;;  %v559_v59 = vadd.f32 %v558_v55, %v249_v57  ;;  %v629_v60 = vmul.f32 %v249_v57, %v249_v57  ;;  %v691_v61 = vadd.f32 %v690_v51, %v628_v50  ;;  %528 = vst [vmem:[%s1660_s2 + $0x190] sm:$0xff] %v1442_v58 }
 0x11f   :  { %v692_v1 = vadd.f32 %v691_v61, %v629_v60  ;;  %v899_v2 = vpop.f32.mrb[20].mxu0  ;;  %v560_v3 = vadd.f32 %v896_v53, %v559_v59  ;;  %v1451_v4 = vpop.f32.mrb[20].mxu1 }
 0x120   :  { %499 = vst [vmem:[%s1660_s2 + $0xa8] sm:$0xff] %v899_v2  ;;  %v259_v5 = vpop.f32.mrb[21].mxu0  ;;  %531 = vst [vmem:[%s1660_s2 + $0x1a8] sm:$0xff] %v1451_v4  ;;  %v1460_v6 = vpop.f32.mrb[21].mxu1  ;;  %v632_v12 = vmul.f32 %v899_v2, %v899_v2 }
 0x121   :  { %498 = vst [vmem:[%s1660_s2 + $0xa0] sm:$0xff] %v259_v5  ;;  %v561_v7 = vadd.f32 %v560_v3, %v259_v5  ;;  %v631_v9 = vmul.f32 %v259_v5, %v259_v5  ;;  %v693_v11 = vadd.f32 %v692_v1, %v630_v63  ;;  %530 = vst [vmem:[%s1660_s2 + $0x1a0] sm:$0xff] %v1460_v6 }
 0x123   :  { %v694_v13 = vadd.f32 %v693_v11, %v631_v9  ;;  %v902_v14 = vpop.f32.mrb[22].mxu0  ;;  %v562_v15 = vadd.f32 %v899_v2, %v561_v7  ;;  %v1469_v16 = vpop.f32.mrb[22].mxu1 }
 0x124   :  { %501 = vst [vmem:[%s1660_s2 + $0xb8] sm:$0xff] %v902_v14  ;;  %v269_v17 = vpop.f32.mrb[23].mxu0  ;;  %533 = vst [vmem:[%s1660_s2 + $0x1b8] sm:$0xff] %v1469_v16  ;;  %v1478_v19 = vpop.f32.mrb[23].mxu1  ;;  %v634_v24 = vmul.f32 %v902_v14, %v902_v14 }
 0x125   :  { %500 = vst [vmem:[%s1660_s2 + $0xb0] sm:$0xff] %v269_v17  ;;  %v563_v21 = vadd.f32 %v562_v15, %v269_v17  ;;  %v633_v22 = vmul.f32 %v269_v17, %v269_v17  ;;  %v695_v23 = vadd.f32 %v694_v13, %v632_v12  ;;  %532 = vst [vmem:[%s1660_s2 + $0x1b0] sm:$0xff] %v1478_v19 }
 0x127   :  { %v696_v26 = vadd.f32 %v695_v23, %v633_v22  ;;  %v905_v27 = vpop.f32.mrb[24].mxu0  ;;  %v564_v29 = vadd.f32 %v902_v14, %v563_v21  ;;  %v1487_v31 = vpop.f32.mrb[24].mxu1 }
 0x128   :  { %503 = vst [vmem:[%s1660_s2 + $0xc8] sm:$0xff] %v905_v27  ;;  %v279_v34 = vpop.f32.mrb[25].mxu0  ;;  %535 = vst [vmem:[%s1660_s2 + $0x1c8] sm:$0xff] %v1487_v31  ;;  %v1496_v36 = vpop.f32.mrb[25].mxu1  ;;  %v636_v40 = vmul.f32 %v905_v27, %v905_v27 }
 0x129   :  { %502 = vst [vmem:[%s1660_s2 + $0xc0] sm:$0xff] %v279_v34  ;;  %v565_v37 = vadd.f32 %v564_v29, %v279_v34  ;;  %v635_v38 = vmul.f32 %v279_v34, %v279_v34  ;;  %v697_v39 = vadd.f32 %v696_v26, %v634_v24  ;;  %534 = vst [vmem:[%s1660_s2 + $0x1c0] sm:$0xff] %v1496_v36 }
 0x12a   :  { %v643_v29 = vmul.f32 %v1280_v28, %v1280_v28 }
 0x12b   :  { %v698_v41 = vadd.f32 %v697_v39, %v635_v38  ;;  %v908_v45 = vpop.f32.mrb[26].mxu0  ;;  %v566_v47 = vadd.f32 %v905_v27, %v565_v37  ;;  %v1505_v48 = vpop.f32.mrb[26].mxu1  ;;  %v644_v38 = vmul.f32 %v1271_v25, %v1271_v25 }
 0x12c   :  { %505 = vst [vmem:[%s1660_s2 + $0xd8] sm:$0xff] %v908_v45  ;;  %v289_v49 = vpop.f32.mrb[27].mxu0  ;;  %537 = vst [vmem:[%s1660_s2 + $0x1d8] sm:$0xff] %v1505_v48  ;;  %v1514_v50 = vpop.f32.mrb[27].mxu1  ;;  %v638_v57 = vmul.f32 %v908_v45, %v908_v45 }
 0x12d   :  { %504 = vst [vmem:[%s1660_s2 + $0xd0] sm:$0xff] %v289_v49  ;;  %v567_v51 = vadd.f32 %v566_v47, %v289_v49  ;;  %v637_v53 = vmul.f32 %v289_v49, %v289_v49  ;;  %v699_v55 = vadd.f32 %v698_v41, %v636_v40  ;;  %536 = vst [vmem:[%s1660_s2 + $0x1d0] sm:$0xff] %v1514_v50 }
 0x12e   :  { %v645_v41 = vmul.f32 %v1298_v35, %v1298_v35  ;;  %v646_v49 = vmul.f32 %v1289_v33, %v1289_v33 }
 0x12f   :  { %v700_v59 = vadd.f32 %v699_v55, %v637_v53  ;;  %v911_v60 = vpop.f32.mrb[28].mxu0  ;;  %v568_v61 = vadd.f32 %v908_v45, %v567_v51  ;;  %v1523_v63 = vpop.f32.mrb[28].mxu1 }
 0x130   :  { %507 = vst [vmem:[%s1660_s2 + $0xe8] sm:$0xff] %v911_v60  ;;  %v299_v1 = vpop.f32.mrb[29].mxu0  ;;  %539 = vst [vmem:[%s1660_s2 + $0x1e8] sm:$0xff] %v1523_v63  ;;  %v1532_v2 = vpop.f32.mrb[29].mxu1  ;;  %v640_v9 = vmul.f32 %v911_v60, %v911_v60 }
 0x131   :  { %506 = vst [vmem:[%s1660_s2 + $0xe0] sm:$0xff] %v299_v1  ;;  %v569_v3 = vadd.f32 %v568_v61, %v299_v1  ;;  %v639_v5 = vmul.f32 %v299_v1, %v299_v1  ;;  %v701_v7 = vadd.f32 %v700_v59, %v638_v57  ;;  %538 = vst [vmem:[%s1660_s2 + $0x1e0] sm:$0xff] %v1532_v2 }
 0x133   :  { %v702_v11 = vadd.f32 %v701_v7, %v639_v5  ;;  %v914_v12 = vpop.f32.mrb[30].mxu0  ;;  %v570_v13 = vadd.f32 %v911_v60, %v569_v3  ;;  %v1541_v14 = vpop.f32.mrb[30].mxu1 }
 0x134   :  { %509 = vst [vmem:[%s1660_s2 + $0xf8] sm:$0xff] %v914_v12  ;;  %v309_v15 = vpop.f32.mrb[31].mxu0  ;;  %541 = vst [vmem:[%s1660_s2 + $0x1f8] sm:$0xff] %v1541_v14  ;;  %v1550_v17 = vpop.f32.mrb[31].mxu1  ;;  %v642_v24 = vmul.f32 %v914_v12, %v914_v12 }
 0x135   :  { %508 = vst [vmem:[%s1660_s2 + $0xf0] sm:$0xff] %v309_v15  ;;  %v571_v21 = vadd.f32 %v570_v13, %v309_v15  ;;  %v641_v22 = vmul.f32 %v309_v15, %v309_v15  ;;  %v703_v23 = vadd.f32 %v702_v11, %v640_v9  ;;  %540 = vst [vmem:[%s1660_s2 + $0x1f0] sm:$0xff] %v1550_v17 }
 0x137   :  { %v572_v26 = vadd.f32 %v914_v12, %v571_v21  ;;  %v704_v27 = vadd.f32 %v703_v23, %v641_v22 }
 0x139   :  { %v705_v34 = vadd.f32 %v704_v27, %v642_v24  ;;  %v573_v37 = vadd.f32 %v572_v26, %v1280_v28  ;;  %v647_v28 = vmul.f32 %v1316_v44, %v1316_v44 }
 0x13b   :  { %v706_v39 = vadd.f32 %v705_v34, %v643_v29  ;;  %v574_v40 = vadd.f32 %v1271_v25, %v573_v37  ;;  %v648_v25 = vmul.f32 %v1307_v42, %v1307_v42 }
 0x13d   :  { %v575_v45 = vadd.f32 %v574_v40, %v1298_v35  ;;  %v707_v47 = vadd.f32 %v706_v39, %v644_v38  ;;  %v649_v35 = vmul.f32 %v1334_v54, %v1334_v54 }
 0x13f   :  { %v708_v51 = vadd.f32 %v707_v47, %v645_v41  ;;  %v576_v53 = vadd.f32 %v1289_v33, %v575_v45  ;;  %v650_v33 = vmul.f32 %v1325_v52, %v1325_v52 }
 0x141   :  { %v577_v55 = vadd.f32 %v576_v53, %v1316_v44  ;;  %v709_v57 = vadd.f32 %v708_v51, %v646_v49  ;;  %v651_v44 = vmul.f32 %v1352_v0, %v1352_v0 }
 0x143   :  { %v710_v59 = vadd.f32 %v709_v57, %v647_v28  ;;  %v578_v60 = vadd.f32 %v1307_v42, %v577_v55  ;;  %v652_v42 = vmul.f32 %v1343_v62, %v1343_v62 }
 0x145   :  { %v579_v61 = vadd.f32 %v578_v60, %v1334_v54  ;;  %v711_v1 = vadd.f32 %v710_v59, %v648_v25  ;;  %v653_v54 = vmul.f32 %v1370_v10, %v1370_v10 }
 0x147   :  { %v712_v3 = vadd.f32 %v711_v1, %v649_v35  ;;  %v580_v5 = vadd.f32 %v1325_v52, %v579_v61  ;;  %v654_v52 = vmul.f32 %v1361_v8, %v1361_v8 }
 0x149   :  { %v581_v7 = vadd.f32 %v580_v5, %v1352_v0  ;;  %v713_v9 = vadd.f32 %v712_v3, %v650_v33  ;;  %v655_v0 = vmul.f32 %v1388_v20, %v1388_v20 }
 0x14b   :  { %v714_v11 = vadd.f32 %v713_v9, %v651_v44  ;;  %v582_v12 = vadd.f32 %v1343_v62, %v581_v7  ;;  %v656_v62 = vmul.f32 %v1379_v18, %v1379_v18 }
 0x14d   :  { %v583_v13 = vadd.f32 %v582_v12, %v1370_v10  ;;  %v715_v15 = vadd.f32 %v714_v11, %v652_v42  ;;  %v657_v10 = vmul.f32 %v1406_v32, %v1406_v32 }
 0x14f   :  { %v716_v21 = vadd.f32 %v715_v15, %v653_v54  ;;  %v584_v22 = vadd.f32 %v1361_v8, %v583_v13  ;;  %v658_v8 = vmul.f32 %v1397_v30, %v1397_v30 }
 0x151   :  { %v585_v23 = vadd.f32 %v584_v22, %v1388_v20  ;;  %v717_v24 = vadd.f32 %v716_v21, %v654_v52  ;;  %v659_v20 = vmul.f32 %v1424_v46, %v1424_v46 }
 0x153   :  { %v718_v26 = vadd.f32 %v717_v24, %v655_v0  ;;  %v586_v27 = vadd.f32 %v1379_v18, %v585_v23  ;;  %v660_v18 = vmul.f32 %v1415_v43, %v1415_v43 }
 0x155   :  { %v587_v29 = vadd.f32 %v586_v27, %v1406_v32  ;;  %v719_v34 = vadd.f32 %v718_v26, %v656_v62  ;;  %v661_v32 = vmul.f32 %v1442_v58, %v1442_v58 }
 0x157   :  { %v720_v37 = vadd.f32 %v719_v34, %v657_v10  ;;  %v588_v38 = vadd.f32 %v1397_v30, %v587_v29  ;;  %v662_v30 = vmul.f32 %v1433_v56, %v1433_v56 }
 0x159   :  { %v589_v39 = vadd.f32 %v588_v38, %v1424_v46  ;;  %v721_v40 = vadd.f32 %v720_v37, %v658_v8  ;;  %v663_v46 = vmul.f32 %v1460_v6, %v1460_v6 }
 0x15b   :  { %v722_v41 = vadd.f32 %v721_v40, %v659_v20  ;;  %v590_v45 = vadd.f32 %v1415_v43, %v589_v39  ;;  %v664_v43 = vmul.f32 %v1451_v4, %v1451_v4 }
 0x15d   :  { %v591_v47 = vadd.f32 %v590_v45, %v1442_v58  ;;  %v723_v49 = vadd.f32 %v722_v41, %v660_v18  ;;  %v665_v58 = vmul.f32 %v1478_v19, %v1478_v19 }
 0x15f   :  { %v724_v51 = vadd.f32 %v723_v49, %v661_v32  ;;  %v592_v53 = vadd.f32 %v1433_v56, %v591_v47  ;;  %v666_v56 = vmul.f32 %v1469_v16, %v1469_v16 }
 0x161   :  { %v593_v28 = vadd.f32 %v592_v53, %v1460_v6  ;;  %v725_v55 = vadd.f32 %v724_v51, %v662_v30  ;;  %v667_v6 = vmul.f32 %v1496_v36, %v1496_v36 }
 0x163   :  { %v726_v57 = vadd.f32 %v725_v55, %v663_v46  ;;  %v594_v25 = vadd.f32 %v1451_v4, %v593_v28  ;;  %v668_v4 = vmul.f32 %v1487_v31, %v1487_v31 }
 0x165   :  { %v595_v59 = vadd.f32 %v594_v25, %v1478_v19  ;;  %v727_v60 = vadd.f32 %v726_v57, %v664_v43  ;;  %v669_v19 = vmul.f32 %v1514_v50, %v1514_v50 }
 0x167   :  { %v728_v35 = vadd.f32 %v727_v60, %v665_v58  ;;  %v596_v61 = vadd.f32 %v1469_v16, %v595_v59  ;;  %v670_v16 = vmul.f32 %v1505_v48, %v1505_v48 }
 0x169   :  { %v597_v1 = vadd.f32 %v596_v61, %v1496_v36  ;;  %v729_v33 = vadd.f32 %v728_v35, %v666_v56  ;;  %v671_v36 = vmul.f32 %v1532_v2, %v1532_v2 }
 0x16b   :  { %v730_v3 = vadd.f32 %v729_v33, %v667_v6  ;;  %v598_v5 = vadd.f32 %v1487_v31, %v597_v1  ;;  %v672_v31 = vmul.f32 %v1523_v63, %v1523_v63 }
 0x16d   :  { %v599_v44 = vadd.f32 %v598_v5, %v1514_v50  ;;  %v731_v7 = vadd.f32 %v730_v3, %v668_v4  ;;  %v673_v50 = vmul.f32 %v1550_v17, %v1550_v17 }
 0x16f   :  { %v732_v9 = vadd.f32 %v731_v7, %v669_v19  ;;  %v600_v42 = vadd.f32 %v1505_v48, %v599_v44  ;;  %v674_v48 = vmul.f32 %v1541_v14, %v1541_v14 }
 0x171   :  { %v601_v11 = vadd.f32 %v600_v42, %v1532_v2  ;;  %v733_v12 = vadd.f32 %v732_v9, %v670_v16 }
 0x173   :  { %v734_v54 = vadd.f32 %v733_v12, %v671_v36  ;;  %v602_v13 = vadd.f32 %v1523_v63, %v601_v11 }
 0x175   :  { %v603_v15 = vadd.f32 %v602_v13, %v1550_v17  ;;  %v735_v52 = vadd.f32 %v734_v54, %v672_v31 }
 0x177   :  { %v604_v21 = vadd.f32 %v1541_v14, %v603_v15  ;;  %v736_v22 = vadd.f32 %v735_v52, %v673_v50 }
 0x179   :  { %v605_v2 = vrot.slane %v604_v21, 4  ;;  %v737_v0 = vadd.f32 %v736_v22, %v674_v48 }
 0x17b   :  { %v606_v23 = vadd.f32 %v605_v2, %v604_v21  ;;  %v738_v24 = vrot.slane %v737_v0, 4 }
 0x17d   :  { %v607_v62 = vrot.slane %v606_v23, 2  ;;  %v739_v26 = vadd.f32 %v738_v24, %v737_v0 }
 0x17f   :  { %v608_v27 = vadd.f32 %v607_v62, %v606_v23  ;;  %v740_v63 = vrot.slane %v739_v26, 2 }
 0x181   :  { %v609_v10 = vrot.slane %v608_v27, 1  ;;  %v741_v29 = vadd.f32 %v740_v63, %v739_v26 }
 0x183   :  { %v742_v34 = vrot.slane %v741_v29, 1  ;;  %v610_v17 = vadd.f32 %v609_v10, %v608_v27 }
 0x185   :  { %v743_v8 = vadd.f32 %v742_v34, %v741_v29 }
 0x187   :  { %v745_v37 = vsel %vm744_vm0, %v610_v17, %v743_v8 }
 0x188   :  { %746 = vst [vmem:[%s1661_s3] sm:$0x3] %v745_v37 }

// kernel: bottleneck_forward.7
= control target key start
LH: loop header
LB: loop body
LE: loop exit
PB: predicated region body
PF: predicated region fallthrough
CT: control target
= control target key end

     0   :  { %vm332_vm0 = vcmask 1040384   ;;  %s700_s3 = inlined_call_operand.vmem [shape: f32[128,128], index: 3, kind: input, shape index: {}]   ;;  %s701_s0 = inlined_call_operand.vmem [shape: f32[128,128], index: 0, kind: input, shape index: {}]   ;;  %s702_s1 = inlined_call_operand.vmem [shape: f32[1,128], index: 1, kind: input, shape index: {}]   ;;  %s703_s2 = inlined_call_operand.vmem [shape: f32[1,128], index: 2, kind: input, shape index: {}]   ;;  %s704_s4 = inlined_call_operand.vmem [shape: f32[128,128], index: 4, kind: output, shape index: {0}]   ;;  %s705_s5 = inlined_call_operand.vmem [shape: f32[1,2,128], index: 5, kind: output, shape index: {1}]  }
   0x1   :  { %v97_v0 = vld [vmem:[%s700_s3] sm:$0xff]  ;;  %v98_v1 = vld [vmem:[%s700_s3 + $0x8] sm:$0xff]  ;;  %v99_v2 = vld [vmem:[%s700_s3 + $0x10] sm:$0xff] }
   0x2   :  { %v433_v3 = vpack.c.bf16 %v98_v1, %v97_v0  ;;  %v100_v4 = vld [vmem:[%s700_s3 + $0x18] sm:$0xff]  ;;  %v101_v6 = vld [vmem:[%s700_s3 + $0x20] sm:$0xff]  ;;  %v102_v7 = vld [vmem:[%s700_s3 + $0x28] sm:$0xff] }
   0x3   :  { %v437_v5 = vpack.c.bf16 %v100_v4, %v99_v2  ;;  %v441_v8 = vpack.c.bf16 %v102_v7, %v101_v6  ;;  %v19_v9 = vld [vmem:[%s701_s0] sm:$0xff]  ;;  %v103_v11 = vld [vmem:[%s700_s3 + $0x30] sm:$0xff]  ;;  %v104_v12 = vld [vmem:[%s700_s3 + $0x38] sm:$0xff] }
   0x4   :  { %434 = vmatprep.subr.bf16.mxu0 %v433_v3  ;;  %465 = vmatprep.subr.bf16.mxu1 %v433_v3  ;;  %v535_v10 = vld [vmem:[%s702_s1] ss:$0 sm:$0xff]  ;;  %v445_v16 = vpack.c.bf16 %v104_v12, %v103_v11  ;;  %v106_v19 = vld [vmem:[%s700_s3 + $0x48] sm:$0xff]  ;;  %v107_v23 = vld [vmem:[%s700_s3 + $0x50] sm:$0xff] }
   0x5   :  { %436 = vmatpush3.bf16.msra.mxu0 %v433_v3  ;;  %473 = vmatpush3.bf16.msra.mxu1 %v433_v3  ;;  %v42_v13 = vmul.f32 %v535_v10, %v19_v9  ;;  %v547_v14 = vld [vmem:[%s703_s2] ss:$0 sm:$0xff]  ;;  %v108_v24 = vld [vmem:[%s700_s3 + $0x58] sm:$0xff]  ;;  %v110_v29 = vld [vmem:[%s700_s3 + $0x68] sm:$0xff] }
   0x6   :  { %438 = vmatprep.subr.bf16.mxu0 %v437_v5  ;;  %466 = vmatprep.subr.bf16.mxu1 %v437_v5  ;;  %v27_v17 = vld [vmem:[%s701_s0 + $0x40] sm:$0xff]  ;;  %v453_v27 = vpack.c.bf16 %v108_v24, %v107_v23  ;;  %v20_v30 = vld [vmem:[%s701_s0 + $0x8] sm:$0xff]  ;;  %v21_v33 = vld [vmem:[%s701_s0 + $0x10] sm:$0xff] }
   0x7   :  { %v65_v15 = vadd.f32 %v547_v14, %v42_v13  ;;  %v105_v18 = vld [vmem:[%s700_s3 + $0x40] sm:$0xff]  ;;  %v50_v21 = vmul.f32 %v535_v10, %v27_v17  ;;  %v28_v31 = vld [vmem:[%s701_s0 + $0x48] sm:$0xff]  ;;  %v29_v34 = vld [vmem:[%s701_s0 + $0x50] sm:$0xff]  ;;  %v43_v37 = vmul.f32 %v535_v10, %v20_v30  ;;  %v44_v41 = vmul.f32 %v535_v10, %v21_v33 }
   0x8   :  { %v449_v22 = vpack.c.bf16 %v106_v19, %v105_v18  ;;  %v109_v28 = vld [vmem:[%s700_s3 + $0x60] sm:$0xff]  ;;  %v111_v35 = vld [vmem:[%s700_s3 + $0x70] sm:$0xff]  ;;  %v112_v36 = vld [vmem:[%s700_s3 + $0x78] sm:$0xff]  ;;  %v51_v40 = vmul.f32 %v535_v10, %v28_v31  ;;  %v52_v42 = vmul.f32 %v535_v10, %v29_v34 }
   0x9   :  { %440 = vmatpush3.bf16.msra.mxu0 %v437_v5  ;;  %474 = vmatpush3.bf16.msra.mxu1 %v437_v5  ;;  %v81_v20 = vmax.f32 %v65_v15, 0.0  ;;  %v73_v25 = vadd.f32 %v547_v14, %v50_v21  ;;  %v457_v32 = vpack.c.bf16 %v110_v29, %v109_v28  ;;  %v22_v38 = vld [vmem:[%s701_s0 + $0x18] sm:$0xff]  ;;  %v23_v39 = vld [vmem:[%s701_s0 + $0x20] sm:$0xff]  ;;  %v461_v44 = vpack.c.bf16 %v112_v36, %v111_v35  ;;  %v24_v49 = vld [vmem:[%s701_s0 + $0x28] sm:$0xff] }
   0xa   :  { %442 = vmatprep.subr.bf16.mxu0 %v441_v8  ;;  %467 = vmatprep.subr.bf16.mxu1 %v441_v8  ;;  %v30_v43 = vld [vmem:[%s701_s0 + $0x58] sm:$0xff]  ;;  %v31_v45 = vld [vmem:[%s701_s0 + $0x60] sm:$0xff]  ;;  %v45_v46 = vmul.f32 %v535_v10, %v22_v38  ;;  %v46_v47 = vmul.f32 %v535_v10, %v23_v39  ;;  %v66_v48 = vadd.f32 %v547_v14, %v43_v37  ;;  %v25_v50 = vld [vmem:[%s701_s0 + $0x30] sm:$0xff] }
   0xb   :  { %409 = vmatprep.mubr.f32.mxu0 %v81_v20  ;;  %v89_v26 = vmax.f32 %v73_v25, 0.0  ;;  %v74_v51 = vadd.f32 %v547_v14, %v51_v40  ;;  %v53_v52 = vmul.f32 %v535_v10, %v30_v43  ;;  %v67_v53 = vadd.f32 %v547_v14, %v44_v41  ;;  %v32_v56 = vld [vmem:[%s701_s0 + $0x68] sm:$0xff]  ;;  %v33_v57 = vld [vmem:[%s701_s0 + $0x70] sm:$0xff]  ;;  %v26_v63 = vld [vmem:[%s701_s0 + $0x38] sm:$0xff] }
   0xc   :  { %v75_v54 = vadd.f32 %v547_v14, %v52_v42  ;;  %v54_v55 = vmul.f32 %v535_v10, %v31_v45  ;;  %v68_v58 = vadd.f32 %v547_v14, %v45_v46  ;;  %v69_v59 = vadd.f32 %v547_v14, %v46_v47  ;;  %v34_v7 = vld [vmem:[%s701_s0 + $0x78] sm:$0xff] }
   0xd   :  { %444 = vmatpush3.bf16.msra.mxu0 %v441_v8  ;;  %475 = vmatpush3.bf16.msra.mxu1 %v441_v8  ;;  %v47_v60 = vmul.f32 %v535_v10, %v24_v49  ;;  %v48_v61 = vmul.f32 %v535_v10, %v25_v50  ;;  %v82_v62 = vmax.f32 %v66_v48, 0.0  ;;  %v90_v0 = vmax.f32 %v74_v51, 0.0 }
   0xe   :  { %446 = vmatprep.subr.bf16.mxu0 %v445_v16  ;;  %468 = vmatprep.subr.bf16.mxu1 %v445_v16  ;;  %v76_v1 = vadd.f32 %v547_v14, %v53_v52  ;;  %v55_v2 = vmul.f32 %v535_v10, %v32_v56  ;;  %v83_v3 = vmax.f32 %v67_v53, 0.0  ;;  %v91_v4 = vmax.f32 %v75_v54, 0.0 }
   0xf   :  { %421 = vmatprep.mubr.f32.mxu1 %v89_v26  ;;  %v77_v5 = vadd.f32 %v547_v14, %v54_v55  ;;  %v56_v6 = vmul.f32 %v535_v10, %v33_v57  ;;  %v70_v8 = vadd.f32 %v547_v14, %v47_v60  ;;  %v49_v9 = vmul.f32 %v535_v10, %v26_v63 }
  0x10   :  { %v84_v11 = vmax.f32 %v68_v58, 0.0  ;;  %v92_v12 = vmax.f32 %v76_v1, 0.0  ;;  %v78_v13 = vadd.f32 %v547_v14, %v55_v2  ;;  %v57_v15 = vmul.f32 %v535_v10, %v34_v7 }
  0x11   :  { %448 = vmatpush3.bf16.msra.mxu0 %v445_v16  ;;  %476 = vmatpush3.bf16.msra.mxu1 %v445_v16  ;;  %v85_v16 = vmax.f32 %v69_v59, 0.0  ;;  %v71_v17 = vadd.f32 %v547_v14, %v48_v61  ;;  %v93_v18 = vmax.f32 %v77_v5, 0.0  ;;  %v79_v19 = vadd.f32 %v547_v14, %v56_v6 }
  0x12   :  { %450 = vmatprep.subr.bf16.mxu0 %v449_v22  ;;  %469 = vmatprep.subr.bf16.mxu1 %v449_v22  ;;  %v86_v20 = vmax.f32 %v70_v8, 0.0  ;;  %v72_v21 = vadd.f32 %v547_v14, %v49_v9  ;;  %v80_v23 = vadd.f32 %v547_v14, %v57_v15 }
  0x13   :  { %v87_v24 = vmax.f32 %v71_v17, 0.0  ;;  %v95_v10 = vmax.f32 %v79_v19, 0.0 }
  0x14   :  { %v88_v25 = vmax.f32 %v72_v21, 0.0  ;;  %v96_v26 = vmax.f32 %v80_v23, 0.0 }
  0x15   :  { %452 = vmatpush3.bf16.msra.mxu0 %v449_v22  ;;  %477 = vmatpush3.bf16.msra.mxu1 %v449_v22  ;;  %v94_v22 = vmax.f32 %v78_v13, 0.0 }
  0x16   :  { %454 = vmatprep.subr.bf16.mxu0 %v453_v27  ;;  %470 = vmatprep.subr.bf16.mxu1 %v453_v27 }
  0x19   :  { %456 = vmatpush3.bf16.msra.mxu0 %v453_v27  ;;  %478 = vmatpush3.bf16.msra.mxu1 %v453_v27 }
  0x1a   :  { %458 = vmatprep.subr.bf16.mxu0 %v457_v32  ;;  %471 = vmatprep.subr.bf16.mxu1 %v457_v32 }
  0x1d   :  { %460 = vmatpush3.bf16.msra.mxu0 %v457_v32  ;;  %479 = vmatpush3.bf16.msra.mxu1 %v457_v32 }
  0x1e   :  { %462 = vmatprep.subr.bf16.mxu0 %v461_v44  ;;  %472 = vmatprep.subr.bf16.mxu1 %v461_v44 }
  0x21   :  { %464 = vmatpush3.bf16.msra.mxu0 %v461_v44  ;;  %480 = vmatpush3.bf16.msra.mxu1 %v461_v44 }
  0x24   :  { %410 = vmatmul.mubr.f32.vlgmr.msra.gmra.mrb[0].mxu0 %v82_v62  ;;  %422 = vmatmul.mubr.f32.vlgmr.msra.gmra.mrb[0].mxu1 %v90_v0 }
  0x25   :  { %412 = vmatprep.mubr.f32.mxu0 %v83_v3  ;;  %424 = vmatprep.mubr.f32.mxu1 %v91_v4 }
  0x28   :  { %413 = vmatmul.mubr.f32.gmra.mrb[2].mxu0 %v84_v11  ;;  %425 = vmatmul.mubr.f32.gmra.mrb[2].mxu1 %v92_v12 }
  0x29   :  { %415 = vmatprep.mubr.f32.mxu0 %v85_v16  ;;  %427 = vmatprep.mubr.f32.mxu1 %v93_v18 }
  0x2c   :  { %416 = vmatmul.mubr.f32.gmra.mrb[4].mxu0 %v86_v20  ;;  %428 = vmatmul.mubr.f32.gmra.mrb[4].mxu1 %v94_v22 }
  0x2d   :  { %418 = vmatprep.mubr.f32.mxu0 %v87_v24  ;;  %430 = vmatprep.mubr.f32.mxu1 %v95_v10 }
  0x30   :  { %419 = vmatmul.mubr.f32.gmra.mrb[6].mxu0 %v88_v25  ;;  %431 = vmatmul.mubr.f32.gmra.mrb[6].mxu1 %v96_v26 }
  0xf7   :  { %v411_v27 = vpop.f32.mrb[0].mxu0  ;;  %v423_v28 = vpop.f32.mrb[0].mxu1 }
  0xf8   :  { %259 = vst [vmem:[%s704_s4 + $0x8] sm:$0xff] %v411_v27  ;;  %v296_v29 = vmul.f32 %v411_v27, %v411_v27  ;;  %v179_v14 = vpop.f32.mrb[1].mxu0  ;;  %267 = vst [vmem:[%s704_s4 + $0x48] sm:$0xff] %v423_v28  ;;  %v219_v30 = vpop.f32.mrb[1].mxu1  ;;  %v304_v2 = vmul.f32 %v423_v28, %v423_v28 }
  0xf9   :  { %258 = vst [vmem:[%s704_s4] sm:$0xff] %v179_v14  ;;  %v274_v31 = vadd.f32 %v411_v27, %v179_v14  ;;  %v295_v32 = vmul.f32 %v179_v14, %v179_v14  ;;  %266 = vst [vmem:[%s704_s4 + $0x40] sm:$0xff] %v219_v30  ;;  %v303_v63 = vmul.f32 %v219_v30, %v219_v30 }
  0xfb   :  { %v311_v33 = vadd.f32 %v296_v29, %v295_v32  ;;  %v414_v34 = vpop.f32.mrb[2].mxu0  ;;  %v426_v35 = vpop.f32.mrb[2].mxu1 }
  0xfc   :  { %261 = vst [vmem:[%s704_s4 + $0x18] sm:$0xff] %v414_v34  ;;  %v189_v36 = vpop.f32.mrb[3].mxu0  ;;  %269 = vst [vmem:[%s704_s4 + $0x58] sm:$0xff] %v426_v35  ;;  %v229_v37 = vpop.f32.mrb[3].mxu1  ;;  %v298_v40 = vmul.f32 %v414_v34, %v414_v34  ;;  %v306_v8 = vmul.f32 %v426_v35, %v426_v35 }
  0xfd   :  { %260 = vst [vmem:[%s704_s4 + $0x10] sm:$0xff] %v189_v36  ;;  %v275_v38 = vadd.f32 %v274_v31, %v189_v36  ;;  %v297_v39 = vmul.f32 %v189_v36, %v189_v36  ;;  %268 = vst [vmem:[%s704_s4 + $0x50] sm:$0xff] %v229_v37  ;;  %v305_v5 = vmul.f32 %v229_v37, %v229_v37 }
  0xff   :  { %v312_v41 = vadd.f32 %v311_v33, %v297_v39  ;;  %v417_v42 = vpop.f32.mrb[4].mxu0  ;;  %v276_v43 = vadd.f32 %v414_v34, %v275_v38  ;;  %v429_v44 = vpop.f32.mrb[4].mxu1 }
 0x100   :  { %263 = vst [vmem:[%s704_s4 + $0x28] sm:$0xff] %v417_v42  ;;  %v199_v45 = vpop.f32.mrb[5].mxu0  ;;  %271 = vst [vmem:[%s704_s4 + $0x68] sm:$0xff] %v429_v44  ;;  %v239_v46 = vpop.f32.mrb[5].mxu1  ;;  %v300_v50 = vmul.f32 %v417_v42, %v417_v42  ;;  %v308_v16 = vmul.f32 %v429_v44, %v429_v44 }
 0x101   :  { %262 = vst [vmem:[%s704_s4 + $0x20] sm:$0xff] %v199_v45  ;;  %v277_v47 = vadd.f32 %v276_v43, %v199_v45  ;;  %v299_v48 = vmul.f32 %v199_v45, %v199_v45  ;;  %v313_v49 = vadd.f32 %v312_v41, %v298_v40  ;;  %270 = vst [vmem:[%s704_s4 + $0x60] sm:$0xff] %v239_v46 }
 0x102   :  { %v307_v12 = vmul.f32 %v239_v46, %v239_v46 }
 0x103   :  { %v314_v51 = vadd.f32 %v313_v49, %v299_v48  ;;  %v420_v52 = vpop.f32.mrb[6].mxu0  ;;  %v278_v53 = vadd.f32 %v417_v42, %v277_v47  ;;  %v432_v54 = vpop.f32.mrb[6].mxu1 }
 0x104   :  { %265 = vst [vmem:[%s704_s4 + $0x38] sm:$0xff] %v420_v52  ;;  %v209_v55 = vpop.f32.mrb[7].mxu0  ;;  %273 = vst [vmem:[%s704_s4 + $0x78] sm:$0xff] %v432_v54  ;;  %v249_v56 = vpop.f32.mrb[7].mxu1  ;;  %v302_v60 = vmul.f32 %v420_v52, %v420_v52  ;;  %v310_v22 = vmul.f32 %v432_v54, %v432_v54 }
 0x105   :  { %264 = vst [vmem:[%s704_s4 + $0x30] sm:$0xff] %v209_v55  ;;  %v279_v57 = vadd.f32 %v278_v53, %v209_v55  ;;  %v301_v58 = vmul.f32 %v209_v55, %v209_v55  ;;  %v315_v59 = vadd.f32 %v314_v51, %v300_v50  ;;  %272 = vst [vmem:[%s704_s4 + $0x70] sm:$0xff] %v249_v56 }
 0x106   :  { %v309_v19 = vmul.f32 %v249_v56, %v249_v56 }
 0x107   :  { %v280_v61 = vadd.f32 %v420_v52, %v279_v57  ;;  %v316_v62 = vadd.f32 %v315_v59, %v301_v58 }
 0x109   :  { %v317_v0 = vadd.f32 %v316_v62, %v302_v60  ;;  %v281_v1 = vadd.f32 %v280_v61, %v219_v30 }
 0x10b   :  { %v318_v3 = vadd.f32 %v317_v0, %v303_v63  ;;  %v282_v4 = vadd.f32 %v423_v28, %v281_v1 }
 0x10d   :  { %v283_v6 = vadd.f32 %v282_v4, %v229_v37  ;;  %v319_v7 = vadd.f32 %v318_v3, %v304_v2 }
 0x10f   :  { %v320_v9 = vadd.f32 %v319_v7, %v305_v5  ;;  %v284_v11 = vadd.f32 %v426_v35, %v283_v6 }
 0x111   :  { %v285_v13 = vadd.f32 %v284_v11, %v239_v46  ;;  %v321_v15 = vadd.f32 %v320_v9, %v306_v8 }
 0x113   :  { %v322_v17 = vadd.f32 %v321_v15, %v307_v12  ;;  %v286_v18 = vadd.f32 %v429_v44, %v285_v13 }
 0x115   :  { %v287_v20 = vadd.f32 %v286_v18, %v249_v56  ;;  %v323_v21 = vadd.f32 %v322_v17, %v308_v16 }
 0x117   :  { %v288_v23 = vadd.f32 %v432_v54, %v287_v20  ;;  %v324_v24 = vadd.f32 %v323_v21, %v309_v19 }
 0x119   :  { %v289_v10 = vrot.slane %v288_v23, 4  ;;  %v325_v25 = vadd.f32 %v324_v24, %v310_v22 }
 0x11b   :  { %v290_v26 = vadd.f32 %v289_v10, %v288_v23  ;;  %v326_v27 = vrot.slane %v325_v25, 4 }
 0x11d   :  { %v291_v28 = vrot.slane %v290_v26, 2  ;;  %v327_v29 = vadd.f32 %v326_v27, %v325_v25 }
 0x11f   :  { %v292_v14 = vadd.f32 %v291_v28, %v290_v26  ;;  %v328_v30 = vrot.slane %v327_v29, 2 }
 0x121   :  { %v293_v31 = vrot.slane %v292_v14, 1  ;;  %v329_v32 = vadd.f32 %v328_v30, %v327_v29 }
 0x123   :  { %v330_v33 = vrot.slane %v329_v32, 1  ;;  %v294_v34 = vadd.f32 %v293_v31, %v292_v14 }
 0x125   :  { %v331_v35 = vadd.f32 %v330_v33, %v329_v32 }
 0x127   :  { %v333_v36 = vsel %vm332_vm0, %v294_v34, %v331_v35 }
 0x128   :  { %334 = vst [vmem:[%s705_s5] sm:$0x3] %v333_v36 }

// kernel: bottleneck_forward.6
= control target key start
LH: loop header
LB: loop body
LE: loop exit
PB: predicated region body
PF: predicated region fallthrough
CT: control target
= control target key end

     0   :  { %s3925_s18 = smov 0   ;;  %s3927_s19 = smov 0   ;;  %s4960_s0 = inlined_call_operand.vmem [shape: f32[2,9,9,512], index: 0, kind: input, shape index: {}]   ;;  %s4961_s1 = inlined_call_operand.vmem [shape: f32[1,128], index: 1, kind: input, shape index: {}]   ;;  %s4962_s2 = inlined_call_operand.vmem [shape: f32[1,128], index: 2, kind: input, shape index: {}]   ;;  %s4963_s3 = inlined_call_operand.vmem [shape: f32[3,3,128,128], index: 3, kind: input, shape index: {}]   ;;  %s4964_s4 = inlined_call_operand.vmem [shape: f32[2,8,8,128], index: 4, kind: output, shape index: {0}]   ;;  %s4965_s5 = inlined_call_operand.vmem [shape: f32[2,1,2,128], index: 5, kind: output, shape index: {1}]  }
   0x1   :  { %s3929_s20 = smov 0  }
   0x2 LB: > { %s28_s21 = sadd.s32 1, %s3888_s19  ;;  %p2623_p0 = scmp.ge.s32.totalorder %s3892_s20, 1  ;;  %s3892_s20 = sphi %s3929_s20, %s16_s20   ;;  %s3888_s19 = sphi %s3927_s19, %s4973_s19   ;;  %s3884_s18 = sphi %s3925_s18, %s4972_s18  }
   0x3   : > { %p30_p1 = scmp.ge.s32.totalorder %s28_s21, 2  ;;  %p206_p2 = scmp.lt.s32.totalorder %s3892_s20, 3 }
   0x5   : > { %s4975_s21 = smov (%p30_p1, %s28_s21), 0  ;;  %p207_p3 = pnand %p2623_p0, %p206_p2 }
   0x6   : > { %v2630_v0 = vld [vmem:[%s4963_s3 + $0x80] sm:$0xff] (!%p207_p3)  ;;  %v2631_v1 = vld [vmem:[%s4963_s3 + $0x88] sm:$0xff] (!%p207_p3)  ;;  %p245_p4 = scmp.lt.s32.totalorder (!%p207_p3), %s3884_s18, 1  ;;  %v270_v3 = vlaneseq (!%p207_p3)  ;;  %v2632_v6 = vld [vmem:[%s4963_s3 + $0x90] sm:$0xff] (!%p207_p3)  ;;  %v3894_v8 = vmov (!%p207_p3), 0.0   ;;  %vm835_vm5 = vcmask (!%p207_p3), 1046528  }
   0x7   : > { %210 = sbr.rel (%p207_p3) target bundleno = 417 (0x1a1), region = 36  ;;  %v2707_v2 = vld [vmem:[%s4963_s3 + $0x200] sm:$0xff] (!%p207_p3)  ;;  %v3474_v4 = vpack.c.bf16 (!%p207_p3), %v2631_v1, %v2630_v0  ;;  %v2708_v5 = vld [vmem:[%s4963_s3 + $0x208] sm:$0xff] (!%p207_p3)  ;;  %v2633_v7 = vld [vmem:[%s4963_s3 + $0x98] sm:$0xff] (!%p207_p3)  ;;  %3110 = vmatprep.mubr.f32.mxu1 (!%p207_p3), %v3894_v8  ;;  %vm2488_vm10 = vcmask (!%p207_p3), 1040384  }
   0x8   : > { %v3602_v9 = vpack.c.bf16 (!%p207_p3), %v2708_v5, %v2707_v2  ;;  %v3478_v10 = vpack.c.bf16 (!%p207_p3), %v2633_v7, %v2632_v6  ;;  %v2709_v11 = vld [vmem:[%s4963_s3 + $0x210] sm:$0xff] (!%p207_p3)  ;;  %v2710_v12 = vld [vmem:[%s4963_s3 + $0x218] sm:$0xff] (!%p207_p3)  ;;  %v2634_v13 = vld [vmem:[%s4963_s3 + $0xa0] sm:$0xff] (!%p207_p3)  ;;  %v271_v14 = vshrl.u32 (!%p207_p3), %v270_v3, 7 }
   0x9   : > { %3475 = vmatprep.subr.bf16.mxu1 (!%p207_p3), %v3474_v4  ;;  %v3606_v15 = vpack.c.bf16 (!%p207_p3), %v2710_v12, %v2709_v11  ;;  %v2635_v16 = vld [vmem:[%s4963_s3 + $0xa8] sm:$0xff] (!%p207_p3)  ;;  %v2711_v17 = vld [vmem:[%s4963_s3 + $0x220] sm:$0xff] (!%p207_p3)  ;;  %v2636_v22 = vld [vmem:[%s4963_s3 + $0xb0] sm:$0xff] (!%p207_p3) }
   0xa   : > { %v2712_v18 = vld [vmem:[%s4963_s3 + $0x228] sm:$0xff] (!%p207_p3)  ;;  %3603 = vmatprep.subr.bf16.mxu0 (!%p207_p3), %v3602_v9  ;;  %3477 = vmatpush3.bf16.msra.mxu1 (!%p207_p3), %v3474_v4  ;;  %v3482_v19 = vpack.c.bf16 (!%p207_p3), %v2635_v16, %v2634_v13  ;;  %v3983_v20 = vmul.u32 (!%p207_p3), 2, %v271_v14  ;;  %v2637_v23 = vld [vmem:[%s4963_s3 + $0xb8] sm:$0xff] (!%p207_p3)  ;;  %v2713_v24 = vld [vmem:[%s4963_s3 + $0x230] sm:$0xff] (!%p207_p3) }
   0xb   : > { %3605 = vmatpush3.bf16.msra.mxu0 (!%p207_p3), %v3602_v9  ;;  %3479 = vmatprep.subr.bf16.mxu1 (!%p207_p3), %v3478_v10  ;;  %v3610_v21 = vpack.c.bf16 (!%p207_p3), %v2712_v18, %v2711_v17  ;;  %v2714_v25 = vld [vmem:[%s4963_s3 + $0x238] sm:$0xff] (!%p207_p3)  ;;  %v3486_v26 = vpack.c.bf16 (!%p207_p3), %v2637_v23, %v2636_v22  ;;  %v2638_v29 = vld [vmem:[%s4963_s3 + $0xc0] sm:$0xff] (!%p207_p3)  ;;  %v2639_v30 = vld [vmem:[%s4963_s3 + $0xc8] sm:$0xff] (!%p207_p3) }
   0xc   : > { %3607 = vmatprep.subr.bf16.mxu0 (!%p207_p3), %v3606_v15  ;;  %v450_v27 = vadd.s32 (!%p207_p3), 1, %v3983_v20  ;;  %v3614_v28 = vpack.c.bf16 (!%p207_p3), %v2714_v25, %v2713_v24  ;;  %v2715_v31 = vld [vmem:[%s4963_s3 + $0x240] sm:$0xff] (!%p207_p3)  ;;  %v2716_v32 = vld [vmem:[%s4963_s3 + $0x248] sm:$0xff] (!%p207_p3)  ;;  %v3490_v36 = vpack.c.bf16 (!%p207_p3), %v2639_v30, %v2638_v29  ;;  %v2640_v39 = vld [vmem:[%s4963_s3 + $0xd0] sm:$0xff] (!%p207_p3)  ;;  %vm360_vm7 = vcmp.ge.s32.totalorder (!%p207_p3), %v3983_v20, 1 }
   0xd   : > { %v4018_v33 = vld [vmem:[%s4961_s1] ss:$0 sm:$0xff] (!%p207_p3)  ;;  %v3618_v38 = vpack.c.bf16 (!%p207_p3), %v2716_v32, %v2715_v31  ;;  %v2641_v40 = vld [vmem:[%s4963_s3 + $0xd8] sm:$0xff] (!%p207_p3)  ;;  %v2717_v41 = vld [vmem:[%s4963_s3 + $0x250] sm:$0xff] (!%p207_p3)  ;;  %vm369_vm8 = vcmp.le.s32.totalorder (!%p207_p3), %v3983_v20, 16 }
   0xe   : > { %s4977_s18 = smov (!%p245_p4, %s3884_s18), 1  ;;  %3481 = vmatpush3.bf16.msra.mxu1 %v3478_v10  ;;  %v4023_v34 = vld [vmem:[%s4962_s2] ss:$0 sm:$0xff]  ;;  %vm451_vm0 = vcmp.ge.s32.totalorder %v450_v27, 1  ;;  %vm460_vm1 = vcmp.le.s32.totalorder %v450_v27, 16  ;;  %v2718_v42 = vld [vmem:[%s4963_s3 + $0x258] sm:$0xff]  ;;  %v3494_v45 = vpack.c.bf16 %v2641_v40, %v2640_v39  ;;  %vm4369_vm9 = vmand %vm360_vm7, %vm369_vm8 }
   0xf   : > { %s3842_s25 = smul.u32 576, %s4977_s18  ;;  %3609 = vmatpush3.bf16.msra.mxu0 %v3606_v15  ;;  %3483 = vmatprep.subr.bf16.mxu1 %v3482_v19  ;;  %vm4040_vm2 = vmand %vm451_vm0, %vm460_vm1  ;;  %v3622_v47 = vpack.c.bf16 %v2718_v42, %v2717_v41  ;;  %v2642_v48 = vld [vmem:[%s4963_s3 + $0xe0] sm:$0xff]  ;;  %v2643_v49 = vld [vmem:[%s4963_s3 + $0xe8] sm:$0xff]  ;;  %s2627_s23 = sshll.u32 %s4977_s18, 1 }
  0x10   : > { %3611 = vmatprep.subr.bf16.mxu0 %v3610_v21  ;;  %v2719_v50 = vld [vmem:[%s4963_s3 + $0x260] sm:$0xff]  ;;  %v2720_v51 = vld [vmem:[%s4963_s3 + $0x268] sm:$0xff]  ;;  %v3498_v53 = vpack.c.bf16 %v2643_v49, %v2642_v48  ;;  %v2644_v54 = vld [vmem:[%s4963_s3 + $0xf0] sm:$0xff]  ;;  %s266_s26 = scalar_lea.vmem %s4965_s5, %s2627_s23 }
  0x11   : > { %s4000_s11 = scalar_lea.vmem %s4960_s0, %s3842_s25  ;;  %v3626_v56 = vpack.c.bf16 %v2720_v51, %v2719_v50  ;;  %v2645_v57 = vld [vmem:[%s4963_s3 + $0xf8] sm:$0xff]  ;;  %v2721_v60 = vld [vmem:[%s4963_s3 + $0x270] sm:$0xff]  ;;  %v402_v6 = vld [vmem:[%s4963_s3] sm:$0xff] }
  0x12   : > { %3485 = vmatpush3.bf16.msra.mxu1 %v3482_v19  ;;  %v1240_v35 = vld [vmem:[%s4000_s11 + $0x18] sm:$0xff]  ;;  %v419_v52 = vld [vmem:[%s4000_s11 + $0x48] sm:$0xff]  ;;  %v3502_v1 = vpack.c.bf16 %v2645_v57, %v2644_v54  ;;  %v2731_v9 = vld [vmem:[%s4963_s3 + $0x280] sm:$0xff] }
  0x13   : > { %3613 = vmatpush3.bf16.msra.mxu0 %v3610_v21  ;;  %3487 = vmatprep.subr.bf16.mxu1 %v3486_v26  ;;  %v1248_v37 = vmul.f32 %v4018_v33, %v1240_v35  ;;  %v1241_v55 = vld [vmem:[%s4000_s11 + $0x58] sm:$0xff]  ;;  %v420_v58 = vld [vmem:[%s4000_s11 + $0x88] sm:$0xff]  ;;  %v427_v62 = vmul.f32 %v4018_v33, %v419_v52  ;;  %v404_v21 = vld [vmem:[%s4963_s3 + $0x10] sm:$0xff] }
  0x14   : > { %3615 = vmatprep.subr.bf16.mxu0 %v3614_v28  ;;  %v1242_v59 = vld [vmem:[%s4000_s11 + $0x98] sm:$0xff]  ;;  %v421_v63 = vld [vmem:[%s4000_s11 + $0xc8] sm:$0xff]  ;;  %v1249_v0 = vmul.f32 %v4018_v33, %v1241_v55  ;;  %v428_v2 = vmul.f32 %v4018_v33, %v420_v58  ;;  %v1442_v24 = vld [vmem:[%s4000_s11 + $0x10] sm:$0xfe] }
  0x15   : > { %v1256_v43 = vadd.f32 %v4023_v34, %v1248_v37  ;;  %v2722_v61 = vld [vmem:[%s4963_s3 + $0x278] sm:$0xff]  ;;  %v1250_v3 = vmul.f32 %v4018_v33, %v1242_v59  ;;  %v403_v7 = vld [vmem:[%s4963_s3 + $0x8] sm:$0xff]  ;;  %v429_v10 = vmul.f32 %v4018_v33, %v421_v63  ;;  %v435_v12 = vadd.f32 %v4023_v34, %v427_v62  ;;  %v1443_v25 = vld [vmem:[%s4000_s11 + $0x30] sm:$0x1] }
  0x16   : > { %3489 = vmatpush3.bf16.msra.mxu1 %v3486_v26  ;;  %v1243_v4 = vld [vmem:[%s4000_s11 + $0xd8] sm:$0xff]  ;;  %v3630_v5 = vpack.c.bf16 %v2722_v61, %v2721_v60  ;;  %v2732_v11 = vld [vmem:[%s4963_s3 + $0x288] sm:$0xff]  ;;  %v1257_v15 = vadd.f32 %v4023_v34, %v1249_v0  ;;  %v3506_v19 = vpack.c.bf16 %v403_v7, %v402_v6  ;;  %v436_v22 = vadd.f32 %v4023_v34, %v428_v2  ;;  %v406_v51 = vld [vmem:[%s4963_s3 + $0x20] sm:$0xff] }
  0x17   : > { %3617 = vmatpush3.bf16.msra.mxu0 %v3614_v28  ;;  %3491 = vmatprep.subr.bf16.mxu1 %v3490_v36  ;;  %v1264_v46 = vmax.f32 %v1256_v43, 0.0  ;;  %v422_v13 = vld [vmem:[%s4000_s11 + $0x108] sm:$0xff]  ;;  %v1244_v14 = vld [vmem:[%s4000_s11 + $0x118] sm:$0xff]  ;;  %v1251_v16 = vmul.f32 %v4018_v33, %v1243_v4  ;;  %v4105_v23 = vadd.f32 %v4023_v34, %v1250_v3  ;;  %v3634_v26 = vpack.c.bf16 %v2732_v11, %v2731_v9  ;;  %v2733_v28 = vld [vmem:[%s4963_s3 + $0x290] sm:$0xff] }
  0x18   : > { %3619 = vmatprep.subr.bf16.mxu0 %v3618_v38  ;;  %v423_v17 = vld [vmem:[%s4000_s11 + $0x148] sm:$0xff]  ;;  %v1245_v18 = vld [vmem:[%s4000_s11 + $0x158] sm:$0xff]  ;;  %v437_v30 = vadd.f32 %v4023_v34, %v429_v10  ;;  %v430_v31 = vmul.f32 %v4018_v33, %v422_v13  ;;  %v1252_v32 = vmul.f32 %v4018_v33, %v1244_v14  ;;  %v443_v35 = vmax.f32 %v435_v12, 0.0  ;;  %v2735_v57 = vld [vmem:[%s4963_s3 + $0x2a0] sm:$0xff] }
  0x19   : > { %3286 = vmatprep.mubr.msk.f32.mxu0 %vm4040_vm2, %v1264_v46  ;;  %v405_v27 = vld [vmem:[%s4963_s3 + $0x18] sm:$0xff]  ;;  %v1253_v37 = vmul.f32 %v4018_v33, %v1245_v18  ;;  %v1265_v39 = vmax.f32 %v1257_v15, 0.0  ;;  %v1259_v40 = vadd.f32 %v4023_v34, %v1251_v16  ;;  %v425_v42 = vld [vmem:[%s4000_s11 + $0x1c8] sm:$0xff]  ;;  %v1458_v43 = vmul.f32 %v4018_v33, %v1442_v24  ;;  %v2737_v11 = vld [vmem:[%s4963_s3 + $0x2b0] sm:$0xff] }
  0x1a   : > { %3493 = vmatpush3.bf16.msra.mxu1 %v3490_v36  ;;  %v2734_v29 = vld [vmem:[%s4963_s3 + $0x298] sm:$0xff]  ;;  %v431_v36 = vmul.f32 %v4018_v33, %v423_v17  ;;  %v3510_v46 = vpack.c.bf16 %v405_v27, %v404_v21  ;;  %v444_v48 = vmax.f32 %v436_v22, 0.0  ;;  %v1266_v49 = vmax.f32 %v4105_v23, 0.0  ;;  %v407_v52 = vld [vmem:[%s4963_s3 + $0x28] sm:$0xff]  ;;  %v410_v24 = vld [vmem:[%s4963_s3 + $0x40] sm:$0xff] }
  0x1b   : > { %3621 = vmatpush3.bf16.msra.mxu0 %v3618_v38  ;;  %3495 = vmatprep.subr.bf16.mxu1 %v3494_v45  ;;  %v424_v38 = vld [vmem:[%s4000_s11 + $0x188] sm:$0xff]  ;;  %v1246_v41 = vld [vmem:[%s4000_s11 + $0x198] sm:$0xff]  ;;  %v438_v54 = vadd.f32 %v4023_v34, %v430_v31  ;;  %v1260_v55 = vadd.f32 %v4023_v34, %v1252_v32  ;;  %v1261_v60 = vadd.f32 %v4023_v34, %v1253_v37  ;;  %v1267_v63 = vmax.f32 %v1259_v40, 0.0  ;;  %v1444_v27 = vld [vmem:[%s4000_s11 + $0x50] sm:$0xfe] }
  0x1c   : > { %3623 = vmatprep.subr.bf16.mxu0 %v3622_v47  ;;  %v1247_v50 = vld [vmem:[%s4000_s11 + $0x1d8] sm:$0xff]  ;;  %v2736_v58 = vld [vmem:[%s4963_s3 + $0x2a8] sm:$0xff]  ;;  %v439_v59 = vadd.f32 %v4023_v34, %v431_v36  ;;  %v1254_v61 = vmul.f32 %v4018_v33, %v1246_v41  ;;  %v433_v62 = vmul.f32 %v4018_v33, %v425_v42  ;;  %v3514_v3 = vpack.c.bf16 %v407_v52, %v406_v51  ;;  %v1445_v32 = vld [vmem:[%s4000_s11 + $0x70] sm:$0x1] }
  0x1d   : > { %v1255_v0 = vmul.f32 %v4018_v33, %v1247_v50  ;;  %v3642_v4 = vpack.c.bf16 %v2736_v58, %v2735_v57  ;;  %v409_v6 = vld [vmem:[%s4963_s3 + $0x38] sm:$0xff]  ;;  %v446_v7 = vmax.f32 %v438_v54, 0.0  ;;  %v784_v10 = vadd.s32 2, %v3983_v20  ;;  %v2744_v50 = vld [vmem:[%s4963_s3 + $0x2e8] sm:$0xff]  ;;  %v1446_v52 = vld [vmem:[%s4000_s11 + $0x90] sm:$0xfe] }
  0x1e   : > { %3497 = vmatpush3.bf16.msra.mxu1 %v3494_v45  ;;  %v1459_v45 = vmul.f32 %v4018_v33, %v1443_v25  ;;  %v2738_v12 = vld [vmem:[%s4963_s3 + $0x2b8] sm:$0xff]  ;;  %v1268_v13 = vmax.f32 %v1260_v55, 0.0  ;;  %v447_v14 = vmax.f32 %v439_v59, 0.0  ;;  %v1262_v15 = vadd.f32 %v4023_v34, %v1254_v61  ;;  %v411_v25 = vld [vmem:[%s4963_s3 + $0x48] sm:$0xff]  ;;  %v1448_v57 = vld [vmem:[%s4000_s11 + $0xd0] sm:$0xfe] }
  0x1f   : > { %3625 = vmatpush3.bf16.msra.mxu0 %v3622_v47  ;;  %3499 = vmatprep.subr.bf16.mxu1 %v3498_v53  ;;  %v3638_v47 = vpack.c.bf16 %v2734_v29, %v2733_v28  ;;  %v441_v16 = vadd.f32 %v4023_v34, %v433_v62  ;;  %v1269_v17 = vmax.f32 %v1261_v60, 0.0  ;;  %v1263_v18 = vadd.f32 %v4023_v34, %v1255_v0  ;;  %v2739_v28 = vld [vmem:[%s4963_s3 + $0x2c0] sm:$0xff]  ;;  %v2740_v29 = vld [vmem:[%s4963_s3 + $0x2c8] sm:$0xff]  ;;  %v413_v42 = vld [vmem:[%s4963_s3 + $0x58] sm:$0xff] }
  0x20   : > { %3627 = vmatprep.subr.bf16.mxu0 %v3626_v56  ;;  %v1475_v2 = vadd.f32 %v4023_v34, %v1459_v45  ;;  %v3646_v23 = vpack.c.bf16 %v2738_v12, %v2737_v11  ;;  %vm785_vm3 = vcmp.ge.s32.totalorder %v784_v10, 1  ;;  %vm794_vm4 = vcmp.le.s32.totalorder %v784_v10, 16  ;;  %v2742_v45 = vld [vmem:[%s4963_s3 + $0x2d8] sm:$0xff]  ;;  %v1449_v58 = vld [vmem:[%s4000_s11 + $0xf0] sm:$0x1]  ;;  %v276_v62 = vld [vmem:[%s4000_s11 + $0x40] sm:$0xff] }
  0x21   : > { %v449_v31 = vmax.f32 %v441_v16, 0.0  ;;  %v1460_v40 = vmul.f32 %v4018_v33, %v1444_v27  ;;  %v3650_v41 = vpack.c.bf16 %v2740_v29, %v2739_v28  ;;  %vm4238_vm6 = vmand %vm785_vm3, %vm794_vm4  ;;  %v417_v54 = vld [vmem:[%s4963_s3 + $0x78] sm:$0xff]  ;;  %v2745_v60 = vld [vmem:[%s4963_s3 + $0x2f0] sm:$0xff]  ;;  %v1464_v11 = vmul.f32 %v4018_v33, %v1448_v57 }
  0x22   : > { %3501 = vmatpush3.bf16.msra.mxu1 %v3498_v53  ;;  %v445_v53 = vmax.f32 %v437_v30, 0.0  ;;  %v1491_v21 = vmax.f32 %v1475_v2, 0.0  ;;  %v1270_v30 = vmax.f32 %v1262_v15, 0.0  ;;  %v2746_v61 = vld [vmem:[%s4963_s3 + $0x2f8] sm:$0xff]  ;;  %v2661_v2 = vld [vmem:[%s4963_s3 + $0x108] sm:$0xff]  ;;  %v1465_v12 = vmul.f32 %v4018_v33, %v1449_v58  ;;  %v2664_v29 = vld [vmem:[%s4963_s3 + $0x120] sm:$0xff] }
  0x23   : > { %3629 = vmatpush3.bf16.msra.mxu0 %v3626_v56  ;;  %3503 = vmatprep.subr.bf16.mxu1 %v3502_v1  ;;  %v432_v56 = vmul.f32 %v4018_v33, %v424_v38  ;;  %v3522_v38 = vpack.c.bf16 %v411_v25, %v410_v24  ;;  %v290_v15 = vmul.f32 %v4018_v33, %v276_v62  ;;  %v2663_v16 = vld [vmem:[%s4963_s3 + $0x118] sm:$0xff]  ;;  %v1451_v25 = vld [vmem:[%s4000_s11 + $0x130] sm:$0x1]  ;;  %v1456_v57 = vld [vmem:[%s4000_s11 + $0x1d0] sm:$0xfe] }
  0x24   : > { %3631 = vmatprep.subr.bf16.mxu0 %v3630_v5  ;;  %v1555_v37 = vrot.slane %v1491_v21, 1  ;;  %v4297_v21 = vpack.c.bf16 %v2746_v61, %v2745_v60  ;;  %v2766_v24 = vld [vmem:[%s4963_s3 + $0x318] sm:$0xff]  ;;  %v1457_v58 = vld [vmem:[%s4000_s11 + $0x1f0] sm:$0x1]  ;;  %v279_v62 = vld [vmem:[%s4000_s11 + $0x100] sm:$0xff] }
  0x25   : > { %v440_v9 = vadd.f32 %v4023_v34, %v432_v56  ;;  %v1447_v56 = vld [vmem:[%s4000_s11 + $0xb0] sm:$0x1] }
  0x26   : > { %3505 = vmatpush3.bf16.msra.mxu1 %v3502_v1  ;;  %v1474_v1 = vadd.f32 %v4023_v34, %v1458_v43  ;;  %v2741_v43 = vld [vmem:[%s4963_s3 + $0x2d0] sm:$0xff]  ;;  %v1463_v10 = vmul.f32 %v4018_v33, %v1447_v56 }
  0x27   : > { %3633 = vmatpush3.bf16.msra.mxu0 %v3630_v5  ;;  %3507 = vmatprep.subr.bf16.mxu1 %v3506_v19  ;;  %v408_v5 = vld [vmem:[%s4963_s3 + $0x30] sm:$0xff]  ;;  %v3654_v0 = vpack.c.bf16 %v2742_v45, %v2741_v43  ;;  %v1467_v43 = vmul.f32 %v4018_v33, %v1451_v25 }
  0x28   : > { %3635 = vmatprep.subr.bf16.mxu0 %v3634_v26  ;;  %v3518_v22 = vpack.c.bf16 %v409_v6, %v408_v5  ;;  %v1462_v5 = vmul.f32 %v4018_v33, %v1446_v52  ;;  %v2764_v6 = vld [vmem:[%s4963_s3 + $0x308] sm:$0xff]  ;;  %v1455_v52 = vld [vmem:[%s4000_s11 + $0x1b0] sm:$0x1] }
  0x29   : > { %3111 = vmatmul.mubr.msk.f32.vlgmr.msra.gmra.mrb[0].mxu1 %vm4040_vm2, %v443_v35  ;;  %v1271_v35 = vmax.f32 %v1263_v18, 0.0  ;;  %v1450_v18 = vld [vmem:[%s4000_s11 + $0x110] sm:$0xfe] }
  0x2a   : > { %3509 = vmatpush3.bf16.msra.mxu1 %v3506_v19  ;;  %3287 = vmatmul.mubr.msk.f32.vlgmr.msra.gmra.mrb[0].mxu0 %vm4040_vm2, %v1265_v39  ;;  %v1490_v19 = vmax.f32 %v1474_v1, 0.0  ;;  %v412_v39 = vld [vmem:[%s4963_s3 + $0x50] sm:$0xff]  ;;  %v2660_v1 = vld [vmem:[%s4963_s3 + $0x100] sm:$0xff] }
  0x2b   : > { %3637 = vmatpush3.bf16.msra.mxu0 %v3634_v26  ;;  %3511 = vmatprep.subr.bf16.mxu1 %v3510_v46  ;;  %v448_v26 = vmax.f32 %v440_v9, 0.0  ;;  %v3526_v59 = vpack.c.bf16 %v413_v42, %v412_v39  ;;  %v277_v9 = vld [vmem:[%s4000_s11 + $0x80] sm:$0xff]  ;;  %v1481_v39 = vadd.f32 %v4023_v34, %v1465_v12 }
  0x2c   : > { %3639 = vmatprep.subr.bf16.mxu0 %v3638_v47  ;;  %3113 = vmatprep.mubr.msk.f32.mxu1 %vm4040_vm2, %v444_v48  ;;  %v1554_v36 = vrot.slane %v1490_v19, 1  ;;  %v415_v48 = vld [vmem:[%s4963_s3 + $0x68] sm:$0xff] }
  0x2d   : > { %3289 = vmatprep.mubr.msk.f32.mxu0 %vm4040_vm2, %v1266_v49  ;;  %3114 = vmatmul.mubr.msk.f32.gmra.mrb[2].mxu1 %vm4040_vm2, %v445_v53  ;;  %v2743_v49 = vld [vmem:[%s4963_s3 + $0x2e0] sm:$0xff]  ;;  %v416_v53 = vld [vmem:[%s4963_s3 + $0x70] sm:$0xff]  ;;  %v1497_v61 = vmax.f32 %v1481_v39, 0.0 }
  0x2e   : > { %3513 = vmatpush3.bf16.msra.mxu1 %v3510_v46  ;;  %3290 = vmatmul.mubr.msk.f32.gmra.mrb[2].mxu0 %vm4040_vm2, %v1267_v63  ;;  %v1461_v46 = vmul.f32 %v4018_v33, %v1445_v32  ;;  %v1556_v55 = vsel %vm835_vm5, %v1554_v36, %v1555_v37  ;;  %v1476_v63 = vadd.f32 %v4023_v34, %v1460_v40  ;;  %v278_v37 = vld [vmem:[%s4000_s11 + $0xc0] sm:$0xff] }
  0x2f   : > { %3641 = vmatpush3.bf16.msra.mxu0 %v3638_v47  ;;  %3515 = vmatprep.subr.bf16.mxu1 %v3514_v3  ;;  %v414_v47 = vld [vmem:[%s4963_s3 + $0x60] sm:$0xff]  ;;  %v4295_v19 = vpack.c.bf16 %v417_v54, %v416_v53  ;;  %v1478_v32 = vadd.f32 %v4023_v34, %v1462_v5  ;;  %v1479_v36 = vadd.f32 %v4023_v34, %v1463_v10 }
  0x30   : > { %3643 = vmatprep.subr.bf16.mxu0 %v3642_v4  ;;  %3116 = vmatprep.mubr.msk.f32.mxu1 %vm4040_vm2, %v446_v7  ;;  %v2662_v7 = vld [vmem:[%s4963_s3 + $0x110] sm:$0xff]  ;;  %v1466_v40 = vmul.f32 %v4018_v33, %v1450_v18  ;;  %v292_v56 = vmul.f32 %v4018_v33, %v278_v37  ;;  %v281_v18 = vld [vmem:[%s4000_s11 + $0x180] sm:$0xff] }
  0x31   : > { %3292 = vmatprep.mubr.msk.f32.mxu0 %vm4040_vm2, %v1268_v13  ;;  %3117 = vmatmul.mubr.msk.f32.gmra.mrb[4].mxu1 %vm4040_vm2, %v447_v14  ;;  %v3530_v13 = vpack.c.bf16 %v415_v48, %v414_v47  ;;  %v3658_v14 = vpack.c.bf16 %v2744_v50, %v2743_v49  ;;  %v4327_v42 = vpack.c.bf16 %v2663_v16, %v2662_v7  ;;  %v1454_v50 = vld [vmem:[%s4000_s11 + $0x190] sm:$0xfe]  ;;  %v1564_v16 = vrot.slane %v1497_v61, 1 }
  0x32   : > { %3517 = vmatpush3.bf16.msra.mxu1 %v3514_v3  ;;  %3293 = vmatmul.mubr.msk.f32.gmra.mrb[4].mxu0 %vm4040_vm2, %v1269_v17  ;;  %v2763_v3 = vld [vmem:[%s4963_s3 + $0x300] sm:$0xff]  ;;  %v2765_v17 = vld [vmem:[%s4963_s3 + $0x310] sm:$0xff]  ;;  %v1472_v7 = vmul.f32 %v4018_v33, %v1456_v57  ;;  %v4359_v12 = vadd.f32 %v4023_v34, %v292_v56  ;;  %v4389_v37 = vmul.f32 %v4018_v33, %v281_v18 }
  0x33   : > { %3645 = vmatpush3.bf16.msra.mxu0 %v3642_v4  ;;  %3519 = vmatprep.subr.bf16.mxu1 %v3518_v22  ;;  %v1477_v4 = vadd.f32 %v4023_v34, %v1461_v46  ;;  %v4308_v27 = vpack.c.bf16 %v2764_v6, %v2763_v3  ;;  %v4331_v47 = vpack.c.bf16 %v2766_v24, %v2765_v17  ;;  %v2769_v61 = vld [vmem:[%s4963_s3 + $0x330] sm:$0xff] }
  0x34   : > { %3647 = vmatprep.subr.bf16.mxu0 %v3646_v23  ;;  %3119 = vmatprep.mubr.msk.f32.mxu1 %vm4040_vm2, %v448_v26  ;;  %v1452_v26 = vld [vmem:[%s4000_s11 + $0x150] sm:$0xfe]  ;;  %v1470_v3 = vmul.f32 %v4018_v33, %v1454_v50  ;;  %v1488_v20 = vadd.f32 %v4023_v34, %v1472_v7 }
  0x35   : > { %3295 = vmatprep.mubr.msk.f32.mxu0 %vm4040_vm2, %v1270_v30  ;;  %3120 = vmatmul.mubr.msk.f32.gmra.mrb[6].mxu1 %vm4040_vm2, %v449_v31  ;;  %v1493_v28 = vmax.f32 %v1477_v4, 0.0  ;;  %v2665_v30 = vld [vmem:[%s4963_s3 + $0x128] sm:$0xff]  ;;  %v291_v31 = vmul.f32 %v4018_v33, %v277_v9  ;;  %v1468_v45 = vmul.f32 %v4018_v33, %v1452_v26  ;;  %v1471_v4 = vmul.f32 %v4018_v33, %v1455_v52  ;;  %v2670_v18 = vld [vmem:[%s4963_s3 + $0x150] sm:$0xff] }
  0x36   : > { %3521 = vmatpush3.bf16.msra.mxu1 %v3518_v22  ;;  %3296 = vmatmul.mubr.msk.f32.gmra.mrb[6].mxu0 %vm4040_vm2, %v1271_v35  ;;  %v4299_v22 = vpack.c.bf16 %v2661_v2, %v2660_v1  ;;  %v1453_v35 = vld [vmem:[%s4000_s11 + $0x170] sm:$0x1]  ;;  %v4333_v48 = vpack.c.bf16 %v2665_v30, %v2664_v29  ;;  %v280_v1 = vld [vmem:[%s4000_s11 + $0x140] sm:$0xff]  ;;  %v1473_v9 = vmul.f32 %v4018_v33, %v1457_v58  ;;  %v1504_v56 = vmax.f32 %v1488_v20, 0.0 }
  0x37   : > { %3649 = vmatpush3.bf16.msra.mxu0 %v3646_v23  ;;  %3523 = vmatprep.subr.bf16.mxu1 %v3522_v38  ;;  %v1492_v23 = vmax.f32 %v1476_v63, 0.0  ;;  %v1469_v49 = vmul.f32 %v4018_v33, %v1453_v35  ;;  %v1558_v53 = vrot.slane %v1493_v28, 1  ;;  %v4339_v54 = vadd.f32 %v4023_v34, %v291_v31  ;;  %v4376_v29 = vld [vmem:[%s4000_s11 + $0x1c0] sm:$0xff] }
  0x38   : > { %3651 = vmatprep.subr.bf16.mxu0 %v3650_v41  ;;  %3154 = vmatprep.mubr.f32.mxu1 %v3894_v8  ;;  %v1482_v63 = vadd.f32 %v4023_v34, %v1466_v40  ;;  %v1484_v2 = vadd.f32 %v4023_v34, %v1468_v45  ;;  %v294_v17 = vmul.f32 %v4018_v33, %v280_v1  ;;  %v314_v35 = vmax.f32 %v4359_v12, 0.0 }
  0x39   : > { %3330 = vmatprep.mubr.msk.f32.mxu0 %vm4238_vm6, %v1556_v55  ;;  %v1557_v46 = vrot.slane %v1492_v23, 1  ;;  %v1494_v55 = vmax.f32 %v1478_v32, 0.0  ;;  %v1485_v6 = vadd.f32 %v4023_v34, %v1469_v49  ;;  %v1486_v26 = vadd.f32 %v4023_v34, %v1470_v3  ;;  %v2847_v23 = vld [vmem:[%s4963_s3 + $0x460] sm:$0xff] }
  0x3a   : > { %3525 = vmatpush3.bf16.msra.mxu1 %v3522_v38  ;;  %v1480_v38 = vadd.f32 %v4023_v34, %v1464_v11  ;;  %v1498_v24 = vmax.f32 %v1482_v63, 0.0  ;;  %v1487_v28 = vadd.f32 %v4023_v34, %v1471_v4  ;;  %v1489_v31 = vadd.f32 %v4023_v34, %v1473_v9 }
  0x3b   : > { %3653 = vmatpush3.bf16.msra.mxu0 %v3650_v41  ;;  %3527 = vmatprep.subr.bf16.mxu1 %v3526_v59  ;;  %v4325_v41 = vadd.f32 %v4023_v34, %v290_v15  ;;  %v1559_v10 = vsel %vm835_vm5, %v1557_v46, %v1558_v53  ;;  %v1560_v11 = vrot.slane %v1494_v55, 1  ;;  %v1501_v30 = vmax.f32 %v1485_v6, 0.0 }
  0x3c   : > { %3655 = vmatprep.subr.bf16.mxu0 %v3654_v0  ;;  %v1496_v60 = vmax.f32 %v1480_v38, 0.0  ;;  %v313_v32 = vmax.f32 %v4339_v54, 0.0  ;;  %v2768_v38 = vld [vmem:[%s4963_s3 + $0x328] sm:$0xff]  ;;  %v296_v45 = vmul.f32 %v4018_v33, %v4376_v29  ;;  %v1566_v46 = vrot.slane %v1498_v24, 1  ;;  %v2689_v54 = vld [vmem:[%s4963_s3 + $0x1b0] sm:$0xff] }
  0x3d   : > { %v312_v5 = vmax.f32 %v4325_v41, 0.0  ;;  %v1502_v50 = vmax.f32 %v1486_v26, 0.0  ;;  %v1503_v52 = vmax.f32 %v1487_v28, 0.0  ;;  %v1570_v55 = vrot.slane %v1501_v30, 1  ;;  %v2773_v28 = vld [vmem:[%s4963_s3 + $0x350] sm:$0xff] }
  0x3e   : > { %3529 = vmatpush3.bf16.msra.mxu1 %v3526_v59  ;;  %v1495_v59 = vmax.f32 %v1479_v36, 0.0  ;;  %v1563_v15 = vrot.slane %v1496_v60, 1  ;;  %v1505_v57 = vmax.f32 %v1489_v31, 0.0  ;;  %v309_v60 = vadd.f32 %v4023_v34, %v4389_v37  ;;  %v2672_v31 = vld [vmem:[%s4963_s3 + $0x160] sm:$0xff]  ;;  %v2685_v41 = vld [vmem:[%s4963_s3 + $0x190] sm:$0xff] }
  0x3f   : > { %3657 = vmatpush3.bf16.msra.mxu0 %v3654_v0  ;;  %3531 = vmatprep.subr.bf16.mxu1 %v3530_v13  ;;  %v1483_v0 = vadd.f32 %v4023_v34, %v1467_v43  ;;  %v4404_v43 = vadd.f32 %v4023_v34, %v294_v17  ;;  %v1573_v3 = vrot.slane %v1503_v52, 1  ;;  %v1575_v7 = vrot.slane %v1504_v56, 1  ;;  %v723_v17 = vld [vmem:[%s4000_s11 + $0x60] sm:$0x1]  ;;  %v2777_v56 = vld [vmem:[%s4963_s3 + $0x370] sm:$0xff] }
  0x40   : > { %3659 = vmatprep.subr.bf16.mxu0 %v3658_v14  ;;  %v1565_v40 = vsel %vm835_vm5, %v1563_v15, %v1564_v16  ;;  %v1576_v9 = vrot.slane %v1505_v57, 1  ;;  %v2772_v15 = vld [vmem:[%s4963_s3 + $0x348] sm:$0xff] }
  0x41   : > { %v1499_v25 = vmax.f32 %v1483_v0, 0.0  ;;  %v316_v63 = vmax.f32 %v4404_v43, 0.0  ;;  %v310_v0 = vadd.f32 %v4023_v34, %v296_v45  ;;  %v726_v45 = vld [vmem:[%s4000_s11 + $0xc0] sm:$0xfe] }
  0x42   : > { %3533 = vmatpush3.bf16.msra.mxu1 %v3530_v13  ;;  %v293_v13 = vmul.f32 %v4018_v33, %v279_v62  ;;  %v2770_v62 = vld [vmem:[%s4963_s3 + $0x338] sm:$0xff]  ;;  %v1577_v30 = vsel %vm835_vm5, %v1575_v7, %v1576_v9  ;;  %v728_v7 = vld [vmem:[%s4000_s11 + $0x100] sm:$0xfe]  ;;  %v729_v9 = vld [vmem:[%s4000_s11 + $0x120] sm:$0x1] }
  0x43   : > { %3661 = vmatpush3.bf16.msra.mxu0 %v3658_v14  ;;  %3535 = vmatprep.subr.bf16.mxu1 %v4295_v19  ;;  %v1561_v14 = vrot.slane %v1495_v59, 1  ;;  %v1567_v49 = vrot.slane %v1499_v25, 1  ;;  %v2667_v59 = vld [vmem:[%s4963_s3 + $0x138] sm:$0xff]  ;;  %v318_v16 = vmax.f32 %v310_v0, 0.0 }
  0x44   : > { %3663 = vmatprep.subr.bf16.mxu0 %v4297_v21  ;;  %v4386_v36 = vadd.f32 %v4023_v34, %v293_v13  ;;  %v2669_v13 = vld [vmem:[%s4963_s3 + $0x148] sm:$0xff] }
  0x45   : > { %v1562_v39 = vsel %vm835_vm5, %v1560_v11, %v1561_v14  ;;  %v1568_v1 = vsel %vm835_vm5, %v1566_v46, %v1567_v49  ;;  %v2668_v11 = vld [vmem:[%s4963_s3 + $0x140] sm:$0xff]  ;;  %v2776_v49 = vld [vmem:[%s4963_s3 + $0x368] sm:$0xff] }
  0x46   : > { %3537 = vmatpush3.bf16.msra.mxu1 %v4295_v19  ;;  %v1500_v19 = vmax.f32 %v1484_v2, 0.0  ;;  %v1572_v2 = vrot.slane %v1502_v50, 1  ;;  %v2771_v14 = vld [vmem:[%s4963_s3 + $0x340] sm:$0xff]  ;;  %v3554_v26 = vpack.c.bf16 %v2669_v13, %v2668_v11 }
  0x47   : > { %3665 = vmatpush3.bf16.msra.mxu0 %v4297_v21  ;;  %3539 = vmatprep.subr.bf16.mxu1 %v4299_v22  ;;  %v2767_v21 = vld [vmem:[%s4963_s3 + $0x320] sm:$0xff]  ;;  %v3682_v20 = vpack.c.bf16 %v2772_v15, %v2771_v14  ;;  %v2797_v14 = vld [vmem:[%s4963_s3 + $0x390] sm:$0xff]  ;;  %v2798_v15 = vld [vmem:[%s4963_s3 + $0x398] sm:$0xff] }
  0x48   : > { %3667 = vmatprep.subr.bf16.mxu0 %v4308_v27  ;;  %v1569_v53 = vrot.slane %v1500_v19, 1  ;;  %v3674_v58 = vpack.c.bf16 %v2768_v38, %v2767_v21  ;;  %v1574_v24 = vsel %vm835_vm5, %v1572_v2, %v1573_v3  ;;  %v2774_v19 = vld [vmem:[%s4963_s3 + $0x358] sm:$0xff]  ;;  %v2673_v21 = vld [vmem:[%s4963_s3 + $0x168] sm:$0xff]  ;;  %v739_v38 = vmul.f32 %v4018_v33, %v723_v17  ;;  %v2775_v46 = vld [vmem:[%s4963_s3 + $0x360] sm:$0xff] }
  0x49   : > { %3155 = vmatmul.mubr.msk.f32.vlgmr.msra.gmra.mrb[0].mxu1 %vm4369_vm9, %v312_v5  ;;  %v727_v50 = vld [vmem:[%s4000_s11 + $0xe0] sm:$0x1]  ;;  %v3686_v0 = vpack.c.bf16 %v2774_v19, %v2773_v28  ;;  %v730_v13 = vld [vmem:[%s4000_s11 + $0x140] sm:$0xfe]  ;;  %v745_v28 = vmul.f32 %v4018_v33, %v729_v9 }
  0x4a   : > { %3541 = vmatpush3.bf16.msra.mxu1 %v4299_v22  ;;  %3331 = vmatmul.mubr.msk.f32.vlgmr.msra.gmra.mrb[0].mxu0 %vm4238_vm6, %v1559_v10  ;;  %v2666_v22 = vld [vmem:[%s4963_s3 + $0x130] sm:$0xff]  ;;  %v1571_v6 = vsel %vm835_vm5, %v1569_v53, %v1570_v55  ;;  %v722_v10 = vld [vmem:[%s4000_s11 + $0x40] sm:$0xfe]  ;;  %v2675_v55 = vld [vmem:[%s4963_s3 + $0x178] sm:$0xff]  ;;  %v755_v2 = vadd.f32 %v4023_v34, %v739_v38  ;;  %v743_v3 = vmul.f32 %v4018_v33, %v727_v50 }
  0x4b   : > { %3669 = vmatpush3.bf16.msra.mxu0 %v4308_v27  ;;  %3543 = vmatprep.subr.bf16.mxu1 %v4327_v42  ;;  %v315_v27 = vmax.f32 %v4386_v36, 0.0  ;;  %v3550_v4 = vpack.c.bf16 %v2667_v59, %v2666_v22  ;;  %v738_v25 = vmul.f32 %v4018_v33, %v722_v10  ;;  %v2674_v53 = vld [vmem:[%s4963_s3 + $0x170] sm:$0xff]  ;;  %v2683_v22 = vld [vmem:[%s4963_s3 + $0x180] sm:$0xff]  ;;  %v2684_v59 = vld [vmem:[%s4963_s3 + $0x188] sm:$0xff] }
  0x4c   : > { %3671 = vmatprep.subr.bf16.mxu0 %v4331_v47  ;;  %3157 = vmatprep.mubr.msk.f32.mxu1 %vm4369_vm9, %v313_v32  ;;  %v3566_v10 = vpack.c.bf16 %v2675_v55, %v2674_v53  ;;  %v4554_v11 = vpack.c.bf16 %v2684_v59, %v2683_v22  ;;  %v732_v38 = vld [vmem:[%s4000_s11 + $0x180] sm:$0xfe]  ;;  %v735_v53 = vld [vmem:[%s4000_s11 + $0x1e0] sm:$0x1]  ;;  %v2692_v36 = vld [vmem:[%s4963_s3 + $0x1c8] sm:$0xff] }
  0x4d   : > { %3333 = vmatprep.mubr.msk.f32.mxu0 %vm4238_vm6, %v1562_v39  ;;  %3158 = vmatmul.mubr.msk.f32.gmra.mrb[2].mxu1 %vm4369_vm9, %v314_v35  ;;  %v724_v39 = vld [vmem:[%s4000_s11 + $0x80] sm:$0xfe]  ;;  %v754_v57 = vadd.f32 %v4023_v34, %v738_v25  ;;  %v771_v25 = vmax.f32 %v755_v2, 0.0  ;;  %v748_v22 = vmul.f32 %v4018_v33, %v732_v38  ;;  %v1006_v38 = vld [vmem:[%s4000_s11 + $0x10] sm:$0xff] }
  0x4e   : > { %3545 = vmatpush3.bf16.msra.mxu1 %v4327_v42  ;;  %3334 = vmatmul.mubr.msk.f32.gmra.mrb[2].mxu0 %vm4238_vm6, %v1565_v40  ;;  %v3678_v42 = vpack.c.bf16 %v2770_v62, %v2769_v61  ;;  %v725_v40 = vld [vmem:[%s4000_s11 + $0xa0] sm:$0x1]  ;;  %v742_v62 = vmul.f32 %v4018_v33, %v726_v45 }
  0x4f   : > { %3673 = vmatpush3.bf16.msra.mxu0 %v4331_v47  ;;  %3547 = vmatprep.subr.bf16.mxu1 %v4333_v48  ;;  %v317_v47 = vmax.f32 %v309_v60, 0.0  ;;  %v740_v60 = vmul.f32 %v4018_v33, %v724_v39  ;;  %v741_v61 = vmul.f32 %v4018_v33, %v725_v40  ;;  %v733_v39 = vld [vmem:[%s4000_s11 + $0x1a0] sm:$0x1]  ;;  %v734_v40 = vld [vmem:[%s4000_s11 + $0x1c0] sm:$0xfe]  ;;  %v840_v55 = vrot.slane %v771_v25, 1 }
  0x50   : > { %3675 = vmatprep.subr.bf16.mxu0 %v3674_v58  ;;  %3160 = vmatprep.mubr.msk.f32.mxu1 %vm4369_vm9, %v315_v27  ;;  %v749_v59 = vmul.f32 %v4018_v33, %v733_v39 }
  0x51   : > { %3336 = vmatprep.mubr.msk.f32.mxu0 %vm4238_vm6, %v1568_v1  ;;  %3161 = vmatmul.mubr.msk.f32.gmra.mrb[4].mxu1 %vm4369_vm9, %v316_v63  ;;  %v2795_v1 = vld [vmem:[%s4963_s3 + $0x380] sm:$0xff]  ;;  %v757_v17 = vadd.f32 %v4023_v34, %v741_v61  ;;  %v750_v61 = vmul.f32 %v4018_v33, %v734_v40 }
  0x52   : > { %3549 = vmatpush3.bf16.msra.mxu1 %v4333_v48  ;;  %3337 = vmatmul.mubr.msk.f32.gmra.mrb[4].mxu0 %vm4238_vm6, %v1571_v6  ;;  %v2671_v48 = vld [vmem:[%s4963_s3 + $0x158] sm:$0xff]  ;;  %v3690_v6 = vpack.c.bf16 %v2776_v49, %v2775_v46 }
  0x53   : > { %3677 = vmatpush3.bf16.msra.mxu0 %v3674_v58  ;;  %3551 = vmatprep.subr.bf16.mxu1 %v3550_v4  ;;  %v3558_v52 = vpack.c.bf16 %v2671_v48, %v2670_v18  ;;  %v2778_v58 = vld [vmem:[%s4963_s3 + $0x378] sm:$0xff]  ;;  %v758_v18 = vadd.f32 %v4023_v34, %v742_v62  ;;  %v744_v48 = vmul.f32 %v4018_v33, %v728_v7  ;;  %v773_v49 = vmax.f32 %v757_v17, 0.0 }
  0x54   : > { %3679 = vmatprep.subr.bf16.mxu0 %v3678_v42  ;;  %3163 = vmatprep.mubr.msk.f32.mxu1 %vm4369_vm9, %v317_v47  ;;  %v770_v47 = vmax.f32 %v754_v57, 0.0  ;;  %v751_v62 = vmul.f32 %v4018_v33, %v735_v53  ;;  %v2801_v53 = vld [vmem:[%s4963_s3 + $0x3b0] sm:$0xff] }
  0x55   : > { %3339 = vmatprep.mubr.msk.f32.mxu0 %vm4238_vm6, %v1574_v24  ;;  %3164 = vmatmul.mubr.msk.f32.gmra.mrb[6].mxu1 %vm4369_vm9, %v318_v16  ;;  %v756_v16 = vadd.f32 %v4023_v34, %v740_v60  ;;  %v731_v24 = vld [vmem:[%s4000_s11 + $0x160] sm:$0x1]  ;;  %v774_v50 = vmax.f32 %v758_v18, 0.0  ;;  %v760_v57 = vadd.f32 %v4023_v34, %v744_v48 }
  0x56   : > { %3553 = vmatpush3.bf16.msra.mxu1 %v3550_v4  ;;  %3340 = vmatmul.mubr.msk.f32.gmra.mrb[6].mxu0 %vm4238_vm6, %v1577_v30  ;;  %v3562_v4 = vpack.c.bf16 %v2673_v21, %v2672_v31  ;;  %v4581_v31 = vpack.c.bf16 %v2798_v15, %v2797_v14  ;;  %v747_v21 = vmul.f32 %v4018_v33, %v731_v24  ;;  %v839_v45 = vrot.slane %v770_v47, 1  ;;  %v2687_v47 = vld [vmem:[%s4963_s3 + $0x1a0] sm:$0xff] }
  0x57   : > { %3681 = vmatpush3.bf16.msra.mxu0 %v3678_v42  ;;  %3555 = vmatprep.subr.bf16.mxu1 %v3554_v26  ;;  %v4552_v42 = vpack.c.bf16 %v2778_v58, %v2777_v56  ;;  %v772_v46 = vmax.f32 %v756_v16, 0.0  ;;  %v845_v2 = vrot.slane %v774_v50, 1  ;;  %v2762_v15 = vld [vmem:[%s4000_s11 + $0x200] sm:$0xff] }
  0x58   : > { %3683 = vmatprep.subr.bf16.mxu0 %v3682_v20  ;;  %3198 = vmatprep.mubr.f32.mxu1 %v3894_v8  ;;  %v2796_v8 = vld [vmem:[%s4963_s3 + $0x388] sm:$0xff]  ;;  %v763_v60 = vadd.f32 %v4023_v34, %v747_v21  ;;  %v4623_v24 = vld [vmem:[%s4962_s2] ss:$0 sm:$0xff] }
  0x59   : > { %3374 = vmatprep.mubr.msk.f32.mxu0 %vm4369_vm9, %v312_v5  ;;  %v2686_v5 = vld [vmem:[%s4963_s3 + $0x198] sm:$0xff]  ;;  %v4576_v19 = vpack.c.bf16 %v2796_v8, %v2795_v1  ;;  %v843_v1 = vrot.slane %v773_v49, 1  ;;  %v776_v8 = vmax.f32 %v760_v57, 0.0  ;;  %v1749_v25 = vadd.f32 %v4623_v24, %v4389_v37 }
  0x5a   : > { %3557 = vmatpush3.bf16.msra.mxu1 %v3554_v26  ;;  %v759_v26 = vadd.f32 %v4023_v34, %v743_v3  ;;  %v4578_v30 = vpack.c.bf16 %v2686_v5, %v2685_v41  ;;  %v765_v41 = vadd.f32 %v4023_v34, %v749_v59  ;;  %v841_v5 = vsel %vm835_vm5, %v839_v45, %v840_v55  ;;  %v2802_v55 = vld [vmem:[%s4963_s3 + $0x3b8] sm:$0xff] }
  0x5b   : > { %3685 = vmatpush3.bf16.msra.mxu0 %v3682_v20  ;;  %3559 = vmatprep.subr.bf16.mxu1 %v3558_v52  ;;  %v746_v20 = vmul.f32 %v4018_v33, %v730_v13  ;;  %v779_v33 = vmax.f32 %v763_v60, 0.0  ;;  %v767_v13 = vadd.f32 %v4023_v34, %v751_v62  ;;  %v848_v17 = vrot.slane %v776_v8, 1  ;;  %v2804_v62 = vld [vmem:[%s4963_s3 + $0x3c8] sm:$0xff] }
  0x5c   : > { %3687 = vmatprep.subr.bf16.mxu0 %v3686_v0  ;;  %v775_v56 = vmax.f32 %v759_v26, 0.0 }
  0x5d   : > { %v762_v58 = vadd.f32 %v4023_v34, %v746_v20  ;;  %v4632_v20 = vld [vmem:[%s4961_s1] ss:$0 sm:$0xff]  ;;  %v852_v37 = vrot.slane %v779_v33, 1  ;;  %v783_v40 = vmax.f32 %v767_v13, 0.0 }
  0x5e   : > { %3561 = vmatpush3.bf16.msra.mxu1 %v3558_v52  ;;  %v761_v52 = vadd.f32 %v4023_v34, %v745_v28  ;;  %v846_v3 = vrot.slane %v775_v56, 1  ;;  %v781_v28 = vmax.f32 %v765_v41, 0.0  ;;  %v1742_v21 = vmul.f32 %v4632_v20, %v4376_v29  ;;  %v2805_v41 = vld [vmem:[%s4963_s3 + $0x3d0] sm:$0xff] }
  0x5f   : > { %3689 = vmatpush3.bf16.msra.mxu0 %v3686_v0  ;;  %3563 = vmatprep.subr.bf16.mxu1 %v3562_v4  ;;  %v842_v0 = vrot.slane %v772_v46, 1  ;;  %v778_v9 = vmax.f32 %v762_v58, 0.0  ;;  %v1743_v45 = vmul.f32 %v4632_v20, %v2762_v15  ;;  %v2787_v46 = vld [vmem:[%s4000_s11 + $0x48] sm:$0xff]  ;;  %v1014_v50 = vmul.f32 %v4632_v20, %v1006_v38  ;;  %v2807_v15 = vld [vmem:[%s4963_s3 + $0x3e0] sm:$0xff]  ;;  %v2810_v38 = vld [vmem:[%s4963_s3 + $0x3f8] sm:$0xff] }
  0x60   : > { %3691 = vmatprep.subr.bf16.mxu0 %v3690_v6  ;;  %v777_v7 = vmax.f32 %v761_v52, 0.0  ;;  %v847_v16 = vsel %vm835_vm5, %v845_v2, %v846_v3  ;;  %v855_v57 = vrot.slane %v781_v28, 1  ;;  %v1750_v52 = vadd.f32 %v4623_v24, %v1742_v21  ;;  %v2789_v28 = vld [vmem:[%s4000_s11 + $0xc8] sm:$0xff]  ;;  %v2809_v21 = vld [vmem:[%s4963_s3 + $0x3f0] sm:$0xff] }
  0x61   : > { %v844_v14 = vsel %vm835_vm5, %v842_v0, %v843_v1  ;;  %v851_v26 = vrot.slane %v778_v9, 1  ;;  %v1970_v58 = vmul.f32 %v4632_v20, %v2787_v46  ;;  %v1751_v59 = vadd.f32 %v4623_v24, %v1743_v45  ;;  %v2694_v9 = vld [vmem:[%s4963_s3 + $0x1d8] sm:$0xff]  ;;  %v2835_v45 = vld [vmem:[%s4963_s3 + $0x400] sm:$0xff]  ;;  %v2836_v46 = vld [vmem:[%s4963_s3 + $0x408] sm:$0xff] }
  0x62   : > { %3565 = vmatpush3.bf16.msra.mxu1 %v3562_v4  ;;  %v764_v4 = vadd.f32 %v4023_v34, %v748_v22  ;;  %v849_v18 = vrot.slane %v777_v7, 1  ;;  %v1758_v1 = vmax.f32 %v1750_v52, 0.0  ;;  %v2693_v7 = vld [vmem:[%s4963_s3 + $0x1d0] sm:$0xff]  ;;  %v3730_v52 = vpack.c.bf16 %v2836_v46, %v2835_v45 }
  0x63   : > { %3693 = vmatpush3.bf16.msra.mxu0 %v3690_v6  ;;  %3567 = vmatprep.subr.bf16.mxu1 %v3566_v10  ;;  %v766_v6 = vadd.f32 %v4023_v34, %v750_v61  ;;  %v2799_v34 = vld [vmem:[%s4963_s3 + $0x3a0] sm:$0xff]  ;;  %v853_v12 = vsel %vm835_vm5, %v851_v26, %v852_v37  ;;  %v3710_v61 = vpack.c.bf16 %v2802_v55, %v2801_v53  ;;  %v1759_v8 = vmax.f32 %v1751_v59, 0.0  ;;  %v2837_v55 = vld [vmem:[%s4963_s3 + $0x410] sm:$0xff] }
  0x64   : > { %3695 = vmatprep.subr.bf16.mxu0 %v4552_v42  ;;  %v780_v48 = vmax.f32 %v764_v4, 0.0  ;;  %v1978_v2 = vadd.f32 %v4623_v24, %v1970_v58 }
  0x65   : > { %v782_v39 = vmax.f32 %v766_v6, 0.0  ;;  %v3590_v6 = vpack.c.bf16 %v2694_v9, %v2693_v7 }
  0x66   : > { %3569 = vmatpush3.bf16.msra.mxu1 %v3566_v10  ;;  %v2688_v10 = vld [vmem:[%s4963_s3 + $0x1a8] sm:$0xff]  ;;  %v854_v56 = vrot.slane %v780_v48, 1  ;;  %v1986_v33 = vmax.f32 %v1978_v2, 0.0  ;;  %v1008_v48 = vld [vmem:[%s4000_s11 + $0x90] sm:$0xff] }
  0x67   : > { %3697 = vmatpush3.bf16.msra.mxu0 %v4552_v42  ;;  %3571 = vmatprep.subr.bf16.mxu1 %v4554_v11  ;;  %v2800_v42 = vld [vmem:[%s4963_s3 + $0x3a8] sm:$0xff]  ;;  %v3578_v49 = vpack.c.bf16 %v2688_v10, %v2687_v47  ;;  %v857_v22 = vrot.slane %v782_v39, 1  ;;  %v2695_v47 = vld [vmem:[%s4963_s3 + $0x1e0] sm:$0xff]  ;;  %v1009_v39 = vld [vmem:[%s4000_s11 + $0xd0] sm:$0xff] }
  0x68   : > { %3699 = vmatprep.subr.bf16.mxu0 %v4576_v19  ;;  %v3706_v29 = vpack.c.bf16 %v2800_v42, %v2799_v34  ;;  %v856_v0 = vsel %vm835_vm5, %v854_v56, %v855_v57  ;;  %v2808_v10 = vld [vmem:[%s4963_s3 + $0x3e8] sm:$0xff]  ;;  %v1007_v34 = vld [vmem:[%s4000_s11 + $0x50] sm:$0xff] }
  0x69   : > { %3199 = vmatmul.mubr.msk.f32.vlgmr.msra.gmra.mrb[0].mxu1 %vm4238_vm6, %v841_v5  ;;  %v2806_v5 = vld [vmem:[%s4963_s3 + $0x3d8] sm:$0xff]  ;;  %v2788_v42 = vld [vmem:[%s4000_s11 + $0x88] sm:$0xff]  ;;  %v1015_v26 = vmul.f32 %v4632_v20, %v1007_v34  ;;  %v1011_v57 = vld [vmem:[%s4000_s11 + $0x150] sm:$0xff] }
  0x6a   : > { %3573 = vmatpush3.bf16.msra.mxu1 %v4554_v11  ;;  %3375 = vmatmul.mubr.msk.f32.vlgmr.msra.gmra.mrb[0].mxu0 %vm4369_vm9, %v313_v32  ;;  %v2690_v32 = vld [vmem:[%s4963_s3 + $0x1b8] sm:$0xff]  ;;  %v850_v11 = vsel %vm835_vm5, %v848_v17, %v849_v18  ;;  %v3718_v13 = vpack.c.bf16 %v2806_v5, %v2805_v41  ;;  %v2697_v17 = vld [vmem:[%s4963_s3 + $0x1f0] sm:$0xff]  ;;  %v3722_v18 = vpack.c.bf16 %v2808_v10, %v2807_v15  ;;  %v2791_v56 = vld [vmem:[%s4000_s11 + $0x148] sm:$0xff] }
  0x6b   : > { %3701 = vmatpush3.bf16.msra.mxu0 %v4576_v19  ;;  %3575 = vmatprep.subr.bf16.mxu1 %v4578_v30  ;;  %v1757_v19 = vmax.f32 %v1749_v25, 0.0  ;;  %v3582_v60 = vpack.c.bf16 %v2690_v32, %v2689_v54  ;;  %v2698_v25 = vld [vmem:[%s4963_s3 + $0x1f8] sm:$0xff]  ;;  %v1971_v37 = vmul.f32 %v4632_v20, %v2788_v42  ;;  %v2790_v54 = vld [vmem:[%s4000_s11 + $0x108] sm:$0xff]  ;;  %v3726_v32 = vpack.c.bf16 %v2810_v38, %v2809_v21  ;;  %v1012_v2 = vld [vmem:[%s4000_s11 + $0x190] sm:$0xff] }
  0x6c   : > { %3703 = vmatprep.subr.bf16.mxu0 %v4581_v31  ;;  %3201 = vmatprep.mubr.msk.f32.mxu1 %vm4238_vm6, %v844_v14  ;;  %v2696_v14 = vld [vmem:[%s4963_s3 + $0x1e8] sm:$0xff]  ;;  %v1973_v58 = vmul.f32 %v4632_v20, %v2790_v54  ;;  %v1013_v41 = vld [vmem:[%s4000_s11 + $0x1d0] sm:$0xff] }
  0x6d   : > { %3377 = vmatprep.mubr.msk.f32.mxu0 %vm4369_vm9, %v314_v35  ;;  %3202 = vmatmul.mubr.msk.f32.gmra.mrb[2].mxu1 %vm4238_vm6, %v847_v16  ;;  %v858_v35 = vrot.slane %v783_v40, 1  ;;  %v3594_v16 = vpack.c.bf16 %v2696_v14, %v2695_v47  ;;  %v3598_v40 = vpack.c.bf16 %v2698_v25, %v2697_v17  ;;  %v1979_v53 = vadd.f32 %v4623_v24, %v1971_v37  ;;  %v2794_v15 = vld [vmem:[%s4000_s11 + $0x208] sm:$0xff] }
  0x6e   : > { %3577 = vmatpush3.bf16.msra.mxu1 %v4578_v30  ;;  %3378 = vmatmul.mubr.msk.f32.gmra.mrb[2].mxu0 %vm4369_vm9, %v315_v27  ;;  %v2691_v30 = vld [vmem:[%s4963_s3 + $0x1c0] sm:$0xff]  ;;  %v1022_v27 = vadd.f32 %v4623_v24, %v1014_v50  ;;  %v1010_v50 = vld [vmem:[%s4000_s11 + $0x110] sm:$0xff]  ;;  %v1981_v9 = vadd.f32 %v4623_v24, %v1973_v58  ;;  %v1020_v14 = vmul.f32 %v4632_v20, %v1012_v2  ;;  %v2840_v25 = vld [vmem:[%s4963_s3 + $0x428] sm:$0xff] }
  0x6f   : > { %3705 = vmatpush3.bf16.msra.mxu0 %v4581_v31  ;;  %3579 = vmatprep.subr.bf16.mxu1 %v3578_v49  ;;  %v2803_v31 = vld [vmem:[%s4963_s3 + $0x3c0] sm:$0xff]  ;;  %v859_v3 = vsel %vm835_vm5, %v857_v22, %v858_v35  ;;  %v3586_v43 = vpack.c.bf16 %v2692_v36, %v2691_v30  ;;  %v1018_v30 = vmul.f32 %v4632_v20, %v1010_v50 }
  0x70   : > { %3707 = vmatprep.subr.bf16.mxu0 %v3706_v29  ;;  %3204 = vmatprep.mubr.msk.f32.mxu1 %vm4238_vm6, %v850_v11  ;;  %v1030_v4 = vmax.f32 %v1022_v27, 0.0  ;;  %v1023_v11 = vadd.f32 %v4623_v24, %v1015_v26  ;;  %v2819_v22 = vld [vmem:[%s4000_s11 + $0x40] sm:$0xfe]  ;;  %v2820_v35 = vld [vmem:[%s4000_s11 + $0x60] sm:$0x1]  ;;  %v1021_v26 = vmul.f32 %v4632_v20, %v1013_v41  ;;  %v1989_v21 = vmax.f32 %v1981_v9, 0.0 }
  0x71   : > { %3380 = vmatprep.mubr.msk.f32.mxu0 %vm4369_vm9, %v316_v63  ;;  %3205 = vmatmul.mubr.msk.f32.gmra.mrb[4].mxu1 %vm4238_vm6, %v853_v12  ;;  %v3714_v63 = vpack.c.bf16 %v2804_v62, %v2803_v31  ;;  %v2792_v12 = vld [vmem:[%s4000_s11 + $0x188] sm:$0xff]  ;;  %v2827_v36 = vld [vmem:[%s4000_s11 + $0x140] sm:$0xfe]  ;;  %v2828_v27 = vld [vmem:[%s4000_s11 + $0x160] sm:$0x1]  ;;  %v2181_v7 = vmul.f32 %v4632_v20, %v2820_v35  ;;  %v1026_v47 = vadd.f32 %v4623_v24, %v1018_v30 }
  0x72   : > { %3581 = vmatpush3.bf16.msra.mxu1 %v3578_v49  ;;  %3381 = vmatmul.mubr.msk.f32.gmra.mrb[4].mxu0 %vm4369_vm9, %v1757_v19  ;;  %v1016_v49 = vmul.f32 %v4632_v20, %v1008_v48  ;;  %v1017_v19 = vmul.f32 %v4632_v20, %v1009_v39  ;;  %v1031_v31 = vmax.f32 %v1023_v11, 0.0  ;;  %v2188_v5 = vmul.f32 %v4632_v20, %v2827_v36  ;;  %v2841_v11 = vld [vmem:[%s4963_s3 + $0x430] sm:$0xff]  ;;  %v2843_v35 = vld [vmem:[%s4963_s3 + $0x440] sm:$0xff] }
  0x73   : > { %3709 = vmatpush3.bf16.msra.mxu0 %v3706_v29  ;;  %3583 = vmatprep.subr.bf16.mxu1 %v3582_v60  ;;  %v1972_v29 = vmul.f32 %v4632_v20, %v2789_v28  ;;  %v2197_v28 = vadd.f32 %v4623_v24, %v2181_v7  ;;  %v1977_v38 = vmul.f32 %v4632_v20, %v2794_v15  ;;  %v2832_v9 = vld [vmem:[%s4000_s11 + $0x1e0] sm:$0x1] }
  0x74   : > { %3711 = vmatprep.subr.bf16.mxu0 %v3710_v61  ;;  %3207 = vmatprep.mubr.msk.f32.mxu1 %vm4238_vm6, %v856_v0  ;;  %v1024_v59 = vadd.f32 %v4623_v24, %v1016_v49  ;;  %v1025_v62 = vadd.f32 %v4623_v24, %v1017_v19  ;;  %v1974_v0 = vmul.f32 %v4632_v20, %v2791_v56  ;;  %v2842_v19 = vld [vmem:[%s4963_s3 + $0x438] sm:$0xff] }
  0x75   : > { %3383 = vmatprep.mubr.msk.f32.mxu0 %vm4369_vm9, %v1758_v1  ;;  %3208 = vmatmul.mubr.msk.f32.gmra.mrb[6].mxu1 %vm4238_vm6, %v859_v3  ;;  %v1019_v1 = vmul.f32 %v4632_v20, %v1011_v57  ;;  %v1987_v3 = vmax.f32 %v1979_v53, 0.0  ;;  %v2204_v37 = vadd.f32 %v4623_v24, %v2188_v5  ;;  %v1028_v45 = vadd.f32 %v4623_v24, %v1020_v14 }
  0x76   : > { %3585 = vmatpush3.bf16.msra.mxu1 %v3582_v60  ;;  %3384 = vmatmul.mubr.msk.f32.gmra.mrb[6].mxu0 %vm4369_vm9, %v1759_v8  ;;  %v1980_v60 = vadd.f32 %v4623_v24, %v1972_v29  ;;  %v1975_v8 = vmul.f32 %v4632_v20, %v2792_v12  ;;  %v1033_v10 = vmax.f32 %v1025_v62, 0.0  ;;  %v1982_v34 = vadd.f32 %v4623_v24, %v1974_v0 }
  0x77   : > { %3713 = vmatpush3.bf16.msra.mxu0 %v3710_v61  ;;  %3587 = vmatprep.subr.bf16.mxu1 %v3586_v43  ;;  %v2838_v61 = vld [vmem:[%s4963_s3 + $0x418] sm:$0xff]  ;;  %v1027_v42 = vadd.f32 %v4623_v24, %v1019_v1  ;;  %v2213_v53 = vmax.f32 %v2197_v28, 0.0  ;;  %v1985_v56 = vadd.f32 %v4623_v24, %v1977_v38  ;;  %v2220_v57 = vmax.f32 %v2204_v37, 0.0  ;;  %v2829_v1 = vld [vmem:[%s4000_s11 + $0x180] sm:$0xfe]  ;;  %v2849_v38 = vld [vmem:[%s4963_s3 + $0x470] sm:$0xff] }
  0x78   : > { %3715 = vmatprep.subr.bf16.mxu0 %v3714_v63  ;;  %3242 = vmatprep.mubr.msk.f32.mxu1 %vm4369_vm9, %v1030_v4  ;;  %v3734_v4 = vpack.c.bf16 %v2838_v61, %v2837_v55  ;;  %v1983_v17 = vadd.f32 %v4623_v24, %v1975_v8  ;;  %v1990_v46 = vmax.f32 %v1982_v34, 0.0  ;;  %v1036_v58 = vmax.f32 %v1028_v45, 0.0  ;;  %v2831_v8 = vld [vmem:[%s4000_s11 + $0x1c0] sm:$0xfe]  ;;  %v2850_v37 = vld [vmem:[%s4963_s3 + $0x478] sm:$0xff] }
  0x79   : > { %3418 = vmatprep.mubr.msk.f32.mxu0 %vm4040_vm2, %v1986_v33  ;;  %v2189_v33 = vmul.f32 %v4632_v20, %v2828_v27  ;;  %v1035_v54 = vmax.f32 %v1027_v42, 0.0  ;;  %v2277_v36 = vrot.slane %v2213_v53, 1  ;;  %v2822_v27 = vld [vmem:[%s4000_s11 + $0xa0] sm:$0x1]  ;;  %v2288_v62 = vrot.slane %v2220_v57, 1 }
  0x7a   : > { %3589 = vmatpush3.bf16.msra.mxu1 %v3586_v43  ;;  %v2793_v43 = vld [vmem:[%s4000_s11 + $0x1c8] sm:$0xff]  ;;  %v1991_v55 = vmax.f32 %v1983_v17, 0.0  ;;  %v2183_v41 = vmul.f32 %v4632_v20, %v2822_v27  ;;  %v2190_v5 = vmul.f32 %v4632_v20, %v2829_v1  ;;  %v2192_v15 = vmul.f32 %v4632_v20, %v2831_v8  ;;  %v2833_v34 = vld [vmem:[%s4000_s11 + $0x200] sm:$0xfe]  ;;  %v2834_v42 = vld [vmem:[%s4000_s11 + $0x220] sm:$0x1] }
  0x7b   : > { %3717 = vmatpush3.bf16.msra.mxu0 %v3714_v63  ;;  %3591 = vmatprep.subr.bf16.mxu1 %v3590_v6  ;;  %v2180_v63 = vmul.f32 %v4632_v20, %v2819_v22  ;;  %v2205_v39 = vadd.f32 %v4623_v24, %v2189_v33  ;;  %v3742_v22 = vpack.c.bf16 %v2842_v19, %v2841_v11  ;;  %v2823_v33 = vld [vmem:[%s4000_s11 + $0xc0] sm:$0xfe] }
  0x7c   : > { %3719 = vmatprep.subr.bf16.mxu0 %v3718_v13  ;;  %v2199_v28 = vadd.f32 %v4623_v24, %v2183_v41  ;;  %v2194_v45 = vmul.f32 %v4632_v20, %v2833_v34  ;;  %v3758_v19 = vpack.c.bf16 %v2850_v37, %v2849_v38 }
  0x7d   : > { %v2196_v48 = vadd.f32 %v4623_v24, %v2180_v63  ;;  %v2846_v63 = vld [vmem:[%s4963_s3 + $0x458] sm:$0xff] }
  0x7e   : > { %3593 = vmatpush3.bf16.msra.mxu1 %v3590_v6  ;;  %v1032_v6 = vmax.f32 %v1024_v59, 0.0  ;;  %v2844_v59 = vld [vmem:[%s4963_s3 + $0x448] sm:$0xff]  ;;  %v2215_v53 = vmax.f32 %v2199_v28, 0.0  ;;  %v2210_v57 = vadd.f32 %v4623_v24, %v2194_v45 }
  0x7f   : > { %3721 = vmatpush3.bf16.msra.mxu0 %v3718_v13  ;;  %3595 = vmatprep.subr.bf16.mxu1 %v3594_v16  ;;  %v1988_v13 = vmax.f32 %v1980_v60, 0.0  ;;  %v2212_v50 = vmax.f32 %v2196_v48, 0.0  ;;  %v2821_v60 = vld [vmem:[%s4000_s11 + $0x80] sm:$0xfe]  ;;  %v3746_v2 = vpack.c.bf16 %v2844_v59, %v2843_v35 }
  0x80   : > { %3723 = vmatprep.subr.bf16.mxu0 %v3722_v18  ;;  %v2182_v7 = vmul.f32 %v4632_v20, %v2821_v60  ;;  %v2226_v27 = vmax.f32 %v2210_v57, 0.0 }
  0x81   : > { %v2276_v30 = vrot.slane %v2212_v50, 1 }
  0x82   : > { %3597 = vmatpush3.bf16.msra.mxu1 %v3594_v16  ;;  %v1976_v16 = vmul.f32 %v4632_v20, %v2793_v43  ;;  %v2845_v43 = vld [vmem:[%s4963_s3 + $0x450] sm:$0xff]  ;;  %v2198_v48 = vadd.f32 %v4623_v24, %v2182_v7 }
  0x83   : > { %3725 = vmatpush3.bf16.msra.mxu0 %v3722_v18  ;;  %3599 = vmatprep.subr.bf16.mxu1 %v3598_v40  ;;  %v2839_v18 = vld [vmem:[%s4963_s3 + $0x420] sm:$0xff]  ;;  %v3750_v44 = vpack.c.bf16 %v2846_v63, %v2845_v43  ;;  %v2297_v43 = vrot.slane %v2226_v27, 1 }
  0x84   : > { %3727 = vmatprep.subr.bf16.mxu0 %v3726_v32  ;;  %v3738_v49 = vpack.c.bf16 %v2840_v25, %v2839_v18  ;;  %v1984_v29 = vadd.f32 %v4623_v24, %v1976_v16  ;;  %v2184_v16 = vmul.f32 %v4632_v20, %v2823_v33  ;;  %v2825_v18 = vld [vmem:[%s4000_s11 + $0x100] sm:$0xfe]  ;;  %v2826_v25 = vld [vmem:[%s4000_s11 + $0x120] sm:$0x1]  ;;  %v2214_v50 = vmax.f32 %v2198_v48, 0.0 }
  0x86   : > { %3601 = vmatpush3.bf16.msra.mxu1 %v3598_v40  ;;  %v1034_v40 = vmax.f32 %v1026_v47, 0.0  ;;  %v1992_v12 = vmax.f32 %v1984_v29, 0.0  ;;  %v2186_v29 = vmul.f32 %v4632_v20, %v2825_v18  ;;  %v2279_v60 = vrot.slane %v2214_v50, 1 }
  0x87   : > { %3729 = vmatpush3.bf16.msra.mxu0 %v3726_v32  ;;  %3762 = vmatprep.subr.bf16.mxu1 %v3730_v52  ;;  %v1029_v32 = vadd.f32 %v4623_v24, %v1021_v26 }
  0x88   : > { %3731 = vmatprep.subr.bf16.mxu0 %v3730_v52 }
  0x89   : > { %3243 = vmatmul.mubr.msk.f32.vlgmr.msra.gmra.mrb[0].mxu1 %vm4369_vm9, %v1031_v31  ;;  %v1037_v61 = vmax.f32 %v1029_v32, 0.0  ;;  %v1993_v31 = vmax.f32 %v1985_v56, 0.0  ;;  %v2200_v32 = vadd.f32 %v4623_v24, %v2184_v16 }
  0x8a   : > { %3419 = vmatmul.mubr.msk.f32.vlgmr.msra.gmra.mrb[0].mxu0 %vm4040_vm2, %v1987_v3  ;;  %3770 = vmatpush3.bf16.msra.mxu1 %v3730_v52  ;;  %v2830_v3 = vld [vmem:[%s4000_s11 + $0x1a0] sm:$0x1] }
  0x8b   : > { %3733 = vmatpush3.bf16.msra.mxu0 %v3730_v52  ;;  %3245 = vmatprep.mubr.msk.f32.mxu1 %vm4369_vm9, %v1032_v6  ;;  %v2221_v52 = vmax.f32 %v2205_v39, 0.0  ;;  %v2824_v6 = vld [vmem:[%s4000_s11 + $0xe0] sm:$0x1]  ;;  %v2191_v14 = vmul.f32 %v4632_v20, %v2830_v3  ;;  %v2216_v35 = vmax.f32 %v2200_v32, 0.0  ;;  %s2861_s11 = sshll.u32 %s4977_s18, 6 }
  0x8c   : > { %3421 = vmatprep.mubr.msk.f32.mxu0 %vm4040_vm2, %v1988_v13  ;;  %3735 = vmatprep.subr.bf16.mxu0 %v3734_v4  ;;  %v2848_v13 = vld [vmem:[%s4963_s3 + $0x468] sm:$0xff]  ;;  %v2185_v17 = vmul.f32 %v4632_v20, %v2824_v6  ;;  %s258_s22 = scalar_lea.vmem %s4964_s4, %s2861_s11 }
  0x8d   : > { %3246 = vmatmul.mubr.msk.f32.gmra.mrb[2].mxu1 %vm4369_vm9, %v1033_v10  ;;  %3763 = vmatprep.subr.bf16.mxu1 %v3734_v4  ;;  %v2289_v0 = vrot.slane %v2221_v52, 1  ;;  %v2193_v10 = vmul.f32 %v4632_v20, %v2832_v9  ;;  %v3754_v26 = vpack.c.bf16 %v2848_v13, %v2847_v23  ;;  %v2207_v39 = vadd.f32 %v4623_v24, %v2191_v14 }
  0x8e   : > { %3422 = vmatmul.mubr.msk.f32.gmra.mrb[2].mxu0 %vm4040_vm2, %v1989_v21  ;;  %3771 = vmatpush3.bf16.msra.mxu1 %v3734_v4  ;;  %v2206_v21 = vadd.f32 %v4623_v24, %v2190_v5  ;;  %v2201_v11 = vadd.f32 %v4623_v24, %v2185_v17  ;;  %v2282_v3 = vrot.slane %v2216_v35, 1 }
  0x8f   : > { %3737 = vmatpush3.bf16.msra.mxu0 %v3734_v4  ;;  %3248 = vmatprep.mubr.msk.f32.mxu1 %vm4369_vm9, %v1034_v40  ;;  %v2278_v4 = vsel %vm835_vm5, %v2276_v30, %v2277_v36  ;;  %v2290_v47 = vsel %vm835_vm5, %v2288_v62, %v2289_v0  ;;  %v2208_v40 = vadd.f32 %v4623_v24, %v2192_v15  ;;  %v2223_v56 = vmax.f32 %v2207_v39, 0.0 }
  0x90   : > { %3424 = vmatprep.mubr.msk.f32.mxu0 %vm4040_vm2, %v1990_v46  ;;  %3739 = vmatprep.subr.bf16.mxu0 %v3738_v49  ;;  %v2195_v46 = vmul.f32 %v4632_v20, %v2834_v42  ;;  %v2217_v59 = vmax.f32 %v2201_v11, 0.0 }
  0x91   : > { %3249 = vmatmul.mubr.msk.f32.gmra.mrb[4].mxu1 %vm4369_vm9, %v1035_v54  ;;  %3764 = vmatprep.subr.bf16.mxu1 %v3738_v49  ;;  %v2187_v54 = vmul.f32 %v4632_v20, %v2826_v25  ;;  %v2202_v20 = vadd.f32 %v4623_v24, %v2186_v29  ;;  %v2292_v36 = vrot.slane %v2223_v56, 1 }
  0x92   : > { %3425 = vmatmul.mubr.msk.f32.gmra.mrb[4].mxu0 %vm4040_vm2, %v1991_v55  ;;  %3772 = vmatpush3.bf16.msra.mxu1 %v3738_v49  ;;  %v2222_v55 = vmax.f32 %v2206_v21, 0.0  ;;  %v2211_v52 = vadd.f32 %v4623_v24, %v2195_v46  ;;  %v2283_v8 = vrot.slane %v2217_v59, 1 }
  0x93   : > { %3741 = vmatpush3.bf16.msra.mxu0 %v3738_v49  ;;  %3251 = vmatprep.mubr.msk.f32.mxu1 %vm4369_vm9, %v1036_v58  ;;  %v2209_v49 = vadd.f32 %v4623_v24, %v2193_v10  ;;  %v2224_v58 = vmax.f32 %v2208_v40, 0.0  ;;  %v2218_v1 = vmax.f32 %v2202_v20, 0.0 }
  0x94   : > { %3427 = vmatprep.mubr.msk.f32.mxu0 %vm4040_vm2, %v1992_v12  ;;  %3743 = vmatprep.subr.bf16.mxu0 %v3742_v22  ;;  %v2291_v30 = vrot.slane %v2222_v55, 1  ;;  %v2284_v5 = vsel %vm835_vm5, %v2282_v3, %v2283_v8 }
  0x95   : > { %3252 = vmatmul.mubr.msk.f32.gmra.mrb[6].mxu1 %vm4369_vm9, %v1037_v61  ;;  %3765 = vmatprep.subr.bf16.mxu1 %v3742_v22  ;;  %v2225_v12 = vmax.f32 %v2209_v49, 0.0  ;;  %v2280_v61 = vrot.slane %v2215_v53, 1  ;;  %v2294_v62 = vrot.slane %v2224_v58, 1 }
  0x96   : > { %3428 = vmatmul.mubr.msk.f32.gmra.mrb[6].mxu0 %vm4040_vm2, %v1993_v31  ;;  %3773 = vmatpush3.bf16.msra.mxu1 %v3742_v22  ;;  %v2227_v31 = vmax.f32 %v2211_v52, 0.0 }
  0x97   : > { %3745 = vmatpush3.bf16.msra.mxu0 %v3742_v22  ;;  %3766 = vmatprep.subr.bf16.mxu1 %v3746_v2  ;;  %v2203_v22 = vadd.f32 %v4623_v24, %v2187_v54  ;;  %v2295_v0 = vrot.slane %v2225_v12, 1  ;;  %v2293_v24 = vsel %vm835_vm5, %v2291_v30, %v2292_v36  ;;  %v2281_v7 = vsel %vm835_vm5, %v2279_v60, %v2280_v61 }
  0x98   : > { %3747 = vmatprep.subr.bf16.mxu0 %v3746_v2  ;;  %3462 = vmatprep.mubr.msk.f32.mxu0 %vm4238_vm6, %v2278_v4  ;;  %v2298_v63 = vrot.slane %v2227_v31, 1  ;;  %v2285_v4 = vrot.slane %v2218_v1, 1 }
  0x99   : > { %3468 = vmatprep.mubr.msk.f32.mxu1 %vm4238_vm6, %v2290_v47  ;;  %v2296_v9 = vsel %vm835_vm5, %v2294_v62, %v2295_v0 }
  0x9a   : > { %3774 = vmatpush3.bf16.msra.mxu1 %v3746_v2  ;;  %v2299_v33 = vsel %vm835_vm5, %v2297_v43, %v2298_v63 }
  0x9b   : > { %3749 = vmatpush3.bf16.msra.mxu0 %v3746_v2  ;;  %3767 = vmatprep.subr.bf16.mxu1 %v3750_v44  ;;  %v2219_v2 = vmax.f32 %v2203_v22, 0.0 }
  0x9c   : > { %3751 = vmatprep.subr.bf16.mxu0 %v3750_v44 }
  0x9d   : > { %v2286_v41 = vrot.slane %v2219_v2, 1 }
  0x9e   : > { %3775 = vmatpush3.bf16.msra.mxu1 %v3750_v44 }
  0x9f   : > { %3753 = vmatpush3.bf16.msra.mxu0 %v3750_v44  ;;  %3768 = vmatprep.subr.bf16.mxu1 %v3754_v26  ;;  %v2287_v6 = vsel %vm835_vm5, %v2285_v4, %v2286_v41 }
  0xa0   : > { %3755 = vmatprep.subr.bf16.mxu0 %v3754_v26 }
  0xa2   : > { %3776 = vmatpush3.bf16.msra.mxu1 %v3754_v26 }
  0xa3   : > { %3757 = vmatpush3.bf16.msra.mxu0 %v3754_v26  ;;  %3769 = vmatprep.subr.bf16.mxu1 %v3758_v19 }
  0xa4   : > { %3759 = vmatprep.subr.bf16.mxu0 %v3758_v19 }
  0xa6   : > { %3777 = vmatpush3.bf16.msra.mxu1 %v3758_v19 }
  0xa7   : > { %3761 = vmatpush3.bf16.msra.mxu0 %v3758_v19 }
  0xa9   : > { %3469 = vmatmul.mubr.msk.f32.vlgmr.msra.gmra.mrb[8].mxu1 %vm4238_vm6, %v2293_v24 }
  0xaa   : > { %3463 = vmatmul.mubr.msk.f32.vlgmr.msra.gmra.mrb[0].mxu0 %vm4238_vm6, %v2281_v7  ;;  %3471 = vmatprep.mubr.msk.f32.mxu1 %vm4238_vm6, %v2296_v9 }
  0xab   : > { %3465 = vmatprep.mubr.msk.f32.mxu0 %vm4238_vm6, %v2284_v5 }
  0xad   : > { %3472 = vmatmul.mubr.msk.f32.gmra.mrb[10].mxu1 %vm4238_vm6, %v2299_v33 }
  0xae   : > { %3466 = vmatmul.mubr.msk.f32.gmra.mrb[2].mxu0 %vm4238_vm6, %v2287_v6 }
 0x15c   : > { %v3244_v23 = vpop.f32.mrb[0].mxu1 }
 0x15d   : > { %v1193_v13 = vpop.f32.mrb[1].mxu1 }
 0x160   : > { %v3247_v47 = vpop.f32.mrb[2].mxu1 }
 0x161   : > { %v1203_v14 = vpop.f32.mrb[3].mxu1 }
 0x164   : > { %v3250_v15 = vpop.f32.mrb[4].mxu1 }
 0x165   : > { %v3426_v44 = vpop.f32.mrb[4].mxu0  ;;  %v1213_v10 = vpop.f32.mrb[5].mxu1 }
 0x166   : > { %v3782_v34 = vadd.f32 %v3426_v44, %v3250_v15  ;;  %v2137_v42 = vpop.f32.mrb[5].mxu0 }
 0x167   : > { %v3784_v16 = vadd.f32 %v2137_v42, %v1213_v10 }
 0x168   : > { %v3253_v17 = vpop.f32.mrb[6].mxu1 }
 0x169   : > { %v3429_v18 = vpop.f32.mrb[6].mxu0  ;;  %v1223_v25 = vpop.f32.mrb[7].mxu1 }
 0x16a   : > { %v3786_v26 = vadd.f32 %v3429_v18, %v3253_v17  ;;  %v2147_v48 = vpop.f32.mrb[7].mxu0 }
 0x16b   : > { %v3788_v28 = vadd.f32 %v2147_v48, %v1223_v25 }
 0x17c   : > { %v3470_v51 = vpop.f32.mrb[8].mxu1 }
 0x17d   : > { %v3464_v21 = vpop.f32.mrb[0].mxu0  ;;  %v3783_v38 = vadd.f32 %v3782_v34, %v3470_v51  ;;  %v2419_v37 = vpop.f32.mrb[9].mxu1 }
 0x17e   : > { %v3778_v39 = vadd.f32 %v3464_v21, %v3244_v23  ;;  %v2399_v40 = vpop.f32.mrb[1].mxu0  ;;  %v3785_v45 = vadd.f32 %v3784_v16, %v2419_v37 }
 0x17f   : > { %2451 = vst [vmem:[%s258_s22 + $0x28] sm:$0xff] %v3783_v38  ;;  %v3779_v46 = vadd.f32 %v2399_v40, %v1193_v13  ;;  %v2472_v30 = vmul.f32 %v3783_v38, %v3783_v38 }
 0x180   : > { %2447 = vst [vmem:[%s258_s22 + $0x8] sm:$0xff] %v3778_v39  ;;  %v2468_v49 = vmul.f32 %v3778_v39, %v3778_v39  ;;  %2450 = vst [vmem:[%s258_s22 + $0x20] sm:$0xff] %v3785_v45  ;;  %v3473_v29 = vpop.f32.mrb[10].mxu1  ;;  %v2471_v59 = vmul.f32 %v3785_v45, %v3785_v45 }
 0x181   : > { %2446 = vst [vmem:[%s258_s22] sm:$0xff] %v3779_v46  ;;  %v2454_v54 = vadd.f32 %v3779_v46, %v3778_v39  ;;  %v2467_v32 = vmul.f32 %v3779_v46, %v3779_v46  ;;  %v3467_v11 = vpop.f32.mrb[2].mxu0  ;;  %v3787_v19 = vadd.f32 %v3786_v26, %v3473_v29  ;;  %v2429_v50 = vpop.f32.mrb[11].mxu1 }
 0x182   : > { %v3780_v53 = vadd.f32 %v3467_v11, %v3247_v47  ;;  %v2409_v55 = vpop.f32.mrb[3].mxu0  ;;  %v3789_v56 = vadd.f32 %v3788_v28, %v2429_v50 }
 0x183   : > { %v2475_v57 = vadd.f32 %v2468_v49, %v2467_v32  ;;  %2453 = vst [vmem:[%s258_s22 + $0x38] sm:$0xff] %v3787_v19  ;;  %v3781_v52 = vadd.f32 %v2409_v55, %v1203_v14  ;;  %v2474_v1 = vmul.f32 %v3787_v19, %v3787_v19 }
 0x184   : > { %2449 = vst [vmem:[%s258_s22 + $0x18] sm:$0xff] %v3780_v53  ;;  %2452 = vst [vmem:[%s258_s22 + $0x30] sm:$0xff] %v3789_v56  ;;  %v2470_v20 = vmul.f32 %v3780_v53, %v3780_v53  ;;  %v2473_v62 = vmul.f32 %v3789_v56, %v3789_v56 }
 0x185   : > { %2448 = vst [vmem:[%s258_s22 + $0x10] sm:$0xff] %v3781_v52  ;;  %v2455_v58 = vadd.f32 %v3781_v52, %v2454_v54  ;;  %v2469_v12 = vmul.f32 %v3781_v52, %v3781_v52 }
 0x187   : > { %v2456_v22 = vadd.f32 %v3780_v53, %v2455_v58  ;;  %v2476_v35 = vadd.f32 %v2475_v57, %v2469_v12 }
 0x189   : > { %v2477_v60 = vadd.f32 %v2476_v35, %v2470_v20  ;;  %v2457_v61 = vadd.f32 %v3785_v45, %v2456_v22 }
 0x18b   : > { %v2458_v36 = vadd.f32 %v3783_v38, %v2457_v61  ;;  %v2478_v27 = vadd.f32 %v2477_v60, %v2471_v59 }
 0x18d   : > { %v2459_v31 = vadd.f32 %v3789_v56, %v2458_v36  ;;  %v2479_v0 = vadd.f32 %v2478_v27, %v2472_v30 }
 0x18f   : > { %v2460_v2 = vadd.f32 %v3787_v19, %v2459_v31  ;;  %v2480_v3 = vadd.f32 %v2479_v0, %v2473_v62 }
 0x191   : > { %v2461_v8 = vrot.slane %v2460_v2, 4  ;;  %v2481_v24 = vadd.f32 %v2480_v3, %v2474_v1 }
 0x193   : > { %v2462_v43 = vadd.f32 %v2461_v8, %v2460_v2  ;;  %v2482_v63 = vrot.slane %v2481_v24, 4 }
 0x195   : > { %v2463_v7 = vrot.slane %v2462_v43, 2  ;;  %v2483_v9 = vadd.f32 %v2482_v63, %v2481_v24 }
 0x197   : > { %v2464_v4 = vadd.f32 %v2463_v7, %v2462_v43  ;;  %v2484_v41 = vrot.slane %v2483_v9, 2 }
 0x199   : > { %v2465_v5 = vrot.slane %v2464_v4, 1  ;;  %v2485_v33 = vadd.f32 %v2484_v41, %v2483_v9 }
 0x19b   : > { %v2486_v6 = vrot.slane %v2485_v33, 1  ;;  %v2466_v23 = vadd.f32 %v2465_v5, %v2464_v4 }
 0x19d   : > { %v2487_v13 = vadd.f32 %v2486_v6, %v2485_v33 }
 0x19f   : > { %v2489_v47 = vsel %vm2488_vm10, %v2466_v23, %v2487_v13 }
 0x1a0   : > { %2490 = vst [vmem:[%s266_s26] sm:$0x3] %v2489_v47 }
 0x1a1 PF: > { %s16_s20 = sadd.s32 1, %s3892_s20   ;;  %s4972_s18 = smov %s3888_s19 }
 0x1a2   : > { %p13_p5 = scmp.ge.s32.totalorder %s16_s20, 4   ;;  %s4973_s19 = smov %s4975_s21 }
 0x1a4   :  { %15 = sbr.rel (!%p13_p5) target bundleno = 2 (0x2), region = 88 }

// kernel: bottleneck_forward.8
= control target key start
LH: loop header
LB: loop body
LE: loop exit
PB: predicated region body
PF: predicated region fallthrough
CT: control target
= control target key end

     0   :  { %vm264_vm0 = vcmask 1040384   ;;  %s578_s1 = inlined_call_operand.vmem [shape: f32[128,128], index: 1, kind: input, shape index: {}]   ;;  %s579_s0 = inlined_call_operand.vmem [shape: f32[128,128], index: 0, kind: input, shape index: {}]   ;;  %s580_s2 = inlined_call_operand.vmem [shape: f32[128,128], index: 2, kind: output, shape index: {0}]   ;;  %s581_s3 = inlined_call_operand.vmem [shape: f32[1,2,128], index: 3, kind: output, shape index: {1}]  }
   0x1   :  { %v29_v0 = vld [vmem:[%s578_s1] sm:$0xff]  ;;  %v30_v1 = vld [vmem:[%s578_s1 + $0x8] sm:$0xff]  ;;  %v31_v2 = vld [vmem:[%s578_s1 + $0x10] sm:$0xff] }
   0x2   :  { %v363_v3 = vpack.c.bf16 %v30_v1, %v29_v0  ;;  %v32_v4 = vld [vmem:[%s578_s1 + $0x18] sm:$0xff]  ;;  %v33_v6 = vld [vmem:[%s578_s1 + $0x20] sm:$0xff]  ;;  %v34_v7 = vld [vmem:[%s578_s1 + $0x28] sm:$0xff] }
   0x3   :  { %v367_v5 = vpack.c.bf16 %v32_v4, %v31_v2  ;;  %v371_v8 = vpack.c.bf16 %v34_v7, %v33_v6  ;;  %v13_v9 = vld [vmem:[%s579_s0] sm:$0xff]  ;;  %v35_v10 = vld [vmem:[%s578_s1 + $0x30] sm:$0xff]  ;;  %v36_v11 = vld [vmem:[%s578_s1 + $0x38] sm:$0xff] }
   0x4   :  { %364 = vmatprep.subr.bf16.mxu0 %v363_v3  ;;  %395 = vmatprep.subr.bf16.mxu1 %v363_v3  ;;  %v21_v12 = vld [vmem:[%s579_s0 + $0x40] sm:$0xff]  ;;  %v375_v13 = vpack.c.bf16 %v36_v11, %v35_v10  ;;  %v38_v15 = vld [vmem:[%s578_s1 + $0x48] sm:$0xff]  ;;  %v39_v17 = vld [vmem:[%s578_s1 + $0x50] sm:$0xff] }
   0x5   :  { %366 = vmatpush3.bf16.msra.mxu0 %v363_v3  ;;  %403 = vmatpush3.bf16.msra.mxu1 %v363_v3  ;;  %v37_v14 = vld [vmem:[%s578_s1 + $0x40] sm:$0xff]  ;;  %v40_v18 = vld [vmem:[%s578_s1 + $0x58] sm:$0xff]  ;;  %v42_v21 = vld [vmem:[%s578_s1 + $0x68] sm:$0xff] }
   0x6   :  { %368 = vmatprep.subr.bf16.mxu0 %v367_v5  ;;  %396 = vmatprep.subr.bf16.mxu1 %v367_v5  ;;  %v379_v16 = vpack.c.bf16 %v38_v15, %v37_v14  ;;  %v383_v19 = vpack.c.bf16 %v40_v18, %v39_v17  ;;  %v41_v20 = vld [vmem:[%s578_s1 + $0x60] sm:$0xff]  ;;  %v43_v23 = vld [vmem:[%s578_s1 + $0x70] sm:$0xff]  ;;  %v44_v24 = vld [vmem:[%s578_s1 + $0x78] sm:$0xff] }
   0x7   :  { %339 = vmatprep.mubr.f32.mxu0 %v13_v9  ;;  %351 = vmatprep.mubr.f32.mxu1 %v21_v12  ;;  %v387_v22 = vpack.c.bf16 %v42_v21, %v41_v20  ;;  %v391_v25 = vpack.c.bf16 %v44_v24, %v43_v23  ;;  %v14_v26 = vld [vmem:[%s579_s0 + $0x8] sm:$0xff]  ;;  %v15_v28 = vld [vmem:[%s579_s0 + $0x10] sm:$0xff]  ;;  %v16_v30 = vld [vmem:[%s579_s0 + $0x18] sm:$0xff] }
   0x8   :  { %v22_v27 = vld [vmem:[%s579_s0 + $0x48] sm:$0xff]  ;;  %v23_v29 = vld [vmem:[%s579_s0 + $0x50] sm:$0xff]  ;;  %v24_v31 = vld [vmem:[%s579_s0 + $0x58] sm:$0xff] }
   0x9   :  { %370 = vmatpush3.bf16.msra.mxu0 %v367_v5  ;;  %404 = vmatpush3.bf16.msra.mxu1 %v367_v5  ;;  %v17_v32 = vld [vmem:[%s579_s0 + $0x20] sm:$0xff]  ;;  %v18_v34 = vld [vmem:[%s579_s0 + $0x28] sm:$0xff]  ;;  %v19_v36 = vld [vmem:[%s579_s0 + $0x30] sm:$0xff] }
   0xa   :  { %372 = vmatprep.subr.bf16.mxu0 %v371_v8  ;;  %397 = vmatprep.subr.bf16.mxu1 %v371_v8  ;;  %v25_v33 = vld [vmem:[%s579_s0 + $0x60] sm:$0xff]  ;;  %v26_v35 = vld [vmem:[%s579_s0 + $0x68] sm:$0xff]  ;;  %v27_v37 = vld [vmem:[%s579_s0 + $0x70] sm:$0xff] }
   0xb   :  { %v20_v38 = vld [vmem:[%s579_s0 + $0x38] sm:$0xff] }
   0xc   :  { %v28_v39 = vld [vmem:[%s579_s0 + $0x78] sm:$0xff] }
   0xd   :  { %374 = vmatpush3.bf16.msra.mxu0 %v371_v8  ;;  %405 = vmatpush3.bf16.msra.mxu1 %v371_v8 }
   0xe   :  { %376 = vmatprep.subr.bf16.mxu0 %v375_v13  ;;  %398 = vmatprep.subr.bf16.mxu1 %v375_v13 }
  0x11   :  { %378 = vmatpush3.bf16.msra.mxu0 %v375_v13  ;;  %406 = vmatpush3.bf16.msra.mxu1 %v375_v13 }
  0x12   :  { %380 = vmatprep.subr.bf16.mxu0 %v379_v16  ;;  %399 = vmatprep.subr.bf16.mxu1 %v379_v16 }
  0x15   :  { %382 = vmatpush3.bf16.msra.mxu0 %v379_v16  ;;  %407 = vmatpush3.bf16.msra.mxu1 %v379_v16 }
  0x16   :  { %384 = vmatprep.subr.bf16.mxu0 %v383_v19  ;;  %400 = vmatprep.subr.bf16.mxu1 %v383_v19 }
  0x19   :  { %386 = vmatpush3.bf16.msra.mxu0 %v383_v19  ;;  %408 = vmatpush3.bf16.msra.mxu1 %v383_v19 }
  0x1a   :  { %388 = vmatprep.subr.bf16.mxu0 %v387_v22  ;;  %401 = vmatprep.subr.bf16.mxu1 %v387_v22 }
  0x1d   :  { %390 = vmatpush3.bf16.msra.mxu0 %v387_v22  ;;  %409 = vmatpush3.bf16.msra.mxu1 %v387_v22 }
  0x1e   :  { %392 = vmatprep.subr.bf16.mxu0 %v391_v25  ;;  %402 = vmatprep.subr.bf16.mxu1 %v391_v25 }
  0x21   :  { %394 = vmatpush3.bf16.msra.mxu0 %v391_v25  ;;  %410 = vmatpush3.bf16.msra.mxu1 %v391_v25 }
  0x24   :  { %340 = vmatmul.mubr.f32.vlgmr.msra.gmra.mrb[0].mxu0 %v14_v26  ;;  %352 = vmatmul.mubr.f32.vlgmr.msra.gmra.mrb[0].mxu1 %v22_v27 }
  0x25   :  { %342 = vmatprep.mubr.f32.mxu0 %v15_v28  ;;  %354 = vmatprep.mubr.f32.mxu1 %v23_v29 }
  0x28   :  { %343 = vmatmul.mubr.f32.gmra.mrb[2].mxu0 %v16_v30  ;;  %355 = vmatmul.mubr.f32.gmra.mrb[2].mxu1 %v24_v31 }
  0x29   :  { %345 = vmatprep.mubr.f32.mxu0 %v17_v32  ;;  %357 = vmatprep.mubr.f32.mxu1 %v25_v33 }
  0x2c   :  { %346 = vmatmul.mubr.f32.gmra.mrb[4].mxu0 %v18_v34  ;;  %358 = vmatmul.mubr.f32.gmra.mrb[4].mxu1 %v26_v35 }
  0x2d   :  { %348 = vmatprep.mubr.f32.mxu0 %v19_v36  ;;  %360 = vmatprep.mubr.f32.mxu1 %v27_v37 }
  0x30   :  { %349 = vmatmul.mubr.f32.gmra.mrb[6].mxu0 %v20_v38  ;;  %361 = vmatmul.mubr.f32.gmra.mrb[6].mxu1 %v28_v39 }
  0xf7   :  { %v341_v40 = vpop.f32.mrb[0].mxu0  ;;  %v353_v41 = vpop.f32.mrb[0].mxu1 }
  0xf8   :  { %191 = vst [vmem:[%s580_s2 + $0x8] sm:$0xff] %v341_v40  ;;  %v228_v42 = vmul.f32 %v341_v40, %v341_v40  ;;  %v111_v43 = vpop.f32.mrb[1].mxu0  ;;  %199 = vst [vmem:[%s580_s2 + $0x48] sm:$0xff] %v353_v41  ;;  %v151_v44 = vpop.f32.mrb[1].mxu1  ;;  %v236_v16 = vmul.f32 %v353_v41, %v353_v41 }
  0xf9   :  { %190 = vst [vmem:[%s580_s2] sm:$0xff] %v111_v43  ;;  %v206_v45 = vadd.f32 %v341_v40, %v111_v43  ;;  %v227_v46 = vmul.f32 %v111_v43, %v111_v43  ;;  %198 = vst [vmem:[%s580_s2 + $0x40] sm:$0xff] %v151_v44  ;;  %v235_v13 = vmul.f32 %v151_v44, %v151_v44 }
  0xfb   :  { %v243_v47 = vadd.f32 %v228_v42, %v227_v46  ;;  %v344_v48 = vpop.f32.mrb[2].mxu0  ;;  %v356_v49 = vpop.f32.mrb[2].mxu1 }
  0xfc   :  { %193 = vst [vmem:[%s580_s2 + $0x18] sm:$0xff] %v344_v48  ;;  %v121_v50 = vpop.f32.mrb[3].mxu0  ;;  %201 = vst [vmem:[%s580_s2 + $0x58] sm:$0xff] %v356_v49  ;;  %v161_v51 = vpop.f32.mrb[3].mxu1  ;;  %v230_v54 = vmul.f32 %v344_v48, %v344_v48  ;;  %v238_v22 = vmul.f32 %v356_v49, %v356_v49 }
  0xfd   :  { %192 = vst [vmem:[%s580_s2 + $0x10] sm:$0xff] %v121_v50  ;;  %v207_v52 = vadd.f32 %v206_v45, %v121_v50  ;;  %v229_v53 = vmul.f32 %v121_v50, %v121_v50  ;;  %200 = vst [vmem:[%s580_s2 + $0x50] sm:$0xff] %v161_v51  ;;  %v237_v19 = vmul.f32 %v161_v51, %v161_v51 }
  0xff   :  { %v244_v55 = vadd.f32 %v243_v47, %v229_v53  ;;  %v347_v56 = vpop.f32.mrb[4].mxu0  ;;  %v208_v57 = vadd.f32 %v344_v48, %v207_v52  ;;  %v359_v58 = vpop.f32.mrb[4].mxu1 }
 0x100   :  { %195 = vst [vmem:[%s580_s2 + $0x28] sm:$0xff] %v347_v56  ;;  %v131_v59 = vpop.f32.mrb[5].mxu0  ;;  %203 = vst [vmem:[%s580_s2 + $0x68] sm:$0xff] %v359_v58  ;;  %v171_v60 = vpop.f32.mrb[5].mxu1  ;;  %v232_v0 = vmul.f32 %v347_v56, %v347_v56  ;;  %v240_v28 = vmul.f32 %v359_v58, %v359_v58 }
 0x101   :  { %194 = vst [vmem:[%s580_s2 + $0x20] sm:$0xff] %v131_v59  ;;  %v209_v61 = vadd.f32 %v208_v57, %v131_v59  ;;  %v231_v62 = vmul.f32 %v131_v59, %v131_v59  ;;  %v245_v63 = vadd.f32 %v244_v55, %v230_v54  ;;  %202 = vst [vmem:[%s580_s2 + $0x60] sm:$0xff] %v171_v60 }
 0x102   :  { %v239_v25 = vmul.f32 %v171_v60, %v171_v60 }
 0x103   :  { %v246_v1 = vadd.f32 %v245_v63, %v231_v62  ;;  %v350_v2 = vpop.f32.mrb[6].mxu0  ;;  %v210_v3 = vadd.f32 %v347_v56, %v209_v61  ;;  %v362_v4 = vpop.f32.mrb[6].mxu1 }
 0x104   :  { %197 = vst [vmem:[%s580_s2 + $0x38] sm:$0xff] %v350_v2  ;;  %v141_v5 = vpop.f32.mrb[7].mxu0  ;;  %205 = vst [vmem:[%s580_s2 + $0x78] sm:$0xff] %v362_v4  ;;  %v181_v6 = vpop.f32.mrb[7].mxu1  ;;  %v234_v10 = vmul.f32 %v350_v2, %v350_v2  ;;  %v242_v34 = vmul.f32 %v362_v4, %v362_v4 }
 0x105   :  { %196 = vst [vmem:[%s580_s2 + $0x30] sm:$0xff] %v141_v5  ;;  %v211_v7 = vadd.f32 %v210_v3, %v141_v5  ;;  %v233_v8 = vmul.f32 %v141_v5, %v141_v5  ;;  %v247_v9 = vadd.f32 %v246_v1, %v232_v0  ;;  %204 = vst [vmem:[%s580_s2 + $0x70] sm:$0xff] %v181_v6 }
 0x106   :  { %v241_v31 = vmul.f32 %v181_v6, %v181_v6 }
 0x107   :  { %v212_v11 = vadd.f32 %v350_v2, %v211_v7  ;;  %v248_v12 = vadd.f32 %v247_v9, %v233_v8 }
 0x109   :  { %v249_v14 = vadd.f32 %v248_v12, %v234_v10  ;;  %v213_v15 = vadd.f32 %v212_v11, %v151_v44 }
 0x10b   :  { %v250_v17 = vadd.f32 %v249_v14, %v235_v13  ;;  %v214_v18 = vadd.f32 %v353_v41, %v213_v15 }
 0x10d   :  { %v215_v20 = vadd.f32 %v214_v18, %v161_v51  ;;  %v251_v21 = vadd.f32 %v250_v17, %v236_v16 }
 0x10f   :  { %v252_v23 = vadd.f32 %v251_v21, %v237_v19  ;;  %v216_v24 = vadd.f32 %v356_v49, %v215_v20 }
 0x111   :  { %v217_v26 = vadd.f32 %v216_v24, %v171_v60  ;;  %v253_v27 = vadd.f32 %v252_v23, %v238_v22 }
 0x113   :  { %v254_v29 = vadd.f32 %v253_v27, %v239_v25  ;;  %v218_v30 = vadd.f32 %v359_v58, %v217_v26 }
 0x115   :  { %v219_v32 = vadd.f32 %v218_v30, %v181_v6  ;;  %v255_v33 = vadd.f32 %v254_v29, %v240_v28 }
 0x117   :  { %v220_v35 = vadd.f32 %v362_v4, %v219_v32  ;;  %v256_v36 = vadd.f32 %v255_v33, %v241_v31 }
 0x119   :  { %v221_v37 = vrot.slane %v220_v35, 4  ;;  %v257_v38 = vadd.f32 %v256_v36, %v242_v34 }
 0x11b   :  { %v222_v39 = vadd.f32 %v221_v37, %v220_v35  ;;  %v258_v40 = vrot.slane %v257_v38, 4 }
 0x11d   :  { %v223_v41 = vrot.slane %v222_v39, 2  ;;  %v259_v42 = vadd.f32 %v258_v40, %v257_v38 }
 0x11f   :  { %v224_v43 = vadd.f32 %v223_v41, %v222_v39  ;;  %v260_v44 = vrot.slane %v259_v42, 2 }
 0x121   :  { %v225_v45 = vrot.slane %v224_v43, 1  ;;  %v261_v46 = vadd.f32 %v260_v44, %v259_v42 }
 0x123   :  { %v262_v47 = vrot.slane %v261_v46, 1  ;;  %v226_v48 = vadd.f32 %v225_v45, %v224_v43 }
 0x125   :  { %v263_v49 = vadd.f32 %v262_v47, %v261_v46 }
 0x127   :  { %v265_v50 = vsel %vm264_vm0, %v226_v48, %v263_v49 }
 0x128   :  { %266 = vst [vmem:[%s581_s3] sm:$0x3] %v265_v50 }

// kernel: bottleneck_forward.9
= control target key start
LH: loop header
LB: loop body
LE: loop exit
PB: predicated region body
PF: predicated region fallthrough
CT: control target
= control target key end

     0   :  { %s473_s0 = inlined_call_operand.vmem [shape: f32[128,128], index: 0, kind: input, shape index: {}]   ;;  %s474_s1 = inlined_call_operand.vmem [shape: f32[1,128], index: 1, kind: input, shape index: {}]   ;;  %s475_s2 = inlined_call_operand.vmem [shape: f32[1,128], index: 2, kind: input, shape index: {}]   ;;  %s476_s3 = inlined_call_operand.vmem [shape: f32[128,128], index: 3, kind: input, shape index: {}]   ;;  %s477_s4 = inlined_call_operand.vmem [shape: f32[1,128], index: 4, kind: input, shape index: {}]   ;;  %s478_s5 = inlined_call_operand.vmem [shape: f32[1,128], index: 5, kind: input, shape index: {}]   ;;  %s479_s6 = inlined_call_operand.hbm [shape: f32[128,128], index: 6, kind: output, shape index: {}]  }
   0x1   :  { %v24_v0 = vld [vmem:[%s473_s0] sm:$0xff]  ;;  %v25_v8 = vld [vmem:[%s473_s0 + $0x8] sm:$0xff]  ;;  %v26_v10 = vld [vmem:[%s473_s0 + $0x10] sm:$0xff] }
   0x2   :  { %v287_v1 = vld [vmem:[%s474_s1] ss:$0 sm:$0xff]  ;;  %v87_v9 = vld [vmem:[%s476_s3 + $0x8] sm:$0xff]  ;;  %v88_v15 = vld [vmem:[%s476_s3 + $0x10] sm:$0xff] }
   0x3   :  { %v292_v2 = vld [vmem:[%s475_s2] ss:$0 sm:$0xff]  ;;  %v47_v3 = vmul.f32 %v287_v1, %v24_v0  ;;  %v48_v12 = vmul.f32 %v287_v1, %v25_v8  ;;  %v49_v14 = vmul.f32 %v287_v1, %v26_v10  ;;  %v27_v16 = vld [vmem:[%s473_s0 + $0x18] sm:$0xff]  ;;  %v29_v24 = vld [vmem:[%s473_s0 + $0x28] sm:$0xff] }
   0x4   :  { %v86_v4 = vld [vmem:[%s476_s3] sm:$0xff]  ;;  %v89_v17 = vld [vmem:[%s476_s3 + $0x18] sm:$0xff]  ;;  %v50_v20 = vmul.f32 %v287_v1, %v27_v16  ;;  %v91_v29 = vld [vmem:[%s476_s3 + $0x28] sm:$0xff]  ;;  %v52_v38 = vmul.f32 %v287_v1, %v29_v24 }
   0x5   :  { %v301_v5 = vld [vmem:[%s477_s4] ss:$0 sm:$0xff]  ;;  %v70_v11 = vadd.f32 %v292_v2, %v47_v3  ;;  %v71_v25 = vadd.f32 %v292_v2, %v48_v12  ;;  %v72_v27 = vadd.f32 %v292_v2, %v49_v14  ;;  %v30_v34 = vld [vmem:[%s473_s0 + $0x30] sm:$0xff]  ;;  %v31_v44 = vld [vmem:[%s473_s0 + $0x38] sm:$0xff] }
   0x6   :  { %v306_v6 = vld [vmem:[%s478_s5] ss:$0 sm:$0xff]  ;;  %v109_v7 = vmul.f32 %v301_v5, %v86_v4  ;;  %v110_v13 = vmul.f32 %v301_v5, %v87_v9  ;;  %v111_v19 = vmul.f32 %v301_v5, %v88_v15  ;;  %v112_v21 = vmul.f32 %v301_v5, %v89_v17  ;;  %v92_v39 = vld [vmem:[%s476_s3 + $0x30] sm:$0xff]  ;;  %v93_v45 = vld [vmem:[%s476_s3 + $0x38] sm:$0xff] }
   0x7   :  { %v28_v22 = vld [vmem:[%s473_s0 + $0x20] sm:$0xff]  ;;  %v73_v32 = vadd.f32 %v292_v2, %v50_v20  ;;  %v114_v43 = vmul.f32 %v301_v5, %v91_v29  ;;  %v75_v48 = vadd.f32 %v292_v2, %v52_v38  ;;  %v53_v49 = vmul.f32 %v287_v1, %v30_v34  ;;  %v33_v56 = vld [vmem:[%s473_s0 + $0x48] sm:$0xff]  ;;  %v34_v4 = vld [vmem:[%s473_s0 + $0x50] sm:$0xff] }
   0x8   :  { %v132_v18 = vadd.f32 %v306_v6, %v109_v7  ;;  %v90_v23 = vld [vmem:[%s476_s3 + $0x20] sm:$0xff]  ;;  %v133_v26 = vadd.f32 %v306_v6, %v110_v13  ;;  %v51_v28 = vmul.f32 %v287_v1, %v28_v22  ;;  %v134_v31 = vadd.f32 %v306_v6, %v111_v19  ;;  %v95_v3 = vld [vmem:[%s476_s3 + $0x48] sm:$0xff] }
   0x9   :  { %v135_v33 = vadd.f32 %v306_v6, %v112_v21  ;;  %v113_v37 = vmul.f32 %v301_v5, %v90_v23  ;;  %v32_v50 = vld [vmem:[%s473_s0 + $0x40] sm:$0xff]  ;;  %v137_v54 = vadd.f32 %v306_v6, %v114_v43  ;;  %v115_v55 = vmul.f32 %v301_v5, %v92_v39 }
   0xa   :  { %v148_v30 = vadd.f32 %v132_v18, %v70_v11  ;;  %v149_v35 = vadd.f32 %v133_v26, %v71_v25  ;;  %v74_v36 = vadd.f32 %v292_v2, %v51_v28  ;;  %v150_v41 = vadd.f32 %v134_v31, %v72_v27  ;;  %v94_v51 = vld [vmem:[%s476_s3 + $0x40] sm:$0xff] }
   0xb   :  { %v151_v42 = vadd.f32 %v135_v33, %v73_v32  ;;  %v136_v47 = vadd.f32 %v306_v6, %v113_v37  ;;  %v76_v58 = vadd.f32 %v292_v2, %v53_v49  ;;  %v54_v59 = vmul.f32 %v287_v1, %v31_v44 }
   0xc   :  { %v164_v40 = vmax.f32 %v148_v30, 0.0  ;;  %v165_v46 = vmax.f32 %v149_v35, 0.0  ;;  %v166_v52 = vmax.f32 %v150_v41, 0.0  ;;  %v116_v60 = vmul.f32 %v301_v5, %v93_v45 }
   0xd   :  { %v167_v53 = vmax.f32 %v151_v42, 0.0  ;;  %v152_v57 = vadd.f32 %v136_v47, %v74_v36  ;;  %v153_v61 = vadd.f32 %v137_v54, %v75_v48  ;;  %v138_v62 = vadd.f32 %v306_v6, %v115_v55 }
   0xe   :  { %180 = vst [vmem:[#allocation2] sm:$0xff] %v164_v40  ;;  %181 = vst [vmem:[#allocation2 + $0x8] sm:$0xff] %v165_v46  ;;  %v55_v63 = vmul.f32 %v287_v1, %v32_v50  ;;  %v117_v0 = vmul.f32 %v301_v5, %v94_v51 }
   0xf   :  { %182 = vst [vmem:[#allocation2 + $0x10] sm:$0xff] %v166_v52  ;;  %183 = vst [vmem:[#allocation2 + $0x18] sm:$0xff] %v167_v53 }
  0x10   :  { %11 = vsyncpa [#allocation3], 0  ;;  %v168_v7 = vmax.f32 %v152_v57, 0.0  ;;  %v77_v8 = vadd.f32 %v292_v2, %v54_v59  ;;  %v139_v9 = vadd.f32 %v306_v6, %v116_v60  ;;  %v56_v10 = vmul.f32 %v287_v1, %v33_v56  ;;  %v96_v11 = vld [vmem:[%s476_s3 + $0x50] sm:$0xff]  ;;  %v35_v12 = vld [vmem:[%s473_s0 + $0x58] sm:$0xff] }
  0x11   :  { %v169_v13 = vmax.f32 %v153_v61, 0.0  ;;  %v154_v14 = vadd.f32 %v138_v62, %v76_v58  ;;  %v78_v15 = vadd.f32 %v292_v2, %v55_v63  ;;  %v140_v16 = vadd.f32 %v306_v6, %v117_v0  ;;  %v97_v17 = vld [vmem:[%s476_s3 + $0x58] sm:$0xff]  ;;  %v36_v22 = vld [vmem:[%s473_s0 + $0x60] sm:$0xff]  ;;  %v37_v28 = vld [vmem:[%s473_s0 + $0x68] sm:$0xff] }
  0x12   :  { %184 = vst [vmem:[#allocation2 + $0x20] sm:$0xff] %v168_v7  ;;  %v155_v18 = vadd.f32 %v139_v9, %v77_v8  ;;  %v79_v19 = vadd.f32 %v292_v2, %v56_v10  ;;  %v118_v20 = vmul.f32 %v301_v5, %v95_v3  ;;  %v57_v21 = vmul.f32 %v287_v1, %v34_v4  ;;  %v98_v27 = vld [vmem:[%s476_s3 + $0x60] sm:$0xff]  ;;  %v99_v33 = vld [vmem:[%s476_s3 + $0x68] sm:$0xff]  ;;  %v38_v34 = vld [vmem:[%s473_s0 + $0x70] sm:$0xff] }
  0x13   :  { %185 = vst [vmem:[#allocation2 + $0x28] sm:$0xff] %v169_v13  ;;  %v170_v23 = vmax.f32 %v154_v14, 0.0  ;;  %v156_v24 = vadd.f32 %v140_v16, %v78_v15  ;;  %v119_v25 = vmul.f32 %v301_v5, %v96_v11  ;;  %v58_v26 = vmul.f32 %v287_v1, %v35_v12  ;;  %v100_v43 = vld [vmem:[%s476_s3 + $0x70] sm:$0xff]  ;;  %v39_v48 = vld [vmem:[%s473_s0 + $0x78] sm:$0xff]  ;;  %s243_s0 = smov [#allocation2]  }
  0x14   :  { %v171_v29 = vmax.f32 %v155_v18, 0.0  ;;  %v141_v30 = vadd.f32 %v306_v6, %v118_v20  ;;  %v80_v31 = vadd.f32 %v292_v2, %v57_v21  ;;  %v120_v32 = vmul.f32 %v301_v5, %v97_v17  ;;  %v101_v49 = vld [vmem:[%s476_s3 + $0x78] sm:$0xff]  ;;  %s201_s3 = sshll.u32 %s243_s0, 4  ;;  %s202_s3 = int_to_ptr.vmem [resolvable:$true] %s201_s3 }
  0x15   :  { %186 = vst [vmem:[#allocation2 + $0x30] sm:$0xff] %v170_v23  ;;  %v172_v35 = vmax.f32 %v156_v24, 0.0  ;;  %v142_v36 = vadd.f32 %v306_v6, %v119_v25  ;;  %v81_v37 = vadd.f32 %v292_v2, %v58_v26  ;;  %v59_v38 = vmul.f32 %v287_v1, %v36_v22  ;;  %s219_s11 = scalar_lea.vmem %s202_s3, 2048  ;;  %p224_p1 = scmp.lt.s32.totalorder %s202_s3, %s202_s3 }
  0x16   :  { %187 = vst [vmem:[#allocation2 + $0x38] sm:$0xff] %v171_v29  ;;  %v157_v39 = vadd.f32 %v141_v30, %v79_v19  ;;  %v143_v40 = vadd.f32 %v306_v6, %v120_v32  ;;  %v121_v41 = vmul.f32 %v301_v5, %v98_v27  ;;  %v60_v42 = vmul.f32 %v287_v1, %v37_v28  ;;  %p220_p0 = scmp.ne.s32.totalorder %s202_s3, %s219_s11  ;;  %p225_p2 = scmp.lt.s32.totalorder %s219_s11, %s219_s11 }
  0x17   :  { %188 = vst [vmem:[#allocation2 + $0x40] sm:$0xff] %v172_v35  ;;  %v158_v44 = vadd.f32 %v142_v36, %v80_v31  ;;  %v82_v45 = vadd.f32 %v292_v2, %v59_v38  ;;  %v122_v46 = vmul.f32 %v301_v5, %v99_v33  ;;  %v61_v47 = vmul.f32 %v287_v1, %v38_v34 }
  0x18   :  { %v173_v50 = vmax.f32 %v157_v39, 0.0  ;;  %v159_v51 = vadd.f32 %v143_v40, %v81_v37  ;;  %v144_v52 = vadd.f32 %v306_v6, %v121_v41  ;;  %v83_v53 = vadd.f32 %v292_v2, %v60_v42  ;;  %p226_p3 = por %p225_p2, %p224_p1 }
  0x19   :  { %v174_v54 = vmax.f32 %v158_v44, 0.0  ;;  %v145_v55 = vadd.f32 %v306_v6, %v122_v46  ;;  %v84_v56 = vadd.f32 %v292_v2, %v61_v47  ;;  %v123_v57 = vmul.f32 %v301_v5, %v100_v43 }
  0x1a   :  { %189 = vst [vmem:[#allocation2 + $0x48] sm:$0xff] %v173_v50  ;;  %v175_v58 = vmax.f32 %v159_v51, 0.0  ;;  %v160_v59 = vadd.f32 %v144_v52, %v82_v45  ;;  %v62_v60 = vmul.f32 %v287_v1, %v39_v48  ;;  %v124_v61 = vmul.f32 %v301_v5, %v101_v49  ;;  %p227_p4 = pnand %p226_p3, %p220_p0 }
  0x1b   :  { %190 = vst [vmem:[#allocation2 + $0x50] sm:$0xff] %v174_v54  ;;  %v161_v62 = vadd.f32 %v145_v55, %v83_v53  ;;  %v146_v63 = vadd.f32 %v306_v6, %v123_v57 }
  0x1c   :  { %191 = vst [vmem:[#allocation2 + $0x58] sm:$0xff] %v175_v58  ;;  %v176_v0 = vmax.f32 %v160_v59, 0.0  ;;  %v85_v3 = vadd.f32 %v292_v2, %v62_v60  ;;  %v147_v4 = vadd.f32 %v306_v6, %v124_v61 }
  0x1d   :  { %v177_v7 = vmax.f32 %v161_v62, 0.0  ;;  %v162_v8 = vadd.f32 %v146_v63, %v84_v56 }
  0x1e   :  { %192 = vst [vmem:[#allocation2 + $0x60] sm:$0xff] %v176_v0  ;;  %v163_v9 = vadd.f32 %v147_v4, %v85_v3 }
  0x1f   :  { %193 = vst [vmem:[#allocation2 + $0x68] sm:$0xff] %v177_v7  ;;  %v178_v1 = vmax.f32 %v162_v8, 0.0 }
  0x20   :  { %v179_v5 = vmax.f32 %v163_v9, 0.0 }
  0x21   :  { %194 = vst [vmem:[#allocation2 + $0x70] sm:$0xff] %v178_v1 }
  0x22   :  { %195 = vst [vmem:[#allocation2 + $0x78] sm:$0xff] %v179_v5 }
  0x23   :  { %230 = shalt.err (!%p227_p4)
}
  0x24   :  { %s231_s5 = scalar_lea.hbm %s479_s6, 2048 }
  0x25   :  { %p232_p5 = scmp.ne.s32.totalorder %s479_s6, %s231_s5  ;;  %p235_p6 = scmp.lt.u32.totalorder %s231_s5, %s479_s6 }
  0x27   :  { %p237_p7 = pnand %p235_p6, %p232_p5 }
  0x29   :  { %240 = shalt.err (!%p237_p7)
}
  0x2a   :  { %s244_s17 = smov 128   ;;  %s245_s18 = smov 8  }
  0x2b   :  { %207 = dma.vmem_to_hbm [thread:$0]  %s202_s3, 2048, %s479_s6, [#allocation3], %s244_s17, %s244_s17, %s245_s18  }
  0x2c   :  { %241 = dma.done.wait [#allocation3], 2048  }
  0x2d   :  { %242 = vsyncadd [#allocation3], 4294965248 }
  0x2e   :  { %211 = vsyncpa [#allocation3], 1 }

</bundles_post_ra>
